<compile_context>
chip_gen: v6e
topology: v6e:2x2x1
jax: 0.10.0
libtpu: 0.0.40
codegen_flags: <defaults>
</compile_context>

<pallas_src>
import jax
import jax.numpy as jnp
from jax import lax
from jax.experimental import pallas as pl
from jax.experimental.pallas import tpu as pltpu

CHUNK = 128  # lanes processed per inner fori_loop iteration (one vreg wide)

LAYER_DIMS = [(2, 10), (10, 10), (10, 10), (10, 5)]  # (fan_in, fan_out) per Linear

# Flat offsets into the 1-D parameter vector.  Weights are stored transposed
# (fan_in, fan_out), row-major, so W_t[k, j] sits at w_off + k*fan_out + j.
_OFFS = {}
_cur = 0
for _i, (_fi, _fo) in enumerate(LAYER_DIMS, start=1):
    _OFFS[f"w{_i}"] = _cur
    _cur += _fi * _fo
    _OFFS[f"b{_i}"] = _cur
    _cur += _fo
N_PARAMS = _cur        # 305
PARAM_PAD = 320        # padded length of the SMEM parameter vector


def _round_up(a, m):
    return (a + m - 1) // m * m


def mlp_kernel(x_ref, p_ref, o_ref):
    """x_ref: (2, TB) f32 VMEM, p_ref: (PARAM_PAD,) f32 SMEM, o_ref: (5, TB) f32 VMEM."""
    tb = x_ref.shape[1]
    n_chunks = tb // CHUNK

    def dense(rows, n_in, n_out, w_off, b_off, apply_relu):
        # out_j = sum_k W[k,j]*h_k + b_j  -- scalar(sreg) x (1, CHUNK) vector ops.
        out_rows = []
        for j in range(n_out):
            acc = rows[0] * p_ref[w_off + j] + p_ref[b_off + j]   # bias folded in
            for k in range(1, n_in):
                acc = acc + rows[k] * p_ref[w_off + k * n_out + j]
            out_rows.append(jnp.maximum(acc, 0.0) if apply_relu else acc)
        return out_rows

    def chunk_body(c, carry):
        lo = pl.multiple_of(c * CHUNK, CHUNK)
        h = [x_ref[k:k + 1, pl.ds(lo, CHUNK)] for k in range(2)]  # (1, CHUNK) rows
        h = dense(h, 2, 10, _OFFS["w1"], _OFFS["b1"], True)
        h = dense(h, 10, 10, _OFFS["w2"], _OFFS["b2"], True)
        h = dense(h, 10, 10, _OFFS["w3"], _OFFS["b3"], True)
        y = dense(h, 10, 5, _OFFS["w4"], _OFFS["b4"], False)
        for j in range(5):
            o_ref[j:j + 1, pl.ds(lo, CHUNK)] = y[j]
        return carry

    # fori_loop (not a Python for) so live ranges stay bounded per 128-lane chunk.
    lax.fori_loop(0, n_chunks, chunk_body, 0)


def mlp_forward(x, param_vec):
    """Pallas path. x: (B, 2) f32, param_vec: (PARAM_PAD,) f32 -> (B, 5) f32."""
    B = x.shape[0]
    # Big blocks to amortize per-step overhead, but always >=2 grid steps so the
    # "parallel" grid axis can be sharded across v7x's two TensorCores.
    tb = min(1024, max(CHUNK, _round_up(pl.cdiv(B, 2), CHUNK)))
    bp = max(_round_up(B, tb), 2 * tb)

    x_t = jnp.pad(x.T, ((0, 0), (0, bp - B)))  # (2, bp): batch on the lane axis

    out = pl.pallas_call(
        mlp_kernel,
        out_shape=jax.ShapeDtypeStruct((5, bp), jnp.float32),
        grid=(bp // tb,),
        in_specs=[
            pl.BlockSpec((2, tb), lambda i: (0, i)),               # streamed batch tile
            pl.BlockSpec(memory_space=pltpu.MemorySpace.SMEM),     # 305 scalar params
        ],
        out_specs=pl.BlockSpec((5, tb), lambda i: (0, i)),         # narrow output slab
        compiler_params=pltpu.CompilerParams(
            dimension_semantics=("parallel",)),
    )(x_t, param_vec)

    return out[:, :B].T  # (B, 5)


def mlp_reference(x, params):
    h = x
    for i in range(1, 4):
        h = jnp.maximum(h @ params[f"w{i}"] + params[f"b{i}"], 0.0)
    return h @ params["w4"] + params["b4"]


def mlp_forward_auto(x, params, param_vec, min_pallas_batch=512):
    """Dispatcher: plain XLA dot chain for tiny batches (launch overhead dominates),
    fused Pallas kernel for large batches."""
    if x.shape[0] < min_pallas_batch:
        return mlp_reference(x, params)
    return mlp_forward(x, param_vec)


def init_params(key):
    """Synthetic init mirroring torch.nn.Linear defaults.

    PyTorch Linear(in, out): W (out, in), b (out,). We store W transposed ->
    (in, out), so the forward is y = x @ W_t + b, identical to torch's x @ W.T + b.
    """
    params = {}
    for i, (fan_in, fan_out) in enumerate(LAYER_DIMS, start=1):
        key, kw, kb = jax.random.split(key, 3)
        bound = 1.0 / jnp.sqrt(jnp.float32(fan_in))
        params[f"w{i}"] = jax.random.uniform(
            kw, (fan_in, fan_out), jnp.float32, -bound, bound)
        params[f"b{i}"] = jax.random.uniform(
            kb, (fan_out,), jnp.float32, -bound, bound)
    return params


def pack_params(params):
    """Pack the 4 transposed weights + 4 biases into one flat (PARAM_PAD,) f32 vector."""
    parts = []
    for i in range(1, 5):
        parts.append(params[f"w{i}"].reshape(-1))
        parts.append(params[f"b{i}"])
    parts.append(jnp.zeros((PARAM_PAD - N_PARAMS,), jnp.float32))
    return jnp.concatenate(parts).astype(jnp.float32)


if __name__ == "__main__":
    key = jax.random.PRNGKey(0)
    key, kx = jax.random.split(key)

    B = 8  # small batch consistent with Linear(2, ...) input
    x = jax.random.normal(kx, (B, 2), jnp.float32)
    params = init_params(key)
    pvec = pack_params(params)

    # Call the Pallas path directly to exercise the kernel (the auto-dispatcher
    # would route B=8 to plain XLA).
    out = jax.block_until_ready(mlp_forward(x, pvec))

    ref = mlp_reference(x, params)
    assert out.shape == (B, 5), out.shape
    assert jnp.allclose(out, ref, atol=1e-5, rtol=1e-5), "mismatch vs reference"

    print("KERNEL_OK")
</pallas_src>

<mosaic_0001>
module attributes {stable_mosaic.version = 11 : i64} {
  func.func @mlp_kernel(%arg0: i32, %arg1: memref<2x128xf32, #tpu.memory_space<vmem>>, %arg2: memref<320xf32, #tpu.memory_space<smem>>, %arg3: memref<5x128xf32, #tpu.memory_space<vmem>>) attributes {dimension_semantics = [#tpu.dimension_semantics<parallel>], iteration_bounds = array<i64: 2>, scalar_prefetch = 0 : i64, scratch_operands = 0 : i64, tpu.core_type = #tpu.core_type<tc>, window_params = [{transform_indices = @transform_0, window_bounds = array<i64: 2, 128>}, {transform_indices = @transform_1, window_bounds = array<i64: 320>}, {transform_indices = @transform_2, window_bounds = array<i64: 5, 128>}]} {
    %c0_i32 = arith.constant 0 : i32
    %c128_i32 = arith.constant 128 : i32
    %0 = arith.muli %c0_i32, %c128_i32 : i32
    %1 = tpu.assume_multiple %0, 128 : i32
    %c0 = arith.constant 0 : index
    %2 = arith.index_cast %1 : i32 to index
    %3 = vector.load %arg1[%c0, %2] : memref<2x128xf32, #tpu.memory_space<vmem>>, vector<1x128xf32>
    %c1 = arith.constant 1 : index
    %4 = arith.index_cast %1 : i32 to index
    %5 = vector.load %arg1[%c1, %4] : memref<2x128xf32, #tpu.memory_space<vmem>>, vector<1x128xf32>
    %c0_0 = arith.constant 0 : index
    %6 = memref.load %arg2[%c0_0] : memref<320xf32, #tpu.memory_space<smem>>
    %7 = vector.broadcast %6 : f32 to vector<1x128xf32>
    %8 = arith.mulf %3, %7 : vector<1x128xf32>
    %c20 = arith.constant 20 : index
    %9 = memref.load %arg2[%c20] : memref<320xf32, #tpu.memory_space<smem>>
    %10 = vector.broadcast %9 : f32 to vector<1x128xf32>
    %11 = arith.addf %8, %10 : vector<1x128xf32>
    %c10 = arith.constant 10 : index
    %12 = memref.load %arg2[%c10] : memref<320xf32, #tpu.memory_space<smem>>
    %13 = vector.broadcast %12 : f32 to vector<1x128xf32>
    %14 = arith.mulf %5, %13 : vector<1x128xf32>
    %15 = arith.addf %11, %14 : vector<1x128xf32>
    %cst = arith.constant 0.000000e+00 : f32
    %16 = vector.broadcast %cst : f32 to vector<1x128xf32>
    %17 = arith.maximumf %15, %16 : vector<1x128xf32>
    %c1_1 = arith.constant 1 : index
    %18 = memref.load %arg2[%c1_1] : memref<320xf32, #tpu.memory_space<smem>>
    %19 = vector.broadcast %18 : f32 to vector<1x128xf32>
    %20 = arith.mulf %3, %19 : vector<1x128xf32>
    %c21 = arith.constant 21 : index
    %21 = memref.load %arg2[%c21] : memref<320xf32, #tpu.memory_space<smem>>
    %22 = vector.broadcast %21 : f32 to vector<1x128xf32>
    %23 = arith.addf %20, %22 : vector<1x128xf32>
    %c11 = arith.constant 11 : index
    %24 = memref.load %arg2[%c11] : memref<320xf32, #tpu.memory_space<smem>>
    %25 = vector.broadcast %24 : f32 to vector<1x128xf32>
    %26 = arith.mulf %5, %25 : vector<1x128xf32>
    %27 = arith.addf %23, %26 : vector<1x128xf32>
    %cst_2 = arith.constant 0.000000e+00 : f32
    %28 = vector.broadcast %cst_2 : f32 to vector<1x128xf32>
    %29 = arith.maximumf %27, %28 : vector<1x128xf32>
    %c2 = arith.constant 2 : index
    %30 = memref.load %arg2[%c2] : memref<320xf32, #tpu.memory_space<smem>>
    %31 = vector.broadcast %30 : f32 to vector<1x128xf32>
    %32 = arith.mulf %3, %31 : vector<1x128xf32>
    %c22 = arith.constant 22 : index
    %33 = memref.load %arg2[%c22] : memref<320xf32, #tpu.memory_space<smem>>
    %34 = vector.broadcast %33 : f32 to vector<1x128xf32>
    %35 = arith.addf %32, %34 : vector<1x128xf32>
    %c12 = arith.constant 12 : index
    %36 = memref.load %arg2[%c12] : memref<320xf32, #tpu.memory_space<smem>>
    %37 = vector.broadcast %36 : f32 to vector<1x128xf32>
    %38 = arith.mulf %5, %37 : vector<1x128xf32>
    %39 = arith.addf %35, %38 : vector<1x128xf32>
    %cst_3 = arith.constant 0.000000e+00 : f32
    %40 = vector.broadcast %cst_3 : f32 to vector<1x128xf32>
    %41 = arith.maximumf %39, %40 : vector<1x128xf32>
    %c3 = arith.constant 3 : index
    %42 = memref.load %arg2[%c3] : memref<320xf32, #tpu.memory_space<smem>>
    %43 = vector.broadcast %42 : f32 to vector<1x128xf32>
    %44 = arith.mulf %3, %43 : vector<1x128xf32>
    %c23 = arith.constant 23 : index
    %45 = memref.load %arg2[%c23] : memref<320xf32, #tpu.memory_space<smem>>
    %46 = vector.broadcast %45 : f32 to vector<1x128xf32>
    %47 = arith.addf %44, %46 : vector<1x128xf32>
    %c13 = arith.constant 13 : index
    %48 = memref.load %arg2[%c13] : memref<320xf32, #tpu.memory_space<smem>>
    %49 = vector.broadcast %48 : f32 to vector<1x128xf32>
    %50 = arith.mulf %5, %49 : vector<1x128xf32>
    %51 = arith.addf %47, %50 : vector<1x128xf32>
    %cst_4 = arith.constant 0.000000e+00 : f32
    %52 = vector.broadcast %cst_4 : f32 to vector<1x128xf32>
    %53 = arith.maximumf %51, %52 : vector<1x128xf32>
    %c4 = arith.constant 4 : index
    %54 = memref.load %arg2[%c4] : memref<320xf32, #tpu.memory_space<smem>>
    %55 = vector.broadcast %54 : f32 to vector<1x128xf32>
    %56 = arith.mulf %3, %55 : vector<1x128xf32>
    %c24 = arith.constant 24 : index
    %57 = memref.load %arg2[%c24] : memref<320xf32, #tpu.memory_space<smem>>
    %58 = vector.broadcast %57 : f32 to vector<1x128xf32>
    %59 = arith.addf %56, %58 : vector<1x128xf32>
    %c14 = arith.constant 14 : index
    %60 = memref.load %arg2[%c14] : memref<320xf32, #tpu.memory_space<smem>>
    %61 = vector.broadcast %60 : f32 to vector<1x128xf32>
    %62 = arith.mulf %5, %61 : vector<1x128xf32>
    %63 = arith.addf %59, %62 : vector<1x128xf32>
    %cst_5 = arith.constant 0.000000e+00 : f32
    %64 = vector.broadcast %cst_5 : f32 to vector<1x128xf32>
    %65 = arith.maximumf %63, %64 : vector<1x128xf32>
    %c5 = arith.constant 5 : index
    %66 = memref.load %arg2[%c5] : memref<320xf32, #tpu.memory_space<smem>>
    %67 = vector.broadcast %66 : f32 to vector<1x128xf32>
    %68 = arith.mulf %3, %67 : vector<1x128xf32>
    %c25 = arith.constant 25 : index
    %69 = memref.load %arg2[%c25] : memref<320xf32, #tpu.memory_space<smem>>
    %70 = vector.broadcast %69 : f32 to vector<1x128xf32>
    %71 = arith.addf %68, %70 : vector<1x128xf32>
    %c15 = arith.constant 15 : index
    %72 = memref.load %arg2[%c15] : memref<320xf32, #tpu.memory_space<smem>>
    %73 = vector.broadcast %72 : f32 to vector<1x128xf32>
    %74 = arith.mulf %5, %73 : vector<1x128xf32>
    %75 = arith.addf %71, %74 : vector<1x128xf32>
    %cst_6 = arith.constant 0.000000e+00 : f32
    %76 = vector.broadcast %cst_6 : f32 to vector<1x128xf32>
    %77 = arith.maximumf %75, %76 : vector<1x128xf32>
    %c6 = arith.constant 6 : index
    %78 = memref.load %arg2[%c6] : memref<320xf32, #tpu.memory_space<smem>>
    %79 = vector.broadcast %78 : f32 to vector<1x128xf32>
    %80 = arith.mulf %3, %79 : vector<1x128xf32>
    %c26 = arith.constant 26 : index
    %81 = memref.load %arg2[%c26] : memref<320xf32, #tpu.memory_space<smem>>
    %82 = vector.broadcast %81 : f32 to vector<1x128xf32>
    %83 = arith.addf %80, %82 : vector<1x128xf32>
    %c16 = arith.constant 16 : index
    %84 = memref.load %arg2[%c16] : memref<320xf32, #tpu.memory_space<smem>>
    %85 = vector.broadcast %84 : f32 to vector<1x128xf32>
    %86 = arith.mulf %5, %85 : vector<1x128xf32>
    %87 = arith.addf %83, %86 : vector<1x128xf32>
    %cst_7 = arith.constant 0.000000e+00 : f32
    %88 = vector.broadcast %cst_7 : f32 to vector<1x128xf32>
    %89 = arith.maximumf %87, %88 : vector<1x128xf32>
    %c7 = arith.constant 7 : index
    %90 = memref.load %arg2[%c7] : memref<320xf32, #tpu.memory_space<smem>>
    %91 = vector.broadcast %90 : f32 to vector<1x128xf32>
    %92 = arith.mulf %3, %91 : vector<1x128xf32>
    %c27 = arith.constant 27 : index
    %93 = memref.load %arg2[%c27] : memref<320xf32, #tpu.memory_space<smem>>
    %94 = vector.broadcast %93 : f32 to vector<1x128xf32>
    %95 = arith.addf %92, %94 : vector<1x128xf32>
    %c17 = arith.constant 17 : index
    %96 = memref.load %arg2[%c17] : memref<320xf32, #tpu.memory_space<smem>>
    %97 = vector.broadcast %96 : f32 to vector<1x128xf32>
    %98 = arith.mulf %5, %97 : vector<1x128xf32>
    %99 = arith.addf %95, %98 : vector<1x128xf32>
    %cst_8 = arith.constant 0.000000e+00 : f32
    %100 = vector.broadcast %cst_8 : f32 to vector<1x128xf32>
    %101 = arith.maximumf %99, %100 : vector<1x128xf32>
    %c8 = arith.constant 8 : index
    %102 = memref.load %arg2[%c8] : memref<320xf32, #tpu.memory_space<smem>>
    %103 = vector.broadcast %102 : f32 to vector<1x128xf32>
    %104 = arith.mulf %3, %103 : vector<1x128xf32>
    %c28 = arith.constant 28 : index
    %105 = memref.load %arg2[%c28] : memref<320xf32, #tpu.memory_space<smem>>
    %106 = vector.broadcast %105 : f32 to vector<1x128xf32>
    %107 = arith.addf %104, %106 : vector<1x128xf32>
    %c18 = arith.constant 18 : index
    %108 = memref.load %arg2[%c18] : memref<320xf32, #tpu.memory_space<smem>>
    %109 = vector.broadcast %108 : f32 to vector<1x128xf32>
    %110 = arith.mulf %5, %109 : vector<1x128xf32>
    %111 = arith.addf %107, %110 : vector<1x128xf32>
    %cst_9 = arith.constant 0.000000e+00 : f32
    %112 = vector.broadcast %cst_9 : f32 to vector<1x128xf32>
    %113 = arith.maximumf %111, %112 : vector<1x128xf32>
    %c9 = arith.constant 9 : index
    %114 = memref.load %arg2[%c9] : memref<320xf32, #tpu.memory_space<smem>>
    %115 = vector.broadcast %114 : f32 to vector<1x128xf32>
    %116 = arith.mulf %3, %115 : vector<1x128xf32>
    %c29 = arith.constant 29 : index
    %117 = memref.load %arg2[%c29] : memref<320xf32, #tpu.memory_space<smem>>
    %118 = vector.broadcast %117 : f32 to vector<1x128xf32>
    %119 = arith.addf %116, %118 : vector<1x128xf32>
    %c19 = arith.constant 19 : index
    %120 = memref.load %arg2[%c19] : memref<320xf32, #tpu.memory_space<smem>>
    %121 = vector.broadcast %120 : f32 to vector<1x128xf32>
    %122 = arith.mulf %5, %121 : vector<1x128xf32>
    %123 = arith.addf %119, %122 : vector<1x128xf32>
    %cst_10 = arith.constant 0.000000e+00 : f32
    %124 = vector.broadcast %cst_10 : f32 to vector<1x128xf32>
    %125 = arith.maximumf %123, %124 : vector<1x128xf32>
    %c30 = arith.constant 30 : index
    %126 = memref.load %arg2[%c30] : memref<320xf32, #tpu.memory_space<smem>>
    %127 = vector.broadcast %126 : f32 to vector<1x128xf32>
    %128 = arith.mulf %17, %127 : vector<1x128xf32>
    %c130 = arith.constant 130 : index
    %129 = memref.load %arg2[%c130] : memref<320xf32, #tpu.memory_space<smem>>
    %130 = vector.broadcast %129 : f32 to vector<1x128xf32>
    %131 = arith.addf %128, %130 : vector<1x128xf32>
    %c40 = arith.constant 40 : index
    %132 = memref.load %arg2[%c40] : memref<320xf32, #tpu.memory_space<smem>>
    %133 = vector.broadcast %132 : f32 to vector<1x128xf32>
    %134 = arith.mulf %29, %133 : vector<1x128xf32>
    %135 = arith.addf %131, %134 : vector<1x128xf32>
    %c50 = arith.constant 50 : index
    %136 = memref.load %arg2[%c50] : memref<320xf32, #tpu.memory_space<smem>>
    %137 = vector.broadcast %136 : f32 to vector<1x128xf32>
    %138 = arith.mulf %41, %137 : vector<1x128xf32>
    %139 = arith.addf %135, %138 : vector<1x128xf32>
    %c60 = arith.constant 60 : index
    %140 = memref.load %arg2[%c60] : memref<320xf32, #tpu.memory_space<smem>>
    %141 = vector.broadcast %140 : f32 to vector<1x128xf32>
    %142 = arith.mulf %53, %141 : vector<1x128xf32>
    %143 = arith.addf %139, %142 : vector<1x128xf32>
    %c70 = arith.constant 70 : index
    %144 = memref.load %arg2[%c70] : memref<320xf32, #tpu.memory_space<smem>>
    %145 = vector.broadcast %144 : f32 to vector<1x128xf32>
    %146 = arith.mulf %65, %145 : vector<1x128xf32>
    %147 = arith.addf %143, %146 : vector<1x128xf32>
    %c80 = arith.constant 80 : index
    %148 = memref.load %arg2[%c80] : memref<320xf32, #tpu.memory_space<smem>>
    %149 = vector.broadcast %148 : f32 to vector<1x128xf32>
    %150 = arith.mulf %77, %149 : vector<1x128xf32>
    %151 = arith.addf %147, %150 : vector<1x128xf32>
    %c90 = arith.constant 90 : index
    %152 = memref.load %arg2[%c90] : memref<320xf32, #tpu.memory_space<smem>>
    %153 = vector.broadcast %152 : f32 to vector<1x128xf32>
    %154 = arith.mulf %89, %153 : vector<1x128xf32>
    %155 = arith.addf %151, %154 : vector<1x128xf32>
    %c100 = arith.constant 100 : index
    %156 = memref.load %arg2[%c100] : memref<320xf32, #tpu.memory_space<smem>>
    %157 = vector.broadcast %156 : f32 to vector<1x128xf32>
    %158 = arith.mulf %101, %157 : vector<1x128xf32>
    %159 = arith.addf %155, %158 : vector<1x128xf32>
    %c110 = arith.constant 110 : index
    %160 = memref.load %arg2[%c110] : memref<320xf32, #tpu.memory_space<smem>>
    %161 = vector.broadcast %160 : f32 to vector<1x128xf32>
    %162 = arith.mulf %113, %161 : vector<1x128xf32>
    %163 = arith.addf %159, %162 : vector<1x128xf32>
    %c120 = arith.constant 120 : index
    %164 = memref.load %arg2[%c120] : memref<320xf32, #tpu.memory_space<smem>>
    %165 = vector.broadcast %164 : f32 to vector<1x128xf32>
    %166 = arith.mulf %125, %165 : vector<1x128xf32>
    %167 = arith.addf %163, %166 : vector<1x128xf32>
    %cst_11 = arith.constant 0.000000e+00 : f32
    %168 = vector.broadcast %cst_11 : f32 to vector<1x128xf32>
    %169 = arith.maximumf %167, %168 : vector<1x128xf32>
    %c31 = arith.constant 31 : index
    %170 = memref.load %arg2[%c31] : memref<320xf32, #tpu.memory_space<smem>>
    %171 = vector.broadcast %170 : f32 to vector<1x128xf32>
    %172 = arith.mulf %17, %171 : vector<1x128xf32>
    %c131 = arith.constant 131 : index
    %173 = memref.load %arg2[%c131] : memref<320xf32, #tpu.memory_space<smem>>
    %174 = vector.broadcast %173 : f32 to vector<1x128xf32>
    %175 = arith.addf %172, %174 : vector<1x128xf32>
    %c41 = arith.constant 41 : index
    %176 = memref.load %arg2[%c41] : memref<320xf32, #tpu.memory_space<smem>>
    %177 = vector.broadcast %176 : f32 to vector<1x128xf32>
    %178 = arith.mulf %29, %177 : vector<1x128xf32>
    %179 = arith.addf %175, %178 : vector<1x128xf32>
    %c51 = arith.constant 51 : index
    %180 = memref.load %arg2[%c51] : memref<320xf32, #tpu.memory_space<smem>>
    %181 = vector.broadcast %180 : f32 to vector<1x128xf32>
    %182 = arith.mulf %41, %181 : vector<1x128xf32>
    %183 = arith.addf %179, %182 : vector<1x128xf32>
    %c61 = arith.constant 61 : index
    %184 = memref.load %arg2[%c61] : memref<320xf32, #tpu.memory_space<smem>>
    %185 = vector.broadcast %184 : f32 to vector<1x128xf32>
    %186 = arith.mulf %53, %185 : vector<1x128xf32>
    %187 = arith.addf %183, %186 : vector<1x128xf32>
    %c71 = arith.constant 71 : index
    %188 = memref.load %arg2[%c71] : memref<320xf32, #tpu.memory_space<smem>>
    %189 = vector.broadcast %188 : f32 to vector<1x128xf32>
    %190 = arith.mulf %65, %189 : vector<1x128xf32>
    %191 = arith.addf %187, %190 : vector<1x128xf32>
    %c81 = arith.constant 81 : index
    %192 = memref.load %arg2[%c81] : memref<320xf32, #tpu.memory_space<smem>>
    %193 = vector.broadcast %192 : f32 to vector<1x128xf32>
    %194 = arith.mulf %77, %193 : vector<1x128xf32>
    %195 = arith.addf %191, %194 : vector<1x128xf32>
    %c91 = arith.constant 91 : index
    %196 = memref.load %arg2[%c91] : memref<320xf32, #tpu.memory_space<smem>>
    %197 = vector.broadcast %196 : f32 to vector<1x128xf32>
    %198 = arith.mulf %89, %197 : vector<1x128xf32>
    %199 = arith.addf %195, %198 : vector<1x128xf32>
    %c101 = arith.constant 101 : index
    %200 = memref.load %arg2[%c101] : memref<320xf32, #tpu.memory_space<smem>>
    %201 = vector.broadcast %200 : f32 to vector<1x128xf32>
    %202 = arith.mulf %101, %201 : vector<1x128xf32>
    %203 = arith.addf %199, %202 : vector<1x128xf32>
    %c111 = arith.constant 111 : index
    %204 = memref.load %arg2[%c111] : memref<320xf32, #tpu.memory_space<smem>>
    %205 = vector.broadcast %204 : f32 to vector<1x128xf32>
    %206 = arith.mulf %113, %205 : vector<1x128xf32>
    %207 = arith.addf %203, %206 : vector<1x128xf32>
    %c121 = arith.constant 121 : index
    %208 = memref.load %arg2[%c121] : memref<320xf32, #tpu.memory_space<smem>>
    %209 = vector.broadcast %208 : f32 to vector<1x128xf32>
    %210 = arith.mulf %125, %209 : vector<1x128xf32>
    %211 = arith.addf %207, %210 : vector<1x128xf32>
    %cst_12 = arith.constant 0.000000e+00 : f32
    %212 = vector.broadcast %cst_12 : f32 to vector<1x128xf32>
    %213 = arith.maximumf %211, %212 : vector<1x128xf32>
    %c32 = arith.constant 32 : index
    %214 = memref.load %arg2[%c32] : memref<320xf32, #tpu.memory_space<smem>>
    %215 = vector.broadcast %214 : f32 to vector<1x128xf32>
    %216 = arith.mulf %17, %215 : vector<1x128xf32>
    %c132 = arith.constant 132 : index
    %217 = memref.load %arg2[%c132] : memref<320xf32, #tpu.memory_space<smem>>
    %218 = vector.broadcast %217 : f32 to vector<1x128xf32>
    %219 = arith.addf %216, %218 : vector<1x128xf32>
    %c42 = arith.constant 42 : index
    %220 = memref.load %arg2[%c42] : memref<320xf32, #tpu.memory_space<smem>>
    %221 = vector.broadcast %220 : f32 to vector<1x128xf32>
    %222 = arith.mulf %29, %221 : vector<1x128xf32>
    %223 = arith.addf %219, %222 : vector<1x128xf32>
    %c52 = arith.constant 52 : index
    %224 = memref.load %arg2[%c52] : memref<320xf32, #tpu.memory_space<smem>>
    %225 = vector.broadcast %224 : f32 to vector<1x128xf32>
    %226 = arith.mulf %41, %225 : vector<1x128xf32>
    %227 = arith.addf %223, %226 : vector<1x128xf32>
    %c62 = arith.constant 62 : index
    %228 = memref.load %arg2[%c62] : memref<320xf32, #tpu.memory_space<smem>>
    %229 = vector.broadcast %228 : f32 to vector<1x128xf32>
    %230 = arith.mulf %53, %229 : vector<1x128xf32>
    %231 = arith.addf %227, %230 : vector<1x128xf32>
    %c72 = arith.constant 72 : index
    %232 = memref.load %arg2[%c72] : memref<320xf32, #tpu.memory_space<smem>>
    %233 = vector.broadcast %232 : f32 to vector<1x128xf32>
    %234 = arith.mulf %65, %233 : vector<1x128xf32>
    %235 = arith.addf %231, %234 : vector<1x128xf32>
    %c82 = arith.constant 82 : index
    %236 = memref.load %arg2[%c82] : memref<320xf32, #tpu.memory_space<smem>>
    %237 = vector.broadcast %236 : f32 to vector<1x128xf32>
    %238 = arith.mulf %77, %237 : vector<1x128xf32>
    %239 = arith.addf %235, %238 : vector<1x128xf32>
    %c92 = arith.constant 92 : index
    %240 = memref.load %arg2[%c92] : memref<320xf32, #tpu.memory_space<smem>>
    %241 = vector.broadcast %240 : f32 to vector<1x128xf32>
    %242 = arith.mulf %89, %241 : vector<1x128xf32>
    %243 = arith.addf %239, %242 : vector<1x128xf32>
    %c102 = arith.constant 102 : index
    %244 = memref.load %arg2[%c102] : memref<320xf32, #tpu.memory_space<smem>>
    %245 = vector.broadcast %244 : f32 to vector<1x128xf32>
    %246 = arith.mulf %101, %245 : vector<1x128xf32>
    %247 = arith.addf %243, %246 : vector<1x128xf32>
    %c112 = arith.constant 112 : index
    %248 = memref.load %arg2[%c112] : memref<320xf32, #tpu.memory_space<smem>>
    %249 = vector.broadcast %248 : f32 to vector<1x128xf32>
    %250 = arith.mulf %113, %249 : vector<1x128xf32>
    %251 = arith.addf %247, %250 : vector<1x128xf32>
    %c122 = arith.constant 122 : index
    %252 = memref.load %arg2[%c122] : memref<320xf32, #tpu.memory_space<smem>>
    %253 = vector.broadcast %252 : f32 to vector<1x128xf32>
    %254 = arith.mulf %125, %253 : vector<1x128xf32>
    %255 = arith.addf %251, %254 : vector<1x128xf32>
    %cst_13 = arith.constant 0.000000e+00 : f32
    %256 = vector.broadcast %cst_13 : f32 to vector<1x128xf32>
    %257 = arith.maximumf %255, %256 : vector<1x128xf32>
    %c33 = arith.constant 33 : index
    %258 = memref.load %arg2[%c33] : memref<320xf32, #tpu.memory_space<smem>>
    %259 = vector.broadcast %258 : f32 to vector<1x128xf32>
    %260 = arith.mulf %17, %259 : vector<1x128xf32>
    %c133 = arith.constant 133 : index
    %261 = memref.load %arg2[%c133] : memref<320xf32, #tpu.memory_space<smem>>
    %262 = vector.broadcast %261 : f32 to vector<1x128xf32>
    %263 = arith.addf %260, %262 : vector<1x128xf32>
    %c43 = arith.constant 43 : index
    %264 = memref.load %arg2[%c43] : memref<320xf32, #tpu.memory_space<smem>>
    %265 = vector.broadcast %264 : f32 to vector<1x128xf32>
    %266 = arith.mulf %29, %265 : vector<1x128xf32>
    %267 = arith.addf %263, %266 : vector<1x128xf32>
    %c53 = arith.constant 53 : index
    %268 = memref.load %arg2[%c53] : memref<320xf32, #tpu.memory_space<smem>>
    %269 = vector.broadcast %268 : f32 to vector<1x128xf32>
    %270 = arith.mulf %41, %269 : vector<1x128xf32>
    %271 = arith.addf %267, %270 : vector<1x128xf32>
    %c63 = arith.constant 63 : index
    %272 = memref.load %arg2[%c63] : memref<320xf32, #tpu.memory_space<smem>>
    %273 = vector.broadcast %272 : f32 to vector<1x128xf32>
    %274 = arith.mulf %53, %273 : vector<1x128xf32>
    %275 = arith.addf %271, %274 : vector<1x128xf32>
    %c73 = arith.constant 73 : index
    %276 = memref.load %arg2[%c73] : memref<320xf32, #tpu.memory_space<smem>>
    %277 = vector.broadcast %276 : f32 to vector<1x128xf32>
    %278 = arith.mulf %65, %277 : vector<1x128xf32>
    %279 = arith.addf %275, %278 : vector<1x128xf32>
    %c83 = arith.constant 83 : index
    %280 = memref.load %arg2[%c83] : memref<320xf32, #tpu.memory_space<smem>>
    %281 = vector.broadcast %280 : f32 to vector<1x128xf32>
    %282 = arith.mulf %77, %281 : vector<1x128xf32>
    %283 = arith.addf %279, %282 : vector<1x128xf32>
    %c93 = arith.constant 93 : index
    %284 = memref.load %arg2[%c93] : memref<320xf32, #tpu.memory_space<smem>>
    %285 = vector.broadcast %284 : f32 to vector<1x128xf32>
    %286 = arith.mulf %89, %285 : vector<1x128xf32>
    %287 = arith.addf %283, %286 : vector<1x128xf32>
    %c103 = arith.constant 103 : index
    %288 = memref.load %arg2[%c103] : memref<320xf32, #tpu.memory_space<smem>>
    %289 = vector.broadcast %288 : f32 to vector<1x128xf32>
    %290 = arith.mulf %101, %289 : vector<1x128xf32>
    %291 = arith.addf %287, %290 : vector<1x128xf32>
    %c113 = arith.constant 113 : index
    %292 = memref.load %arg2[%c113] : memref<320xf32, #tpu.memory_space<smem>>
    %293 = vector.broadcast %292 : f32 to vector<1x128xf32>
    %294 = arith.mulf %113, %293 : vector<1x128xf32>
    %295 = arith.addf %291, %294 : vector<1x128xf32>
    %c123 = arith.constant 123 : index
    %296 = memref.load %arg2[%c123] : memref<320xf32, #tpu.memory_space<smem>>
    %297 = vector.broadcast %296 : f32 to vector<1x128xf32>
    %298 = arith.mulf %125, %297 : vector<1x128xf32>
    %299 = arith.addf %295, %298 : vector<1x128xf32>
    %cst_14 = arith.constant 0.000000e+00 : f32
    %300 = vector.broadcast %cst_14 : f32 to vector<1x128xf32>
    %301 = arith.maximumf %299, %300 : vector<1x128xf32>
    %c34 = arith.constant 34 : index
    %302 = memref.load %arg2[%c34] : memref<320xf32, #tpu.memory_space<smem>>
    %303 = vector.broadcast %302 : f32 to vector<1x128xf32>
    %304 = arith.mulf %17, %303 : vector<1x128xf32>
    %c134 = arith.constant 134 : index
    %305 = memref.load %arg2[%c134] : memref<320xf32, #tpu.memory_space<smem>>
    %306 = vector.broadcast %305 : f32 to vector<1x128xf32>
    %307 = arith.addf %304, %306 : vector<1x128xf32>
    %c44 = arith.constant 44 : index
    %308 = memref.load %arg2[%c44] : memref<320xf32, #tpu.memory_space<smem>>
    %309 = vector.broadcast %308 : f32 to vector<1x128xf32>
    %310 = arith.mulf %29, %309 : vector<1x128xf32>
    %311 = arith.addf %307, %310 : vector<1x128xf32>
    %c54 = arith.constant 54 : index
    %312 = memref.load %arg2[%c54] : memref<320xf32, #tpu.memory_space<smem>>
    %313 = vector.broadcast %312 : f32 to vector<1x128xf32>
    %314 = arith.mulf %41, %313 : vector<1x128xf32>
    %315 = arith.addf %311, %314 : vector<1x128xf32>
    %c64 = arith.constant 64 : index
    %316 = memref.load %arg2[%c64] : memref<320xf32, #tpu.memory_space<smem>>
    %317 = vector.broadcast %316 : f32 to vector<1x128xf32>
    %318 = arith.mulf %53, %317 : vector<1x128xf32>
    %319 = arith.addf %315, %318 : vector<1x128xf32>
    %c74 = arith.constant 74 : index
    %320 = memref.load %arg2[%c74] : memref<320xf32, #tpu.memory_space<smem>>
    %321 = vector.broadcast %320 : f32 to vector<1x128xf32>
    %322 = arith.mulf %65, %321 : vector<1x128xf32>
    %323 = arith.addf %319, %322 : vector<1x128xf32>
    %c84 = arith.constant 84 : index
    %324 = memref.load %arg2[%c84] : memref<320xf32, #tpu.memory_space<smem>>
    %325 = vector.broadcast %324 : f32 to vector<1x128xf32>
    %326 = arith.mulf %77, %325 : vector<1x128xf32>
    %327 = arith.addf %323, %326 : vector<1x128xf32>
    %c94 = arith.constant 94 : index
    %328 = memref.load %arg2[%c94] : memref<320xf32, #tpu.memory_space<smem>>
    %329 = vector.broadcast %328 : f32 to vector<1x128xf32>
    %330 = arith.mulf %89, %329 : vector<1x128xf32>
    %331 = arith.addf %327, %330 : vector<1x128xf32>
    %c104 = arith.constant 104 : index
    %332 = memref.load %arg2[%c104] : memref<320xf32, #tpu.memory_space<smem>>
    %333 = vector.broadcast %332 : f32 to vector<1x128xf32>
    %334 = arith.mulf %101, %333 : vector<1x128xf32>
    %335 = arith.addf %331, %334 : vector<1x128xf32>
    %c114 = arith.constant 114 : index
    %336 = memref.load %arg2[%c114] : memref<320xf32, #tpu.memory_space<smem>>
    %337 = vector.broadcast %336 : f32 to vector<1x128xf32>
    %338 = arith.mulf %113, %337 : vector<1x128xf32>
    %339 = arith.addf %335, %338 : vector<1x128xf32>
    %c124 = arith.constant 124 : index
    %340 = memref.load %arg2[%c124] : memref<320xf32, #tpu.memory_space<smem>>
    %341 = vector.broadcast %340 : f32 to vector<1x128xf32>
    %342 = arith.mulf %125, %341 : vector<1x128xf32>
    %343 = arith.addf %339, %342 : vector<1x128xf32>
    %cst_15 = arith.constant 0.000000e+00 : f32
    %344 = vector.broadcast %cst_15 : f32 to vector<1x128xf32>
    %345 = arith.maximumf %343, %344 : vector<1x128xf32>
    %c35 = arith.constant 35 : index
    %346 = memref.load %arg2[%c35] : memref<320xf32, #tpu.memory_space<smem>>
    %347 = vector.broadcast %346 : f32 to vector<1x128xf32>
    %348 = arith.mulf %17, %347 : vector<1x128xf32>
    %c135 = arith.constant 135 : index
    %349 = memref.load %arg2[%c135] : memref<320xf32, #tpu.memory_space<smem>>
    %350 = vector.broadcast %349 : f32 to vector<1x128xf32>
    %351 = arith.addf %348, %350 : vector<1x128xf32>
    %c45 = arith.constant 45 : index
    %352 = memref.load %arg2[%c45] : memref<320xf32, #tpu.memory_space<smem>>
    %353 = vector.broadcast %352 : f32 to vector<1x128xf32>
    %354 = arith.mulf %29, %353 : vector<1x128xf32>
    %355 = arith.addf %351, %354 : vector<1x128xf32>
    %c55 = arith.constant 55 : index
    %356 = memref.load %arg2[%c55] : memref<320xf32, #tpu.memory_space<smem>>
    %357 = vector.broadcast %356 : f32 to vector<1x128xf32>
    %358 = arith.mulf %41, %357 : vector<1x128xf32>
    %359 = arith.addf %355, %358 : vector<1x128xf32>
    %c65 = arith.constant 65 : index
    %360 = memref.load %arg2[%c65] : memref<320xf32, #tpu.memory_space<smem>>
    %361 = vector.broadcast %360 : f32 to vector<1x128xf32>
    %362 = arith.mulf %53, %361 : vector<1x128xf32>
    %363 = arith.addf %359, %362 : vector<1x128xf32>
    %c75 = arith.constant 75 : index
    %364 = memref.load %arg2[%c75] : memref<320xf32, #tpu.memory_space<smem>>
    %365 = vector.broadcast %364 : f32 to vector<1x128xf32>
    %366 = arith.mulf %65, %365 : vector<1x128xf32>
    %367 = arith.addf %363, %366 : vector<1x128xf32>
    %c85 = arith.constant 85 : index
    %368 = memref.load %arg2[%c85] : memref<320xf32, #tpu.memory_space<smem>>
    %369 = vector.broadcast %368 : f32 to vector<1x128xf32>
    %370 = arith.mulf %77, %369 : vector<1x128xf32>
    %371 = arith.addf %367, %370 : vector<1x128xf32>
    %c95 = arith.constant 95 : index
    %372 = memref.load %arg2[%c95] : memref<320xf32, #tpu.memory_space<smem>>
    %373 = vector.broadcast %372 : f32 to vector<1x128xf32>
    %374 = arith.mulf %89, %373 : vector<1x128xf32>
    %375 = arith.addf %371, %374 : vector<1x128xf32>
    %c105 = arith.constant 105 : index
    %376 = memref.load %arg2[%c105] : memref<320xf32, #tpu.memory_space<smem>>
    %377 = vector.broadcast %376 : f32 to vector<1x128xf32>
    %378 = arith.mulf %101, %377 : vector<1x128xf32>
    %379 = arith.addf %375, %378 : vector<1x128xf32>
    %c115 = arith.constant 115 : index
    %380 = memref.load %arg2[%c115] : memref<320xf32, #tpu.memory_space<smem>>
    %381 = vector.broadcast %380 : f32 to vector<1x128xf32>
    %382 = arith.mulf %113, %381 : vector<1x128xf32>
    %383 = arith.addf %379, %382 : vector<1x128xf32>
    %c125 = arith.constant 125 : index
    %384 = memref.load %arg2[%c125] : memref<320xf32, #tpu.memory_space<smem>>
    %385 = vector.broadcast %384 : f32 to vector<1x128xf32>
    %386 = arith.mulf %125, %385 : vector<1x128xf32>
    %387 = arith.addf %383, %386 : vector<1x128xf32>
    %cst_16 = arith.constant 0.000000e+00 : f32
    %388 = vector.broadcast %cst_16 : f32 to vector<1x128xf32>
    %389 = arith.maximumf %387, %388 : vector<1x128xf32>
    %c36 = arith.constant 36 : index
    %390 = memref.load %arg2[%c36] : memref<320xf32, #tpu.memory_space<smem>>
    %391 = vector.broadcast %390 : f32 to vector<1x128xf32>
    %392 = arith.mulf %17, %391 : vector<1x128xf32>
    %c136 = arith.constant 136 : index
    %393 = memref.load %arg2[%c136] : memref<320xf32, #tpu.memory_space<smem>>
    %394 = vector.broadcast %393 : f32 to vector<1x128xf32>
    %395 = arith.addf %392, %394 : vector<1x128xf32>
    %c46 = arith.constant 46 : index
    %396 = memref.load %arg2[%c46] : memref<320xf32, #tpu.memory_space<smem>>
    %397 = vector.broadcast %396 : f32 to vector<1x128xf32>
    %398 = arith.mulf %29, %397 : vector<1x128xf32>
    %399 = arith.addf %395, %398 : vector<1x128xf32>
    %c56 = arith.constant 56 : index
    %400 = memref.load %arg2[%c56] : memref<320xf32, #tpu.memory_space<smem>>
    %401 = vector.broadcast %400 : f32 to vector<1x128xf32>
    %402 = arith.mulf %41, %401 : vector<1x128xf32>
    %403 = arith.addf %399, %402 : vector<1x128xf32>
    %c66 = arith.constant 66 : index
    %404 = memref.load %arg2[%c66] : memref<320xf32, #tpu.memory_space<smem>>
    %405 = vector.broadcast %404 : f32 to vector<1x128xf32>
    %406 = arith.mulf %53, %405 : vector<1x128xf32>
    %407 = arith.addf %403, %406 : vector<1x128xf32>
    %c76 = arith.constant 76 : index
    %408 = memref.load %arg2[%c76] : memref<320xf32, #tpu.memory_space<smem>>
    %409 = vector.broadcast %408 : f32 to vector<1x128xf32>
    %410 = arith.mulf %65, %409 : vector<1x128xf32>
    %411 = arith.addf %407, %410 : vector<1x128xf32>
    %c86 = arith.constant 86 : index
    %412 = memref.load %arg2[%c86] : memref<320xf32, #tpu.memory_space<smem>>
    %413 = vector.broadcast %412 : f32 to vector<1x128xf32>
    %414 = arith.mulf %77, %413 : vector<1x128xf32>
    %415 = arith.addf %411, %414 : vector<1x128xf32>
    %c96 = arith.constant 96 : index
    %416 = memref.load %arg2[%c96] : memref<320xf32, #tpu.memory_space<smem>>
    %417 = vector.broadcast %416 : f32 to vector<1x128xf32>
    %418 = arith.mulf %89, %417 : vector<1x128xf32>
    %419 = arith.addf %415, %418 : vector<1x128xf32>
    %c106 = arith.constant 106 : index
    %420 = memref.load %arg2[%c106] : memref<320xf32, #tpu.memory_space<smem>>
    %421 = vector.broadcast %420 : f32 to vector<1x128xf32>
    %422 = arith.mulf %101, %421 : vector<1x128xf32>
    %423 = arith.addf %419, %422 : vector<1x128xf32>
    %c116 = arith.constant 116 : index
    %424 = memref.load %arg2[%c116] : memref<320xf32, #tpu.memory_space<smem>>
    %425 = vector.broadcast %424 : f32 to vector<1x128xf32>
    %426 = arith.mulf %113, %425 : vector<1x128xf32>
    %427 = arith.addf %423, %426 : vector<1x128xf32>
    %c126 = arith.constant 126 : index
    %428 = memref.load %arg2[%c126] : memref<320xf32, #tpu.memory_space<smem>>
    %429 = vector.broadcast %428 : f32 to vector<1x128xf32>
    %430 = arith.mulf %125, %429 : vector<1x128xf32>
    %431 = arith.addf %427, %430 : vector<1x128xf32>
    %cst_17 = arith.constant 0.000000e+00 : f32
    %432 = vector.broadcast %cst_17 : f32 to vector<1x128xf32>
    %433 = arith.maximumf %431, %432 : vector<1x128xf32>
    %c37 = arith.constant 37 : index
    %434 = memref.load %arg2[%c37] : memref<320xf32, #tpu.memory_space<smem>>
    %435 = vector.broadcast %434 : f32 to vector<1x128xf32>
    %436 = arith.mulf %17, %435 : vector<1x128xf32>
    %c137 = arith.constant 137 : index
    %437 = memref.load %arg2[%c137] : memref<320xf32, #tpu.memory_space<smem>>
    %438 = vector.broadcast %437 : f32 to vector<1x128xf32>
    %439 = arith.addf %436, %438 : vector<1x128xf32>
    %c47 = arith.constant 47 : index
    %440 = memref.load %arg2[%c47] : memref<320xf32, #tpu.memory_space<smem>>
    %441 = vector.broadcast %440 : f32 to vector<1x128xf32>
    %442 = arith.mulf %29, %441 : vector<1x128xf32>
    %443 = arith.addf %439, %442 : vector<1x128xf32>
    %c57 = arith.constant 57 : index
    %444 = memref.load %arg2[%c57] : memref<320xf32, #tpu.memory_space<smem>>
    %445 = vector.broadcast %444 : f32 to vector<1x128xf32>
    %446 = arith.mulf %41, %445 : vector<1x128xf32>
    %447 = arith.addf %443, %446 : vector<1x128xf32>
    %c67 = arith.constant 67 : index
    %448 = memref.load %arg2[%c67] : memref<320xf32, #tpu.memory_space<smem>>
    %449 = vector.broadcast %448 : f32 to vector<1x128xf32>
    %450 = arith.mulf %53, %449 : vector<1x128xf32>
    %451 = arith.addf %447, %450 : vector<1x128xf32>
    %c77 = arith.constant 77 : index
    %452 = memref.load %arg2[%c77] : memref<320xf32, #tpu.memory_space<smem>>
    %453 = vector.broadcast %452 : f32 to vector<1x128xf32>
    %454 = arith.mulf %65, %453 : vector<1x128xf32>
    %455 = arith.addf %451, %454 : vector<1x128xf32>
    %c87 = arith.constant 87 : index
    %456 = memref.load %arg2[%c87] : memref<320xf32, #tpu.memory_space<smem>>
    %457 = vector.broadcast %456 : f32 to vector<1x128xf32>
    %458 = arith.mulf %77, %457 : vector<1x128xf32>
    %459 = arith.addf %455, %458 : vector<1x128xf32>
    %c97 = arith.constant 97 : index
    %460 = memref.load %arg2[%c97] : memref<320xf32, #tpu.memory_space<smem>>
    %461 = vector.broadcast %460 : f32 to vector<1x128xf32>
    %462 = arith.mulf %89, %461 : vector<1x128xf32>
    %463 = arith.addf %459, %462 : vector<1x128xf32>
    %c107 = arith.constant 107 : index
    %464 = memref.load %arg2[%c107] : memref<320xf32, #tpu.memory_space<smem>>
    %465 = vector.broadcast %464 : f32 to vector<1x128xf32>
    %466 = arith.mulf %101, %465 : vector<1x128xf32>
    %467 = arith.addf %463, %466 : vector<1x128xf32>
    %c117 = arith.constant 117 : index
    %468 = memref.load %arg2[%c117] : memref<320xf32, #tpu.memory_space<smem>>
    %469 = vector.broadcast %468 : f32 to vector<1x128xf32>
    %470 = arith.mulf %113, %469 : vector<1x128xf32>
    %471 = arith.addf %467, %470 : vector<1x128xf32>
    %c127 = arith.constant 127 : index
    %472 = memref.load %arg2[%c127] : memref<320xf32, #tpu.memory_space<smem>>
    %473 = vector.broadcast %472 : f32 to vector<1x128xf32>
    %474 = arith.mulf %125, %473 : vector<1x128xf32>
    %475 = arith.addf %471, %474 : vector<1x128xf32>
    %cst_18 = arith.constant 0.000000e+00 : f32
    %476 = vector.broadcast %cst_18 : f32 to vector<1x128xf32>
    %477 = arith.maximumf %475, %476 : vector<1x128xf32>
    %c38 = arith.constant 38 : index
    %478 = memref.load %arg2[%c38] : memref<320xf32, #tpu.memory_space<smem>>
    %479 = vector.broadcast %478 : f32 to vector<1x128xf32>
    %480 = arith.mulf %17, %479 : vector<1x128xf32>
    %c138 = arith.constant 138 : index
    %481 = memref.load %arg2[%c138] : memref<320xf32, #tpu.memory_space<smem>>
    %482 = vector.broadcast %481 : f32 to vector<1x128xf32>
    %483 = arith.addf %480, %482 : vector<1x128xf32>
    %c48 = arith.constant 48 : index
    %484 = memref.load %arg2[%c48] : memref<320xf32, #tpu.memory_space<smem>>
    %485 = vector.broadcast %484 : f32 to vector<1x128xf32>
    %486 = arith.mulf %29, %485 : vector<1x128xf32>
    %487 = arith.addf %483, %486 : vector<1x128xf32>
    %c58 = arith.constant 58 : index
    %488 = memref.load %arg2[%c58] : memref<320xf32, #tpu.memory_space<smem>>
    %489 = vector.broadcast %488 : f32 to vector<1x128xf32>
    %490 = arith.mulf %41, %489 : vector<1x128xf32>
    %491 = arith.addf %487, %490 : vector<1x128xf32>
    %c68 = arith.constant 68 : index
    %492 = memref.load %arg2[%c68] : memref<320xf32, #tpu.memory_space<smem>>
    %493 = vector.broadcast %492 : f32 to vector<1x128xf32>
    %494 = arith.mulf %53, %493 : vector<1x128xf32>
    %495 = arith.addf %491, %494 : vector<1x128xf32>
    %c78 = arith.constant 78 : index
    %496 = memref.load %arg2[%c78] : memref<320xf32, #tpu.memory_space<smem>>
    %497 = vector.broadcast %496 : f32 to vector<1x128xf32>
    %498 = arith.mulf %65, %497 : vector<1x128xf32>
    %499 = arith.addf %495, %498 : vector<1x128xf32>
    %c88 = arith.constant 88 : index
    %500 = memref.load %arg2[%c88] : memref<320xf32, #tpu.memory_space<smem>>
    %501 = vector.broadcast %500 : f32 to vector<1x128xf32>
    %502 = arith.mulf %77, %501 : vector<1x128xf32>
    %503 = arith.addf %499, %502 : vector<1x128xf32>
    %c98 = arith.constant 98 : index
    %504 = memref.load %arg2[%c98] : memref<320xf32, #tpu.memory_space<smem>>
    %505 = vector.broadcast %504 : f32 to vector<1x128xf32>
    %506 = arith.mulf %89, %505 : vector<1x128xf32>
    %507 = arith.addf %503, %506 : vector<1x128xf32>
    %c108 = arith.constant 108 : index
    %508 = memref.load %arg2[%c108] : memref<320xf32, #tpu.memory_space<smem>>
    %509 = vector.broadcast %508 : f32 to vector<1x128xf32>
    %510 = arith.mulf %101, %509 : vector<1x128xf32>
    %511 = arith.addf %507, %510 : vector<1x128xf32>
    %c118 = arith.constant 118 : index
    %512 = memref.load %arg2[%c118] : memref<320xf32, #tpu.memory_space<smem>>
    %513 = vector.broadcast %512 : f32 to vector<1x128xf32>
    %514 = arith.mulf %113, %513 : vector<1x128xf32>
    %515 = arith.addf %511, %514 : vector<1x128xf32>
    %c128 = arith.constant 128 : index
    %516 = memref.load %arg2[%c128] : memref<320xf32, #tpu.memory_space<smem>>
    %517 = vector.broadcast %516 : f32 to vector<1x128xf32>
    %518 = arith.mulf %125, %517 : vector<1x128xf32>
    %519 = arith.addf %515, %518 : vector<1x128xf32>
    %cst_19 = arith.constant 0.000000e+00 : f32
    %520 = vector.broadcast %cst_19 : f32 to vector<1x128xf32>
    %521 = arith.maximumf %519, %520 : vector<1x128xf32>
    %c39 = arith.constant 39 : index
    %522 = memref.load %arg2[%c39] : memref<320xf32, #tpu.memory_space<smem>>
    %523 = vector.broadcast %522 : f32 to vector<1x128xf32>
    %524 = arith.mulf %17, %523 : vector<1x128xf32>
    %c139 = arith.constant 139 : index
    %525 = memref.load %arg2[%c139] : memref<320xf32, #tpu.memory_space<smem>>
    %526 = vector.broadcast %525 : f32 to vector<1x128xf32>
    %527 = arith.addf %524, %526 : vector<1x128xf32>
    %c49 = arith.constant 49 : index
    %528 = memref.load %arg2[%c49] : memref<320xf32, #tpu.memory_space<smem>>
    %529 = vector.broadcast %528 : f32 to vector<1x128xf32>
    %530 = arith.mulf %29, %529 : vector<1x128xf32>
    %531 = arith.addf %527, %530 : vector<1x128xf32>
    %c59 = arith.constant 59 : index
    %532 = memref.load %arg2[%c59] : memref<320xf32, #tpu.memory_space<smem>>
    %533 = vector.broadcast %532 : f32 to vector<1x128xf32>
    %534 = arith.mulf %41, %533 : vector<1x128xf32>
    %535 = arith.addf %531, %534 : vector<1x128xf32>
    %c69 = arith.constant 69 : index
    %536 = memref.load %arg2[%c69] : memref<320xf32, #tpu.memory_space<smem>>
    %537 = vector.broadcast %536 : f32 to vector<1x128xf32>
    %538 = arith.mulf %53, %537 : vector<1x128xf32>
    %539 = arith.addf %535, %538 : vector<1x128xf32>
    %c79 = arith.constant 79 : index
    %540 = memref.load %arg2[%c79] : memref<320xf32, #tpu.memory_space<smem>>
    %541 = vector.broadcast %540 : f32 to vector<1x128xf32>
    %542 = arith.mulf %65, %541 : vector<1x128xf32>
    %543 = arith.addf %539, %542 : vector<1x128xf32>
    %c89 = arith.constant 89 : index
    %544 = memref.load %arg2[%c89] : memref<320xf32, #tpu.memory_space<smem>>
    %545 = vector.broadcast %544 : f32 to vector<1x128xf32>
    %546 = arith.mulf %77, %545 : vector<1x128xf32>
    %547 = arith.addf %543, %546 : vector<1x128xf32>
    %c99 = arith.constant 99 : index
    %548 = memref.load %arg2[%c99] : memref<320xf32, #tpu.memory_space<smem>>
    %549 = vector.broadcast %548 : f32 to vector<1x128xf32>
    %550 = arith.mulf %89, %549 : vector<1x128xf32>
    %551 = arith.addf %547, %550 : vector<1x128xf32>
    %c109 = arith.constant 109 : index
    %552 = memref.load %arg2[%c109] : memref<320xf32, #tpu.memory_space<smem>>
    %553 = vector.broadcast %552 : f32 to vector<1x128xf32>
    %554 = arith.mulf %101, %553 : vector<1x128xf32>
    %555 = arith.addf %551, %554 : vector<1x128xf32>
    %c119 = arith.constant 119 : index
    %556 = memref.load %arg2[%c119] : memref<320xf32, #tpu.memory_space<smem>>
    %557 = vector.broadcast %556 : f32 to vector<1x128xf32>
    %558 = arith.mulf %113, %557 : vector<1x128xf32>
    %559 = arith.addf %555, %558 : vector<1x128xf32>
    %c129 = arith.constant 129 : index
    %560 = memref.load %arg2[%c129] : memref<320xf32, #tpu.memory_space<smem>>
    %561 = vector.broadcast %560 : f32 to vector<1x128xf32>
    %562 = arith.mulf %125, %561 : vector<1x128xf32>
    %563 = arith.addf %559, %562 : vector<1x128xf32>
    %cst_20 = arith.constant 0.000000e+00 : f32
    %564 = vector.broadcast %cst_20 : f32 to vector<1x128xf32>
    %565 = arith.maximumf %563, %564 : vector<1x128xf32>
    %c140 = arith.constant 140 : index
    %566 = memref.load %arg2[%c140] : memref<320xf32, #tpu.memory_space<smem>>
    %567 = vector.broadcast %566 : f32 to vector<1x128xf32>
    %568 = arith.mulf %169, %567 : vector<1x128xf32>
    %c240 = arith.constant 240 : index
    %569 = memref.load %arg2[%c240] : memref<320xf32, #tpu.memory_space<smem>>
    %570 = vector.broadcast %569 : f32 to vector<1x128xf32>
    %571 = arith.addf %568, %570 : vector<1x128xf32>
    %c150 = arith.constant 150 : index
    %572 = memref.load %arg2[%c150] : memref<320xf32, #tpu.memory_space<smem>>
    %573 = vector.broadcast %572 : f32 to vector<1x128xf32>
    %574 = arith.mulf %213, %573 : vector<1x128xf32>
    %575 = arith.addf %571, %574 : vector<1x128xf32>
    %c160 = arith.constant 160 : index
    %576 = memref.load %arg2[%c160] : memref<320xf32, #tpu.memory_space<smem>>
    %577 = vector.broadcast %576 : f32 to vector<1x128xf32>
    %578 = arith.mulf %257, %577 : vector<1x128xf32>
    %579 = arith.addf %575, %578 : vector<1x128xf32>
    %c170 = arith.constant 170 : index
    %580 = memref.load %arg2[%c170] : memref<320xf32, #tpu.memory_space<smem>>
    %581 = vector.broadcast %580 : f32 to vector<1x128xf32>
    %582 = arith.mulf %301, %581 : vector<1x128xf32>
    %583 = arith.addf %579, %582 : vector<1x128xf32>
    %c180 = arith.constant 180 : index
    %584 = memref.load %arg2[%c180] : memref<320xf32, #tpu.memory_space<smem>>
    %585 = vector.broadcast %584 : f32 to vector<1x128xf32>
    %586 = arith.mulf %345, %585 : vector<1x128xf32>
    %587 = arith.addf %583, %586 : vector<1x128xf32>
    %c190 = arith.constant 190 : index
    %588 = memref.load %arg2[%c190] : memref<320xf32, #tpu.memory_space<smem>>
    %589 = vector.broadcast %588 : f32 to vector<1x128xf32>
    %590 = arith.mulf %389, %589 : vector<1x128xf32>
    %591 = arith.addf %587, %590 : vector<1x128xf32>
    %c200 = arith.constant 200 : index
    %592 = memref.load %arg2[%c200] : memref<320xf32, #tpu.memory_space<smem>>
    %593 = vector.broadcast %592 : f32 to vector<1x128xf32>
    %594 = arith.mulf %433, %593 : vector<1x128xf32>
    %595 = arith.addf %591, %594 : vector<1x128xf32>
    %c210 = arith.constant 210 : index
    %596 = memref.load %arg2[%c210] : memref<320xf32, #tpu.memory_space<smem>>
    %597 = vector.broadcast %596 : f32 to vector<1x128xf32>
    %598 = arith.mulf %477, %597 : vector<1x128xf32>
    %599 = arith.addf %595, %598 : vector<1x128xf32>
    %c220 = arith.constant 220 : index
    %600 = memref.load %arg2[%c220] : memref<320xf32, #tpu.memory_space<smem>>
    %601 = vector.broadcast %600 : f32 to vector<1x128xf32>
    %602 = arith.mulf %521, %601 : vector<1x128xf32>
    %603 = arith.addf %599, %602 : vector<1x128xf32>
    %c230 = arith.constant 230 : index
    %604 = memref.load %arg2[%c230] : memref<320xf32, #tpu.memory_space<smem>>
    %605 = vector.broadcast %604 : f32 to vector<1x128xf32>
    %606 = arith.mulf %565, %605 : vector<1x128xf32>
    %607 = arith.addf %603, %606 : vector<1x128xf32>
    %cst_21 = arith.constant 0.000000e+00 : f32
    %608 = vector.broadcast %cst_21 : f32 to vector<1x128xf32>
    %609 = arith.maximumf %607, %608 : vector<1x128xf32>
    %c141 = arith.constant 141 : index
    %610 = memref.load %arg2[%c141] : memref<320xf32, #tpu.memory_space<smem>>
    %611 = vector.broadcast %610 : f32 to vector<1x128xf32>
    %612 = arith.mulf %169, %611 : vector<1x128xf32>
    %c241 = arith.constant 241 : index
    %613 = memref.load %arg2[%c241] : memref<320xf32, #tpu.memory_space<smem>>
    %614 = vector.broadcast %613 : f32 to vector<1x128xf32>
    %615 = arith.addf %612, %614 : vector<1x128xf32>
    %c151 = arith.constant 151 : index
    %616 = memref.load %arg2[%c151] : memref<320xf32, #tpu.memory_space<smem>>
    %617 = vector.broadcast %616 : f32 to vector<1x128xf32>
    %618 = arith.mulf %213, %617 : vector<1x128xf32>
    %619 = arith.addf %615, %618 : vector<1x128xf32>
    %c161 = arith.constant 161 : index
    %620 = memref.load %arg2[%c161] : memref<320xf32, #tpu.memory_space<smem>>
    %621 = vector.broadcast %620 : f32 to vector<1x128xf32>
    %622 = arith.mulf %257, %621 : vector<1x128xf32>
    %623 = arith.addf %619, %622 : vector<1x128xf32>
    %c171 = arith.constant 171 : index
    %624 = memref.load %arg2[%c171] : memref<320xf32, #tpu.memory_space<smem>>
    %625 = vector.broadcast %624 : f32 to vector<1x128xf32>
    %626 = arith.mulf %301, %625 : vector<1x128xf32>
    %627 = arith.addf %623, %626 : vector<1x128xf32>
    %c181 = arith.constant 181 : index
    %628 = memref.load %arg2[%c181] : memref<320xf32, #tpu.memory_space<smem>>
    %629 = vector.broadcast %628 : f32 to vector<1x128xf32>
    %630 = arith.mulf %345, %629 : vector<1x128xf32>
    %631 = arith.addf %627, %630 : vector<1x128xf32>
    %c191 = arith.constant 191 : index
    %632 = memref.load %arg2[%c191] : memref<320xf32, #tpu.memory_space<smem>>
    %633 = vector.broadcast %632 : f32 to vector<1x128xf32>
    %634 = arith.mulf %389, %633 : vector<1x128xf32>
    %635 = arith.addf %631, %634 : vector<1x128xf32>
    %c201 = arith.constant 201 : index
    %636 = memref.load %arg2[%c201] : memref<320xf32, #tpu.memory_space<smem>>
    %637 = vector.broadcast %636 : f32 to vector<1x128xf32>
    %638 = arith.mulf %433, %637 : vector<1x128xf32>
    %639 = arith.addf %635, %638 : vector<1x128xf32>
    %c211 = arith.constant 211 : index
    %640 = memref.load %arg2[%c211] : memref<320xf32, #tpu.memory_space<smem>>
    %641 = vector.broadcast %640 : f32 to vector<1x128xf32>
    %642 = arith.mulf %477, %641 : vector<1x128xf32>
    %643 = arith.addf %639, %642 : vector<1x128xf32>
    %c221 = arith.constant 221 : index
    %644 = memref.load %arg2[%c221] : memref<320xf32, #tpu.memory_space<smem>>
    %645 = vector.broadcast %644 : f32 to vector<1x128xf32>
    %646 = arith.mulf %521, %645 : vector<1x128xf32>
    %647 = arith.addf %643, %646 : vector<1x128xf32>
    %c231 = arith.constant 231 : index
    %648 = memref.load %arg2[%c231] : memref<320xf32, #tpu.memory_space<smem>>
    %649 = vector.broadcast %648 : f32 to vector<1x128xf32>
    %650 = arith.mulf %565, %649 : vector<1x128xf32>
    %651 = arith.addf %647, %650 : vector<1x128xf32>
    %cst_22 = arith.constant 0.000000e+00 : f32
    %652 = vector.broadcast %cst_22 : f32 to vector<1x128xf32>
    %653 = arith.maximumf %651, %652 : vector<1x128xf32>
    %c142 = arith.constant 142 : index
    %654 = memref.load %arg2[%c142] : memref<320xf32, #tpu.memory_space<smem>>
    %655 = vector.broadcast %654 : f32 to vector<1x128xf32>
    %656 = arith.mulf %169, %655 : vector<1x128xf32>
    %c242 = arith.constant 242 : index
    %657 = memref.load %arg2[%c242] : memref<320xf32, #tpu.memory_space<smem>>
    %658 = vector.broadcast %657 : f32 to vector<1x128xf32>
    %659 = arith.addf %656, %658 : vector<1x128xf32>
    %c152 = arith.constant 152 : index
    %660 = memref.load %arg2[%c152] : memref<320xf32, #tpu.memory_space<smem>>
    %661 = vector.broadcast %660 : f32 to vector<1x128xf32>
    %662 = arith.mulf %213, %661 : vector<1x128xf32>
    %663 = arith.addf %659, %662 : vector<1x128xf32>
    %c162 = arith.constant 162 : index
    %664 = memref.load %arg2[%c162] : memref<320xf32, #tpu.memory_space<smem>>
    %665 = vector.broadcast %664 : f32 to vector<1x128xf32>
    %666 = arith.mulf %257, %665 : vector<1x128xf32>
    %667 = arith.addf %663, %666 : vector<1x128xf32>
    %c172 = arith.constant 172 : index
    %668 = memref.load %arg2[%c172] : memref<320xf32, #tpu.memory_space<smem>>
    %669 = vector.broadcast %668 : f32 to vector<1x128xf32>
    %670 = arith.mulf %301, %669 : vector<1x128xf32>
    %671 = arith.addf %667, %670 : vector<1x128xf32>
    %c182 = arith.constant 182 : index
    %672 = memref.load %arg2[%c182] : memref<320xf32, #tpu.memory_space<smem>>
    %673 = vector.broadcast %672 : f32 to vector<1x128xf32>
    %674 = arith.mulf %345, %673 : vector<1x128xf32>
    %675 = arith.addf %671, %674 : vector<1x128xf32>
    %c192 = arith.constant 192 : index
    %676 = memref.load %arg2[%c192] : memref<320xf32, #tpu.memory_space<smem>>
    %677 = vector.broadcast %676 : f32 to vector<1x128xf32>
    %678 = arith.mulf %389, %677 : vector<1x128xf32>
    %679 = arith.addf %675, %678 : vector<1x128xf32>
    %c202 = arith.constant 202 : index
    %680 = memref.load %arg2[%c202] : memref<320xf32, #tpu.memory_space<smem>>
    %681 = vector.broadcast %680 : f32 to vector<1x128xf32>
    %682 = arith.mulf %433, %681 : vector<1x128xf32>
    %683 = arith.addf %679, %682 : vector<1x128xf32>
    %c212 = arith.constant 212 : index
    %684 = memref.load %arg2[%c212] : memref<320xf32, #tpu.memory_space<smem>>
    %685 = vector.broadcast %684 : f32 to vector<1x128xf32>
    %686 = arith.mulf %477, %685 : vector<1x128xf32>
    %687 = arith.addf %683, %686 : vector<1x128xf32>
    %c222 = arith.constant 222 : index
    %688 = memref.load %arg2[%c222] : memref<320xf32, #tpu.memory_space<smem>>
    %689 = vector.broadcast %688 : f32 to vector<1x128xf32>
    %690 = arith.mulf %521, %689 : vector<1x128xf32>
    %691 = arith.addf %687, %690 : vector<1x128xf32>
    %c232 = arith.constant 232 : index
    %692 = memref.load %arg2[%c232] : memref<320xf32, #tpu.memory_space<smem>>
    %693 = vector.broadcast %692 : f32 to vector<1x128xf32>
    %694 = arith.mulf %565, %693 : vector<1x128xf32>
    %695 = arith.addf %691, %694 : vector<1x128xf32>
    %cst_23 = arith.constant 0.000000e+00 : f32
    %696 = vector.broadcast %cst_23 : f32 to vector<1x128xf32>
    %697 = arith.maximumf %695, %696 : vector<1x128xf32>
    %c143 = arith.constant 143 : index
    %698 = memref.load %arg2[%c143] : memref<320xf32, #tpu.memory_space<smem>>
    %699 = vector.broadcast %698 : f32 to vector<1x128xf32>
    %700 = arith.mulf %169, %699 : vector<1x128xf32>
    %c243 = arith.constant 243 : index
    %701 = memref.load %arg2[%c243] : memref<320xf32, #tpu.memory_space<smem>>
    %702 = vector.broadcast %701 : f32 to vector<1x128xf32>
    %703 = arith.addf %700, %702 : vector<1x128xf32>
    %c153 = arith.constant 153 : index
    %704 = memref.load %arg2[%c153] : memref<320xf32, #tpu.memory_space<smem>>
    %705 = vector.broadcast %704 : f32 to vector<1x128xf32>
    %706 = arith.mulf %213, %705 : vector<1x128xf32>
    %707 = arith.addf %703, %706 : vector<1x128xf32>
    %c163 = arith.constant 163 : index
    %708 = memref.load %arg2[%c163] : memref<320xf32, #tpu.memory_space<smem>>
    %709 = vector.broadcast %708 : f32 to vector<1x128xf32>
    %710 = arith.mulf %257, %709 : vector<1x128xf32>
    %711 = arith.addf %707, %710 : vector<1x128xf32>
    %c173 = arith.constant 173 : index
    %712 = memref.load %arg2[%c173] : memref<320xf32, #tpu.memory_space<smem>>
    %713 = vector.broadcast %712 : f32 to vector<1x128xf32>
    %714 = arith.mulf %301, %713 : vector<1x128xf32>
    %715 = arith.addf %711, %714 : vector<1x128xf32>
    %c183 = arith.constant 183 : index
    %716 = memref.load %arg2[%c183] : memref<320xf32, #tpu.memory_space<smem>>
    %717 = vector.broadcast %716 : f32 to vector<1x128xf32>
    %718 = arith.mulf %345, %717 : vector<1x128xf32>
    %719 = arith.addf %715, %718 : vector<1x128xf32>
    %c193 = arith.constant 193 : index
    %720 = memref.load %arg2[%c193] : memref<320xf32, #tpu.memory_space<smem>>
    %721 = vector.broadcast %720 : f32 to vector<1x128xf32>
    %722 = arith.mulf %389, %721 : vector<1x128xf32>
    %723 = arith.addf %719, %722 : vector<1x128xf32>
    %c203 = arith.constant 203 : index
    %724 = memref.load %arg2[%c203] : memref<320xf32, #tpu.memory_space<smem>>
    %725 = vector.broadcast %724 : f32 to vector<1x128xf32>
    %726 = arith.mulf %433, %725 : vector<1x128xf32>
    %727 = arith.addf %723, %726 : vector<1x128xf32>
    %c213 = arith.constant 213 : index
    %728 = memref.load %arg2[%c213] : memref<320xf32, #tpu.memory_space<smem>>
    %729 = vector.broadcast %728 : f32 to vector<1x128xf32>
    %730 = arith.mulf %477, %729 : vector<1x128xf32>
    %731 = arith.addf %727, %730 : vector<1x128xf32>
    %c223 = arith.constant 223 : index
    %732 = memref.load %arg2[%c223] : memref<320xf32, #tpu.memory_space<smem>>
    %733 = vector.broadcast %732 : f32 to vector<1x128xf32>
    %734 = arith.mulf %521, %733 : vector<1x128xf32>
    %735 = arith.addf %731, %734 : vector<1x128xf32>
    %c233 = arith.constant 233 : index
    %736 = memref.load %arg2[%c233] : memref<320xf32, #tpu.memory_space<smem>>
    %737 = vector.broadcast %736 : f32 to vector<1x128xf32>
    %738 = arith.mulf %565, %737 : vector<1x128xf32>
    %739 = arith.addf %735, %738 : vector<1x128xf32>
    %cst_24 = arith.constant 0.000000e+00 : f32
    %740 = vector.broadcast %cst_24 : f32 to vector<1x128xf32>
    %741 = arith.maximumf %739, %740 : vector<1x128xf32>
    %c144 = arith.constant 144 : index
    %742 = memref.load %arg2[%c144] : memref<320xf32, #tpu.memory_space<smem>>
    %743 = vector.broadcast %742 : f32 to vector<1x128xf32>
    %744 = arith.mulf %169, %743 : vector<1x128xf32>
    %c244 = arith.constant 244 : index
    %745 = memref.load %arg2[%c244] : memref<320xf32, #tpu.memory_space<smem>>
    %746 = vector.broadcast %745 : f32 to vector<1x128xf32>
    %747 = arith.addf %744, %746 : vector<1x128xf32>
    %c154 = arith.constant 154 : index
    %748 = memref.load %arg2[%c154] : memref<320xf32, #tpu.memory_space<smem>>
    %749 = vector.broadcast %748 : f32 to vector<1x128xf32>
    %750 = arith.mulf %213, %749 : vector<1x128xf32>
    %751 = arith.addf %747, %750 : vector<1x128xf32>
    %c164 = arith.constant 164 : index
    %752 = memref.load %arg2[%c164] : memref<320xf32, #tpu.memory_space<smem>>
    %753 = vector.broadcast %752 : f32 to vector<1x128xf32>
    %754 = arith.mulf %257, %753 : vector<1x128xf32>
    %755 = arith.addf %751, %754 : vector<1x128xf32>
    %c174 = arith.constant 174 : index
    %756 = memref.load %arg2[%c174] : memref<320xf32, #tpu.memory_space<smem>>
    %757 = vector.broadcast %756 : f32 to vector<1x128xf32>
    %758 = arith.mulf %301, %757 : vector<1x128xf32>
    %759 = arith.addf %755, %758 : vector<1x128xf32>
    %c184 = arith.constant 184 : index
    %760 = memref.load %arg2[%c184] : memref<320xf32, #tpu.memory_space<smem>>
    %761 = vector.broadcast %760 : f32 to vector<1x128xf32>
    %762 = arith.mulf %345, %761 : vector<1x128xf32>
    %763 = arith.addf %759, %762 : vector<1x128xf32>
    %c194 = arith.constant 194 : index
    %764 = memref.load %arg2[%c194] : memref<320xf32, #tpu.memory_space<smem>>
    %765 = vector.broadcast %764 : f32 to vector<1x128xf32>
    %766 = arith.mulf %389, %765 : vector<1x128xf32>
    %767 = arith.addf %763, %766 : vector<1x128xf32>
    %c204 = arith.constant 204 : index
    %768 = memref.load %arg2[%c204] : memref<320xf32, #tpu.memory_space<smem>>
    %769 = vector.broadcast %768 : f32 to vector<1x128xf32>
    %770 = arith.mulf %433, %769 : vector<1x128xf32>
    %771 = arith.addf %767, %770 : vector<1x128xf32>
    %c214 = arith.constant 214 : index
    %772 = memref.load %arg2[%c214] : memref<320xf32, #tpu.memory_space<smem>>
    %773 = vector.broadcast %772 : f32 to vector<1x128xf32>
    %774 = arith.mulf %477, %773 : vector<1x128xf32>
    %775 = arith.addf %771, %774 : vector<1x128xf32>
    %c224 = arith.constant 224 : index
    %776 = memref.load %arg2[%c224] : memref<320xf32, #tpu.memory_space<smem>>
    %777 = vector.broadcast %776 : f32 to vector<1x128xf32>
    %778 = arith.mulf %521, %777 : vector<1x128xf32>
    %779 = arith.addf %775, %778 : vector<1x128xf32>
    %c234 = arith.constant 234 : index
    %780 = memref.load %arg2[%c234] : memref<320xf32, #tpu.memory_space<smem>>
    %781 = vector.broadcast %780 : f32 to vector<1x128xf32>
    %782 = arith.mulf %565, %781 : vector<1x128xf32>
    %783 = arith.addf %779, %782 : vector<1x128xf32>
    %cst_25 = arith.constant 0.000000e+00 : f32
    %784 = vector.broadcast %cst_25 : f32 to vector<1x128xf32>
    %785 = arith.maximumf %783, %784 : vector<1x128xf32>
    %c145 = arith.constant 145 : index
    %786 = memref.load %arg2[%c145] : memref<320xf32, #tpu.memory_space<smem>>
    %787 = vector.broadcast %786 : f32 to vector<1x128xf32>
    %788 = arith.mulf %169, %787 : vector<1x128xf32>
    %c245 = arith.constant 245 : index
    %789 = memref.load %arg2[%c245] : memref<320xf32, #tpu.memory_space<smem>>
    %790 = vector.broadcast %789 : f32 to vector<1x128xf32>
    %791 = arith.addf %788, %790 : vector<1x128xf32>
    %c155 = arith.constant 155 : index
    %792 = memref.load %arg2[%c155] : memref<320xf32, #tpu.memory_space<smem>>
    %793 = vector.broadcast %792 : f32 to vector<1x128xf32>
    %794 = arith.mulf %213, %793 : vector<1x128xf32>
    %795 = arith.addf %791, %794 : vector<1x128xf32>
    %c165 = arith.constant 165 : index
    %796 = memref.load %arg2[%c165] : memref<320xf32, #tpu.memory_space<smem>>
    %797 = vector.broadcast %796 : f32 to vector<1x128xf32>
    %798 = arith.mulf %257, %797 : vector<1x128xf32>
    %799 = arith.addf %795, %798 : vector<1x128xf32>
    %c175 = arith.constant 175 : index
    %800 = memref.load %arg2[%c175] : memref<320xf32, #tpu.memory_space<smem>>
    %801 = vector.broadcast %800 : f32 to vector<1x128xf32>
    %802 = arith.mulf %301, %801 : vector<1x128xf32>
    %803 = arith.addf %799, %802 : vector<1x128xf32>
    %c185 = arith.constant 185 : index
    %804 = memref.load %arg2[%c185] : memref<320xf32, #tpu.memory_space<smem>>
    %805 = vector.broadcast %804 : f32 to vector<1x128xf32>
    %806 = arith.mulf %345, %805 : vector<1x128xf32>
    %807 = arith.addf %803, %806 : vector<1x128xf32>
    %c195 = arith.constant 195 : index
    %808 = memref.load %arg2[%c195] : memref<320xf32, #tpu.memory_space<smem>>
    %809 = vector.broadcast %808 : f32 to vector<1x128xf32>
    %810 = arith.mulf %389, %809 : vector<1x128xf32>
    %811 = arith.addf %807, %810 : vector<1x128xf32>
    %c205 = arith.constant 205 : index
    %812 = memref.load %arg2[%c205] : memref<320xf32, #tpu.memory_space<smem>>
    %813 = vector.broadcast %812 : f32 to vector<1x128xf32>
    %814 = arith.mulf %433, %813 : vector<1x128xf32>
    %815 = arith.addf %811, %814 : vector<1x128xf32>
    %c215 = arith.constant 215 : index
    %816 = memref.load %arg2[%c215] : memref<320xf32, #tpu.memory_space<smem>>
    %817 = vector.broadcast %816 : f32 to vector<1x128xf32>
    %818 = arith.mulf %477, %817 : vector<1x128xf32>
    %819 = arith.addf %815, %818 : vector<1x128xf32>
    %c225 = arith.constant 225 : index
    %820 = memref.load %arg2[%c225] : memref<320xf32, #tpu.memory_space<smem>>
    %821 = vector.broadcast %820 : f32 to vector<1x128xf32>
    %822 = arith.mulf %521, %821 : vector<1x128xf32>
    %823 = arith.addf %819, %822 : vector<1x128xf32>
    %c235 = arith.constant 235 : index
    %824 = memref.load %arg2[%c235] : memref<320xf32, #tpu.memory_space<smem>>
    %825 = vector.broadcast %824 : f32 to vector<1x128xf32>
    %826 = arith.mulf %565, %825 : vector<1x128xf32>
    %827 = arith.addf %823, %826 : vector<1x128xf32>
    %cst_26 = arith.constant 0.000000e+00 : f32
    %828 = vector.broadcast %cst_26 : f32 to vector<1x128xf32>
    %829 = arith.maximumf %827, %828 : vector<1x128xf32>
    %c146 = arith.constant 146 : index
    %830 = memref.load %arg2[%c146] : memref<320xf32, #tpu.memory_space<smem>>
    %831 = vector.broadcast %830 : f32 to vector<1x128xf32>
    %832 = arith.mulf %169, %831 : vector<1x128xf32>
    %c246 = arith.constant 246 : index
    %833 = memref.load %arg2[%c246] : memref<320xf32, #tpu.memory_space<smem>>
    %834 = vector.broadcast %833 : f32 to vector<1x128xf32>
    %835 = arith.addf %832, %834 : vector<1x128xf32>
    %c156 = arith.constant 156 : index
    %836 = memref.load %arg2[%c156] : memref<320xf32, #tpu.memory_space<smem>>
    %837 = vector.broadcast %836 : f32 to vector<1x128xf32>
    %838 = arith.mulf %213, %837 : vector<1x128xf32>
    %839 = arith.addf %835, %838 : vector<1x128xf32>
    %c166 = arith.constant 166 : index
    %840 = memref.load %arg2[%c166] : memref<320xf32, #tpu.memory_space<smem>>
    %841 = vector.broadcast %840 : f32 to vector<1x128xf32>
    %842 = arith.mulf %257, %841 : vector<1x128xf32>
    %843 = arith.addf %839, %842 : vector<1x128xf32>
    %c176 = arith.constant 176 : index
    %844 = memref.load %arg2[%c176] : memref<320xf32, #tpu.memory_space<smem>>
    %845 = vector.broadcast %844 : f32 to vector<1x128xf32>
    %846 = arith.mulf %301, %845 : vector<1x128xf32>
    %847 = arith.addf %843, %846 : vector<1x128xf32>
    %c186 = arith.constant 186 : index
    %848 = memref.load %arg2[%c186] : memref<320xf32, #tpu.memory_space<smem>>
    %849 = vector.broadcast %848 : f32 to vector<1x128xf32>
    %850 = arith.mulf %345, %849 : vector<1x128xf32>
    %851 = arith.addf %847, %850 : vector<1x128xf32>
    %c196 = arith.constant 196 : index
    %852 = memref.load %arg2[%c196] : memref<320xf32, #tpu.memory_space<smem>>
    %853 = vector.broadcast %852 : f32 to vector<1x128xf32>
    %854 = arith.mulf %389, %853 : vector<1x128xf32>
    %855 = arith.addf %851, %854 : vector<1x128xf32>
    %c206 = arith.constant 206 : index
    %856 = memref.load %arg2[%c206] : memref<320xf32, #tpu.memory_space<smem>>
    %857 = vector.broadcast %856 : f32 to vector<1x128xf32>
    %858 = arith.mulf %433, %857 : vector<1x128xf32>
    %859 = arith.addf %855, %858 : vector<1x128xf32>
    %c216 = arith.constant 216 : index
    %860 = memref.load %arg2[%c216] : memref<320xf32, #tpu.memory_space<smem>>
    %861 = vector.broadcast %860 : f32 to vector<1x128xf32>
    %862 = arith.mulf %477, %861 : vector<1x128xf32>
    %863 = arith.addf %859, %862 : vector<1x128xf32>
    %c226 = arith.constant 226 : index
    %864 = memref.load %arg2[%c226] : memref<320xf32, #tpu.memory_space<smem>>
    %865 = vector.broadcast %864 : f32 to vector<1x128xf32>
    %866 = arith.mulf %521, %865 : vector<1x128xf32>
    %867 = arith.addf %863, %866 : vector<1x128xf32>
    %c236 = arith.constant 236 : index
    %868 = memref.load %arg2[%c236] : memref<320xf32, #tpu.memory_space<smem>>
    %869 = vector.broadcast %868 : f32 to vector<1x128xf32>
    %870 = arith.mulf %565, %869 : vector<1x128xf32>
    %871 = arith.addf %867, %870 : vector<1x128xf32>
    %cst_27 = arith.constant 0.000000e+00 : f32
    %872 = vector.broadcast %cst_27 : f32 to vector<1x128xf32>
    %873 = arith.maximumf %871, %872 : vector<1x128xf32>
    %c147 = arith.constant 147 : index
    %874 = memref.load %arg2[%c147] : memref<320xf32, #tpu.memory_space<smem>>
    %875 = vector.broadcast %874 : f32 to vector<1x128xf32>
    %876 = arith.mulf %169, %875 : vector<1x128xf32>
    %c247 = arith.constant 247 : index
    %877 = memref.load %arg2[%c247] : memref<320xf32, #tpu.memory_space<smem>>
    %878 = vector.broadcast %877 : f32 to vector<1x128xf32>
    %879 = arith.addf %876, %878 : vector<1x128xf32>
    %c157 = arith.constant 157 : index
    %880 = memref.load %arg2[%c157] : memref<320xf32, #tpu.memory_space<smem>>
    %881 = vector.broadcast %880 : f32 to vector<1x128xf32>
    %882 = arith.mulf %213, %881 : vector<1x128xf32>
    %883 = arith.addf %879, %882 : vector<1x128xf32>
    %c167 = arith.constant 167 : index
    %884 = memref.load %arg2[%c167] : memref<320xf32, #tpu.memory_space<smem>>
    %885 = vector.broadcast %884 : f32 to vector<1x128xf32>
    %886 = arith.mulf %257, %885 : vector<1x128xf32>
    %887 = arith.addf %883, %886 : vector<1x128xf32>
    %c177 = arith.constant 177 : index
    %888 = memref.load %arg2[%c177] : memref<320xf32, #tpu.memory_space<smem>>
    %889 = vector.broadcast %888 : f32 to vector<1x128xf32>
    %890 = arith.mulf %301, %889 : vector<1x128xf32>
    %891 = arith.addf %887, %890 : vector<1x128xf32>
    %c187 = arith.constant 187 : index
    %892 = memref.load %arg2[%c187] : memref<320xf32, #tpu.memory_space<smem>>
    %893 = vector.broadcast %892 : f32 to vector<1x128xf32>
    %894 = arith.mulf %345, %893 : vector<1x128xf32>
    %895 = arith.addf %891, %894 : vector<1x128xf32>
    %c197 = arith.constant 197 : index
    %896 = memref.load %arg2[%c197] : memref<320xf32, #tpu.memory_space<smem>>
    %897 = vector.broadcast %896 : f32 to vector<1x128xf32>
    %898 = arith.mulf %389, %897 : vector<1x128xf32>
    %899 = arith.addf %895, %898 : vector<1x128xf32>
    %c207 = arith.constant 207 : index
    %900 = memref.load %arg2[%c207] : memref<320xf32, #tpu.memory_space<smem>>
    %901 = vector.broadcast %900 : f32 to vector<1x128xf32>
    %902 = arith.mulf %433, %901 : vector<1x128xf32>
    %903 = arith.addf %899, %902 : vector<1x128xf32>
    %c217 = arith.constant 217 : index
    %904 = memref.load %arg2[%c217] : memref<320xf32, #tpu.memory_space<smem>>
    %905 = vector.broadcast %904 : f32 to vector<1x128xf32>
    %906 = arith.mulf %477, %905 : vector<1x128xf32>
    %907 = arith.addf %903, %906 : vector<1x128xf32>
    %c227 = arith.constant 227 : index
    %908 = memref.load %arg2[%c227] : memref<320xf32, #tpu.memory_space<smem>>
    %909 = vector.broadcast %908 : f32 to vector<1x128xf32>
    %910 = arith.mulf %521, %909 : vector<1x128xf32>
    %911 = arith.addf %907, %910 : vector<1x128xf32>
    %c237 = arith.constant 237 : index
    %912 = memref.load %arg2[%c237] : memref<320xf32, #tpu.memory_space<smem>>
    %913 = vector.broadcast %912 : f32 to vector<1x128xf32>
    %914 = arith.mulf %565, %913 : vector<1x128xf32>
    %915 = arith.addf %911, %914 : vector<1x128xf32>
    %cst_28 = arith.constant 0.000000e+00 : f32
    %916 = vector.broadcast %cst_28 : f32 to vector<1x128xf32>
    %917 = arith.maximumf %915, %916 : vector<1x128xf32>
    %c148 = arith.constant 148 : index
    %918 = memref.load %arg2[%c148] : memref<320xf32, #tpu.memory_space<smem>>
    %919 = vector.broadcast %918 : f32 to vector<1x128xf32>
    %920 = arith.mulf %169, %919 : vector<1x128xf32>
    %c248 = arith.constant 248 : index
    %921 = memref.load %arg2[%c248] : memref<320xf32, #tpu.memory_space<smem>>
    %922 = vector.broadcast %921 : f32 to vector<1x128xf32>
    %923 = arith.addf %920, %922 : vector<1x128xf32>
    %c158 = arith.constant 158 : index
    %924 = memref.load %arg2[%c158] : memref<320xf32, #tpu.memory_space<smem>>
    %925 = vector.broadcast %924 : f32 to vector<1x128xf32>
    %926 = arith.mulf %213, %925 : vector<1x128xf32>
    %927 = arith.addf %923, %926 : vector<1x128xf32>
    %c168 = arith.constant 168 : index
    %928 = memref.load %arg2[%c168] : memref<320xf32, #tpu.memory_space<smem>>
    %929 = vector.broadcast %928 : f32 to vector<1x128xf32>
    %930 = arith.mulf %257, %929 : vector<1x128xf32>
    %931 = arith.addf %927, %930 : vector<1x128xf32>
    %c178 = arith.constant 178 : index
    %932 = memref.load %arg2[%c178] : memref<320xf32, #tpu.memory_space<smem>>
    %933 = vector.broadcast %932 : f32 to vector<1x128xf32>
    %934 = arith.mulf %301, %933 : vector<1x128xf32>
    %935 = arith.addf %931, %934 : vector<1x128xf32>
    %c188 = arith.constant 188 : index
    %936 = memref.load %arg2[%c188] : memref<320xf32, #tpu.memory_space<smem>>
    %937 = vector.broadcast %936 : f32 to vector<1x128xf32>
    %938 = arith.mulf %345, %937 : vector<1x128xf32>
    %939 = arith.addf %935, %938 : vector<1x128xf32>
    %c198 = arith.constant 198 : index
    %940 = memref.load %arg2[%c198] : memref<320xf32, #tpu.memory_space<smem>>
    %941 = vector.broadcast %940 : f32 to vector<1x128xf32>
    %942 = arith.mulf %389, %941 : vector<1x128xf32>
    %943 = arith.addf %939, %942 : vector<1x128xf32>
    %c208 = arith.constant 208 : index
    %944 = memref.load %arg2[%c208] : memref<320xf32, #tpu.memory_space<smem>>
    %945 = vector.broadcast %944 : f32 to vector<1x128xf32>
    %946 = arith.mulf %433, %945 : vector<1x128xf32>
    %947 = arith.addf %943, %946 : vector<1x128xf32>
    %c218 = arith.constant 218 : index
    %948 = memref.load %arg2[%c218] : memref<320xf32, #tpu.memory_space<smem>>
    %949 = vector.broadcast %948 : f32 to vector<1x128xf32>
    %950 = arith.mulf %477, %949 : vector<1x128xf32>
    %951 = arith.addf %947, %950 : vector<1x128xf32>
    %c228 = arith.constant 228 : index
    %952 = memref.load %arg2[%c228] : memref<320xf32, #tpu.memory_space<smem>>
    %953 = vector.broadcast %952 : f32 to vector<1x128xf32>
    %954 = arith.mulf %521, %953 : vector<1x128xf32>
    %955 = arith.addf %951, %954 : vector<1x128xf32>
    %c238 = arith.constant 238 : index
    %956 = memref.load %arg2[%c238] : memref<320xf32, #tpu.memory_space<smem>>
    %957 = vector.broadcast %956 : f32 to vector<1x128xf32>
    %958 = arith.mulf %565, %957 : vector<1x128xf32>
    %959 = arith.addf %955, %958 : vector<1x128xf32>
    %cst_29 = arith.constant 0.000000e+00 : f32
    %960 = vector.broadcast %cst_29 : f32 to vector<1x128xf32>
    %961 = arith.maximumf %959, %960 : vector<1x128xf32>
    %c149 = arith.constant 149 : index
    %962 = memref.load %arg2[%c149] : memref<320xf32, #tpu.memory_space<smem>>
    %963 = vector.broadcast %962 : f32 to vector<1x128xf32>
    %964 = arith.mulf %169, %963 : vector<1x128xf32>
    %c249 = arith.constant 249 : index
    %965 = memref.load %arg2[%c249] : memref<320xf32, #tpu.memory_space<smem>>
    %966 = vector.broadcast %965 : f32 to vector<1x128xf32>
    %967 = arith.addf %964, %966 : vector<1x128xf32>
    %c159 = arith.constant 159 : index
    %968 = memref.load %arg2[%c159] : memref<320xf32, #tpu.memory_space<smem>>
    %969 = vector.broadcast %968 : f32 to vector<1x128xf32>
    %970 = arith.mulf %213, %969 : vector<1x128xf32>
    %971 = arith.addf %967, %970 : vector<1x128xf32>
    %c169 = arith.constant 169 : index
    %972 = memref.load %arg2[%c169] : memref<320xf32, #tpu.memory_space<smem>>
    %973 = vector.broadcast %972 : f32 to vector<1x128xf32>
    %974 = arith.mulf %257, %973 : vector<1x128xf32>
    %975 = arith.addf %971, %974 : vector<1x128xf32>
    %c179 = arith.constant 179 : index
    %976 = memref.load %arg2[%c179] : memref<320xf32, #tpu.memory_space<smem>>
    %977 = vector.broadcast %976 : f32 to vector<1x128xf32>
    %978 = arith.mulf %301, %977 : vector<1x128xf32>
    %979 = arith.addf %975, %978 : vector<1x128xf32>
    %c189 = arith.constant 189 : index
    %980 = memref.load %arg2[%c189] : memref<320xf32, #tpu.memory_space<smem>>
    %981 = vector.broadcast %980 : f32 to vector<1x128xf32>
    %982 = arith.mulf %345, %981 : vector<1x128xf32>
    %983 = arith.addf %979, %982 : vector<1x128xf32>
    %c199 = arith.constant 199 : index
    %984 = memref.load %arg2[%c199] : memref<320xf32, #tpu.memory_space<smem>>
    %985 = vector.broadcast %984 : f32 to vector<1x128xf32>
    %986 = arith.mulf %389, %985 : vector<1x128xf32>
    %987 = arith.addf %983, %986 : vector<1x128xf32>
    %c209 = arith.constant 209 : index
    %988 = memref.load %arg2[%c209] : memref<320xf32, #tpu.memory_space<smem>>
    %989 = vector.broadcast %988 : f32 to vector<1x128xf32>
    %990 = arith.mulf %433, %989 : vector<1x128xf32>
    %991 = arith.addf %987, %990 : vector<1x128xf32>
    %c219 = arith.constant 219 : index
    %992 = memref.load %arg2[%c219] : memref<320xf32, #tpu.memory_space<smem>>
    %993 = vector.broadcast %992 : f32 to vector<1x128xf32>
    %994 = arith.mulf %477, %993 : vector<1x128xf32>
    %995 = arith.addf %991, %994 : vector<1x128xf32>
    %c229 = arith.constant 229 : index
    %996 = memref.load %arg2[%c229] : memref<320xf32, #tpu.memory_space<smem>>
    %997 = vector.broadcast %996 : f32 to vector<1x128xf32>
    %998 = arith.mulf %521, %997 : vector<1x128xf32>
    %999 = arith.addf %995, %998 : vector<1x128xf32>
    %c239 = arith.constant 239 : index
    %1000 = memref.load %arg2[%c239] : memref<320xf32, #tpu.memory_space<smem>>
    %1001 = vector.broadcast %1000 : f32 to vector<1x128xf32>
    %1002 = arith.mulf %565, %1001 : vector<1x128xf32>
    %1003 = arith.addf %999, %1002 : vector<1x128xf32>
    %cst_30 = arith.constant 0.000000e+00 : f32
    %1004 = vector.broadcast %cst_30 : f32 to vector<1x128xf32>
    %1005 = arith.maximumf %1003, %1004 : vector<1x128xf32>
    %c250 = arith.constant 250 : index
    %1006 = memref.load %arg2[%c250] : memref<320xf32, #tpu.memory_space<smem>>
    %1007 = vector.broadcast %1006 : f32 to vector<1x128xf32>
    %1008 = arith.mulf %609, %1007 : vector<1x128xf32>
    %c300 = arith.constant 300 : index
    %1009 = memref.load %arg2[%c300] : memref<320xf32, #tpu.memory_space<smem>>
    %1010 = vector.broadcast %1009 : f32 to vector<1x128xf32>
    %1011 = arith.addf %1008, %1010 : vector<1x128xf32>
    %c255 = arith.constant 255 : index
    %1012 = memref.load %arg2[%c255] : memref<320xf32, #tpu.memory_space<smem>>
    %1013 = vector.broadcast %1012 : f32 to vector<1x128xf32>
    %1014 = arith.mulf %653, %1013 : vector<1x128xf32>
    %1015 = arith.addf %1011, %1014 : vector<1x128xf32>
    %c260 = arith.constant 260 : index
    %1016 = memref.load %arg2[%c260] : memref<320xf32, #tpu.memory_space<smem>>
    %1017 = vector.broadcast %1016 : f32 to vector<1x128xf32>
    %1018 = arith.mulf %697, %1017 : vector<1x128xf32>
    %1019 = arith.addf %1015, %1018 : vector<1x128xf32>
    %c265 = arith.constant 265 : index
    %1020 = memref.load %arg2[%c265] : memref<320xf32, #tpu.memory_space<smem>>
    %1021 = vector.broadcast %1020 : f32 to vector<1x128xf32>
    %1022 = arith.mulf %741, %1021 : vector<1x128xf32>
    %1023 = arith.addf %1019, %1022 : vector<1x128xf32>
    %c270 = arith.constant 270 : index
    %1024 = memref.load %arg2[%c270] : memref<320xf32, #tpu.memory_space<smem>>
    %1025 = vector.broadcast %1024 : f32 to vector<1x128xf32>
    %1026 = arith.mulf %785, %1025 : vector<1x128xf32>
    %1027 = arith.addf %1023, %1026 : vector<1x128xf32>
    %c275 = arith.constant 275 : index
    %1028 = memref.load %arg2[%c275] : memref<320xf32, #tpu.memory_space<smem>>
    %1029 = vector.broadcast %1028 : f32 to vector<1x128xf32>
    %1030 = arith.mulf %829, %1029 : vector<1x128xf32>
    %1031 = arith.addf %1027, %1030 : vector<1x128xf32>
    %c280 = arith.constant 280 : index
    %1032 = memref.load %arg2[%c280] : memref<320xf32, #tpu.memory_space<smem>>
    %1033 = vector.broadcast %1032 : f32 to vector<1x128xf32>
    %1034 = arith.mulf %873, %1033 : vector<1x128xf32>
    %1035 = arith.addf %1031, %1034 : vector<1x128xf32>
    %c285 = arith.constant 285 : index
    %1036 = memref.load %arg2[%c285] : memref<320xf32, #tpu.memory_space<smem>>
    %1037 = vector.broadcast %1036 : f32 to vector<1x128xf32>
    %1038 = arith.mulf %917, %1037 : vector<1x128xf32>
    %1039 = arith.addf %1035, %1038 : vector<1x128xf32>
    %c290 = arith.constant 290 : index
    %1040 = memref.load %arg2[%c290] : memref<320xf32, #tpu.memory_space<smem>>
    %1041 = vector.broadcast %1040 : f32 to vector<1x128xf32>
    %1042 = arith.mulf %961, %1041 : vector<1x128xf32>
    %1043 = arith.addf %1039, %1042 : vector<1x128xf32>
    %c295 = arith.constant 295 : index
    %1044 = memref.load %arg2[%c295] : memref<320xf32, #tpu.memory_space<smem>>
    %1045 = vector.broadcast %1044 : f32 to vector<1x128xf32>
    %1046 = arith.mulf %1005, %1045 : vector<1x128xf32>
    %1047 = arith.addf %1043, %1046 : vector<1x128xf32>
    %c251 = arith.constant 251 : index
    %1048 = memref.load %arg2[%c251] : memref<320xf32, #tpu.memory_space<smem>>
    %1049 = vector.broadcast %1048 : f32 to vector<1x128xf32>
    %1050 = arith.mulf %609, %1049 : vector<1x128xf32>
    %c301 = arith.constant 301 : index
    %1051 = memref.load %arg2[%c301] : memref<320xf32, #tpu.memory_space<smem>>
    %1052 = vector.broadcast %1051 : f32 to vector<1x128xf32>
    %1053 = arith.addf %1050, %1052 : vector<1x128xf32>
    %c256 = arith.constant 256 : index
    %1054 = memref.load %arg2[%c256] : memref<320xf32, #tpu.memory_space<smem>>
    %1055 = vector.broadcast %1054 : f32 to vector<1x128xf32>
    %1056 = arith.mulf %653, %1055 : vector<1x128xf32>
    %1057 = arith.addf %1053, %1056 : vector<1x128xf32>
    %c261 = arith.constant 261 : index
    %1058 = memref.load %arg2[%c261] : memref<320xf32, #tpu.memory_space<smem>>
    %1059 = vector.broadcast %1058 : f32 to vector<1x128xf32>
    %1060 = arith.mulf %697, %1059 : vector<1x128xf32>
    %1061 = arith.addf %1057, %1060 : vector<1x128xf32>
    %c266 = arith.constant 266 : index
    %1062 = memref.load %arg2[%c266] : memref<320xf32, #tpu.memory_space<smem>>
    %1063 = vector.broadcast %1062 : f32 to vector<1x128xf32>
    %1064 = arith.mulf %741, %1063 : vector<1x128xf32>
    %1065 = arith.addf %1061, %1064 : vector<1x128xf32>
    %c271 = arith.constant 271 : index
    %1066 = memref.load %arg2[%c271] : memref<320xf32, #tpu.memory_space<smem>>
    %1067 = vector.broadcast %1066 : f32 to vector<1x128xf32>
    %1068 = arith.mulf %785, %1067 : vector<1x128xf32>
    %1069 = arith.addf %1065, %1068 : vector<1x128xf32>
    %c276 = arith.constant 276 : index
    %1070 = memref.load %arg2[%c276] : memref<320xf32, #tpu.memory_space<smem>>
    %1071 = vector.broadcast %1070 : f32 to vector<1x128xf32>
    %1072 = arith.mulf %829, %1071 : vector<1x128xf32>
    %1073 = arith.addf %1069, %1072 : vector<1x128xf32>
    %c281 = arith.constant 281 : index
    %1074 = memref.load %arg2[%c281] : memref<320xf32, #tpu.memory_space<smem>>
    %1075 = vector.broadcast %1074 : f32 to vector<1x128xf32>
    %1076 = arith.mulf %873, %1075 : vector<1x128xf32>
    %1077 = arith.addf %1073, %1076 : vector<1x128xf32>
    %c286 = arith.constant 286 : index
    %1078 = memref.load %arg2[%c286] : memref<320xf32, #tpu.memory_space<smem>>
    %1079 = vector.broadcast %1078 : f32 to vector<1x128xf32>
    %1080 = arith.mulf %917, %1079 : vector<1x128xf32>
    %1081 = arith.addf %1077, %1080 : vector<1x128xf32>
    %c291 = arith.constant 291 : index
    %1082 = memref.load %arg2[%c291] : memref<320xf32, #tpu.memory_space<smem>>
    %1083 = vector.broadcast %1082 : f32 to vector<1x128xf32>
    %1084 = arith.mulf %961, %1083 : vector<1x128xf32>
    %1085 = arith.addf %1081, %1084 : vector<1x128xf32>
    %c296 = arith.constant 296 : index
    %1086 = memref.load %arg2[%c296] : memref<320xf32, #tpu.memory_space<smem>>
    %1087 = vector.broadcast %1086 : f32 to vector<1x128xf32>
    %1088 = arith.mulf %1005, %1087 : vector<1x128xf32>
    %1089 = arith.addf %1085, %1088 : vector<1x128xf32>
    %c252 = arith.constant 252 : index
    %1090 = memref.load %arg2[%c252] : memref<320xf32, #tpu.memory_space<smem>>
    %1091 = vector.broadcast %1090 : f32 to vector<1x128xf32>
    %1092 = arith.mulf %609, %1091 : vector<1x128xf32>
    %c302 = arith.constant 302 : index
    %1093 = memref.load %arg2[%c302] : memref<320xf32, #tpu.memory_space<smem>>
    %1094 = vector.broadcast %1093 : f32 to vector<1x128xf32>
    %1095 = arith.addf %1092, %1094 : vector<1x128xf32>
    %c257 = arith.constant 257 : index
    %1096 = memref.load %arg2[%c257] : memref<320xf32, #tpu.memory_space<smem>>
    %1097 = vector.broadcast %1096 : f32 to vector<1x128xf32>
    %1098 = arith.mulf %653, %1097 : vector<1x128xf32>
    %1099 = arith.addf %1095, %1098 : vector<1x128xf32>
    %c262 = arith.constant 262 : index
    %1100 = memref.load %arg2[%c262] : memref<320xf32, #tpu.memory_space<smem>>
    %1101 = vector.broadcast %1100 : f32 to vector<1x128xf32>
    %1102 = arith.mulf %697, %1101 : vector<1x128xf32>
    %1103 = arith.addf %1099, %1102 : vector<1x128xf32>
    %c267 = arith.constant 267 : index
    %1104 = memref.load %arg2[%c267] : memref<320xf32, #tpu.memory_space<smem>>
    %1105 = vector.broadcast %1104 : f32 to vector<1x128xf32>
    %1106 = arith.mulf %741, %1105 : vector<1x128xf32>
    %1107 = arith.addf %1103, %1106 : vector<1x128xf32>
    %c272 = arith.constant 272 : index
    %1108 = memref.load %arg2[%c272] : memref<320xf32, #tpu.memory_space<smem>>
    %1109 = vector.broadcast %1108 : f32 to vector<1x128xf32>
    %1110 = arith.mulf %785, %1109 : vector<1x128xf32>
    %1111 = arith.addf %1107, %1110 : vector<1x128xf32>
    %c277 = arith.constant 277 : index
    %1112 = memref.load %arg2[%c277] : memref<320xf32, #tpu.memory_space<smem>>
    %1113 = vector.broadcast %1112 : f32 to vector<1x128xf32>
    %1114 = arith.mulf %829, %1113 : vector<1x128xf32>
    %1115 = arith.addf %1111, %1114 : vector<1x128xf32>
    %c282 = arith.constant 282 : index
    %1116 = memref.load %arg2[%c282] : memref<320xf32, #tpu.memory_space<smem>>
    %1117 = vector.broadcast %1116 : f32 to vector<1x128xf32>
    %1118 = arith.mulf %873, %1117 : vector<1x128xf32>
    %1119 = arith.addf %1115, %1118 : vector<1x128xf32>
    %c287 = arith.constant 287 : index
    %1120 = memref.load %arg2[%c287] : memref<320xf32, #tpu.memory_space<smem>>
    %1121 = vector.broadcast %1120 : f32 to vector<1x128xf32>
    %1122 = arith.mulf %917, %1121 : vector<1x128xf32>
    %1123 = arith.addf %1119, %1122 : vector<1x128xf32>
    %c292 = arith.constant 292 : index
    %1124 = memref.load %arg2[%c292] : memref<320xf32, #tpu.memory_space<smem>>
    %1125 = vector.broadcast %1124 : f32 to vector<1x128xf32>
    %1126 = arith.mulf %961, %1125 : vector<1x128xf32>
    %1127 = arith.addf %1123, %1126 : vector<1x128xf32>
    %c297 = arith.constant 297 : index
    %1128 = memref.load %arg2[%c297] : memref<320xf32, #tpu.memory_space<smem>>
    %1129 = vector.broadcast %1128 : f32 to vector<1x128xf32>
    %1130 = arith.mulf %1005, %1129 : vector<1x128xf32>
    %1131 = arith.addf %1127, %1130 : vector<1x128xf32>
    %c253 = arith.constant 253 : index
    %1132 = memref.load %arg2[%c253] : memref<320xf32, #tpu.memory_space<smem>>
    %1133 = vector.broadcast %1132 : f32 to vector<1x128xf32>
    %1134 = arith.mulf %609, %1133 : vector<1x128xf32>
    %c303 = arith.constant 303 : index
    %1135 = memref.load %arg2[%c303] : memref<320xf32, #tpu.memory_space<smem>>
    %1136 = vector.broadcast %1135 : f32 to vector<1x128xf32>
    %1137 = arith.addf %1134, %1136 : vector<1x128xf32>
    %c258 = arith.constant 258 : index
    %1138 = memref.load %arg2[%c258] : memref<320xf32, #tpu.memory_space<smem>>
    %1139 = vector.broadcast %1138 : f32 to vector<1x128xf32>
    %1140 = arith.mulf %653, %1139 : vector<1x128xf32>
    %1141 = arith.addf %1137, %1140 : vector<1x128xf32>
    %c263 = arith.constant 263 : index
    %1142 = memref.load %arg2[%c263] : memref<320xf32, #tpu.memory_space<smem>>
    %1143 = vector.broadcast %1142 : f32 to vector<1x128xf32>
    %1144 = arith.mulf %697, %1143 : vector<1x128xf32>
    %1145 = arith.addf %1141, %1144 : vector<1x128xf32>
    %c268 = arith.constant 268 : index
    %1146 = memref.load %arg2[%c268] : memref<320xf32, #tpu.memory_space<smem>>
    %1147 = vector.broadcast %1146 : f32 to vector<1x128xf32>
    %1148 = arith.mulf %741, %1147 : vector<1x128xf32>
    %1149 = arith.addf %1145, %1148 : vector<1x128xf32>
    %c273 = arith.constant 273 : index
    %1150 = memref.load %arg2[%c273] : memref<320xf32, #tpu.memory_space<smem>>
    %1151 = vector.broadcast %1150 : f32 to vector<1x128xf32>
    %1152 = arith.mulf %785, %1151 : vector<1x128xf32>
    %1153 = arith.addf %1149, %1152 : vector<1x128xf32>
    %c278 = arith.constant 278 : index
    %1154 = memref.load %arg2[%c278] : memref<320xf32, #tpu.memory_space<smem>>
    %1155 = vector.broadcast %1154 : f32 to vector<1x128xf32>
    %1156 = arith.mulf %829, %1155 : vector<1x128xf32>
    %1157 = arith.addf %1153, %1156 : vector<1x128xf32>
    %c283 = arith.constant 283 : index
    %1158 = memref.load %arg2[%c283] : memref<320xf32, #tpu.memory_space<smem>>
    %1159 = vector.broadcast %1158 : f32 to vector<1x128xf32>
    %1160 = arith.mulf %873, %1159 : vector<1x128xf32>
    %1161 = arith.addf %1157, %1160 : vector<1x128xf32>
    %c288 = arith.constant 288 : index
    %1162 = memref.load %arg2[%c288] : memref<320xf32, #tpu.memory_space<smem>>
    %1163 = vector.broadcast %1162 : f32 to vector<1x128xf32>
    %1164 = arith.mulf %917, %1163 : vector<1x128xf32>
    %1165 = arith.addf %1161, %1164 : vector<1x128xf32>
    %c293 = arith.constant 293 : index
    %1166 = memref.load %arg2[%c293] : memref<320xf32, #tpu.memory_space<smem>>
    %1167 = vector.broadcast %1166 : f32 to vector<1x128xf32>
    %1168 = arith.mulf %961, %1167 : vector<1x128xf32>
    %1169 = arith.addf %1165, %1168 : vector<1x128xf32>
    %c298 = arith.constant 298 : index
    %1170 = memref.load %arg2[%c298] : memref<320xf32, #tpu.memory_space<smem>>
    %1171 = vector.broadcast %1170 : f32 to vector<1x128xf32>
    %1172 = arith.mulf %1005, %1171 : vector<1x128xf32>
    %1173 = arith.addf %1169, %1172 : vector<1x128xf32>
    %c254 = arith.constant 254 : index
    %1174 = memref.load %arg2[%c254] : memref<320xf32, #tpu.memory_space<smem>>
    %1175 = vector.broadcast %1174 : f32 to vector<1x128xf32>
    %1176 = arith.mulf %609, %1175 : vector<1x128xf32>
    %c304 = arith.constant 304 : index
    %1177 = memref.load %arg2[%c304] : memref<320xf32, #tpu.memory_space<smem>>
    %1178 = vector.broadcast %1177 : f32 to vector<1x128xf32>
    %1179 = arith.addf %1176, %1178 : vector<1x128xf32>
    %c259 = arith.constant 259 : index
    %1180 = memref.load %arg2[%c259] : memref<320xf32, #tpu.memory_space<smem>>
    %1181 = vector.broadcast %1180 : f32 to vector<1x128xf32>
    %1182 = arith.mulf %653, %1181 : vector<1x128xf32>
    %1183 = arith.addf %1179, %1182 : vector<1x128xf32>
    %c264 = arith.constant 264 : index
    %1184 = memref.load %arg2[%c264] : memref<320xf32, #tpu.memory_space<smem>>
    %1185 = vector.broadcast %1184 : f32 to vector<1x128xf32>
    %1186 = arith.mulf %697, %1185 : vector<1x128xf32>
    %1187 = arith.addf %1183, %1186 : vector<1x128xf32>
    %c269 = arith.constant 269 : index
    %1188 = memref.load %arg2[%c269] : memref<320xf32, #tpu.memory_space<smem>>
    %1189 = vector.broadcast %1188 : f32 to vector<1x128xf32>
    %1190 = arith.mulf %741, %1189 : vector<1x128xf32>
    %1191 = arith.addf %1187, %1190 : vector<1x128xf32>
    %c274 = arith.constant 274 : index
    %1192 = memref.load %arg2[%c274] : memref<320xf32, #tpu.memory_space<smem>>
    %1193 = vector.broadcast %1192 : f32 to vector<1x128xf32>
    %1194 = arith.mulf %785, %1193 : vector<1x128xf32>
    %1195 = arith.addf %1191, %1194 : vector<1x128xf32>
    %c279 = arith.constant 279 : index
    %1196 = memref.load %arg2[%c279] : memref<320xf32, #tpu.memory_space<smem>>
    %1197 = vector.broadcast %1196 : f32 to vector<1x128xf32>
    %1198 = arith.mulf %829, %1197 : vector<1x128xf32>
    %1199 = arith.addf %1195, %1198 : vector<1x128xf32>
    %c284 = arith.constant 284 : index
    %1200 = memref.load %arg2[%c284] : memref<320xf32, #tpu.memory_space<smem>>
    %1201 = vector.broadcast %1200 : f32 to vector<1x128xf32>
    %1202 = arith.mulf %873, %1201 : vector<1x128xf32>
    %1203 = arith.addf %1199, %1202 : vector<1x128xf32>
    %c289 = arith.constant 289 : index
    %1204 = memref.load %arg2[%c289] : memref<320xf32, #tpu.memory_space<smem>>
    %1205 = vector.broadcast %1204 : f32 to vector<1x128xf32>
    %1206 = arith.mulf %917, %1205 : vector<1x128xf32>
    %1207 = arith.addf %1203, %1206 : vector<1x128xf32>
    %c294 = arith.constant 294 : index
    %1208 = memref.load %arg2[%c294] : memref<320xf32, #tpu.memory_space<smem>>
    %1209 = vector.broadcast %1208 : f32 to vector<1x128xf32>
    %1210 = arith.mulf %961, %1209 : vector<1x128xf32>
    %1211 = arith.addf %1207, %1210 : vector<1x128xf32>
    %c299 = arith.constant 299 : index
    %1212 = memref.load %arg2[%c299] : memref<320xf32, #tpu.memory_space<smem>>
    %1213 = vector.broadcast %1212 : f32 to vector<1x128xf32>
    %1214 = arith.mulf %1005, %1213 : vector<1x128xf32>
    %1215 = arith.addf %1211, %1214 : vector<1x128xf32>
    %c0_31 = arith.constant 0 : index
    %1216 = arith.index_cast %1 : i32 to index
    %1217 = vector.load %arg3[%c0_31, %1216] : memref<5x128xf32, #tpu.memory_space<vmem>>, vector<1x128xf32>
    tpu.vector_store %arg3[%c0_31, %1216], %1047 {strides = array<i32>} : memref<5x128xf32, #tpu.memory_space<vmem>>, vector<1x128xf32>,
    %c1_32 = arith.constant 1 : index
    %1218 = arith.index_cast %1 : i32 to index
    %1219 = vector.load %arg3[%c1_32, %1218] : memref<5x128xf32, #tpu.memory_space<vmem>>, vector<1x128xf32>
    tpu.vector_store %arg3[%c1_32, %1218], %1089 {strides = array<i32>} : memref<5x128xf32, #tpu.memory_space<vmem>>, vector<1x128xf32>,
    %c2_33 = arith.constant 2 : index
    %1220 = arith.index_cast %1 : i32 to index
    %1221 = vector.load %arg3[%c2_33, %1220] : memref<5x128xf32, #tpu.memory_space<vmem>>, vector<1x128xf32>
    tpu.vector_store %arg3[%c2_33, %1220], %1131 {strides = array<i32>} : memref<5x128xf32, #tpu.memory_space<vmem>>, vector<1x128xf32>,
    %c3_34 = arith.constant 3 : index
    %1222 = arith.index_cast %1 : i32 to index
    %1223 = vector.load %arg3[%c3_34, %1222] : memref<5x128xf32, #tpu.memory_space<vmem>>, vector<1x128xf32>
    tpu.vector_store %arg3[%c3_34, %1222], %1173 {strides = array<i32>} : memref<5x128xf32, #tpu.memory_space<vmem>>, vector<1x128xf32>,
    %c4_35 = arith.constant 4 : index
    %1224 = arith.index_cast %1 : i32 to index
    %1225 = vector.load %arg3[%c4_35, %1224] : memref<5x128xf32, #tpu.memory_space<vmem>>, vector<1x128xf32>
    tpu.vector_store %arg3[%c4_35, %1224], %1215 {strides = array<i32>} : memref<5x128xf32, #tpu.memory_space<vmem>>, vector<1x128xf32>,
    %c1_i32 = arith.constant 1 : i32
    return
  }
  func.func @transform_0(%arg0: i32) -> (i32, i32) {
    %c0_i32 = arith.constant 0 : i32
    %c0_i32_0 = arith.constant 0 : i32
    return %c0_i32, %arg0 : i32, i32
  }
  func.func @transform_1(%arg0: i32) -> i32 {
    %c0_i32 = arith.constant 0 : i32
    %c0_i32_0 = arith.constant 0 : i32
    return %c0_i32 : i32
  }
  func.func @transform_2(%arg0: i32) -> (i32, i32) {
    %c0_i32 = arith.constant 0 : i32
    %c0_i32_0 = arith.constant 0 : i32
    return %c0_i32, %arg0 : i32, i32
  }
}

</mosaic_0001>

<bundles_post_ra>
// kernel: tpu_custom_call.1
= control target key start
LH: loop header
LB: loop body
LE: loop exit
PB: predicated region body
PF: predicated region fallthrough
CT: control target
= control target key end

     0   :  { %s3310_s0 = inlined_call_operand.hbm [shape: f32[2,256], index: 0, kind: input, shape index: {}]   ;;  %s3311_s1 = inlined_call_operand.hbm [shape: f32[320], index: 1, kind: input, shape index: {}]   ;;  %s3312_s2 = inlined_call_operand.hbm [shape: f32[5,256], index: 2, kind: output, shape index: {}]  }
   0x1   :  { %3330 = sst [smem:[#allocation64_spill]] %s3310_s0 }
   0x2   :  { %3331 = sst [smem:[#allocation65_spill]] %s3311_s1 }
   0x3   :  { %3332 = sst [smem:[#allocation66_spill]] %s3312_s2 }
   0x4   :  { %7 = vsyncpa [#allocation3], 0 }
   0x5   :  { %9 = vsyncpa [#allocation3 + $0x1], 0 }
   0x6   :  { %10 = vsyncpa [#allocation5], 0 }
   0x7   :  { %11 = vsyncpa [#allocation4], 0 }
   0x8   :  { %13 = vsyncpa [#allocation4 + $0x1], 0  ;;  %s1956_s9 = smov 0   ;;  %s1958_s10 = smov 0  }
   0x9   :  { %s1960_s11 = smov 0   ;;  %s1962_s12 = smov 0  }
   0xa LB: > { %3333 = sst [smem:[#allocation11_spill]] %s1924_s9  ;;  %s1977_s13 = sadd.s32 4294967295, %s1936_s12   ;;  %s1936_s12 = sphi %s1962_s12, %s3510_s12   ;;  %s1932_s11 = sphi %s1960_s11, %s3513_s11   ;;  %s1928_s10 = sphi %s1958_s10, %s3512_s10   ;;  %s1924_s9 = sphi %s1956_s9, %s3511_s9  }
   0xb   : > { %3334 = sst [smem:[#allocation12_spill]] %s1928_s10  ;;  %s1454_s14 = sadd.s32 4294967294, %s1936_s12  }
   0xc   : > { %3335 = sst [smem:[#allocation13_spill]] %s1932_s11  ;;  %p39_p0 = scmp.ne.s32.totalorder %s1928_s10, %s1924_s9 }
   0xd   : > { %3336 = sst [smem:[#allocation14_spill]] %s1936_s12  ;;  %p3313_p1 = scmp.eq.s32.totalorder %s1977_s13, 0 }
   0xe   : > { %3337 = sst [smem:[#allocation15_spill]] %s1977_s13  ;;  %p84_p2 = scmp.eq.s32.totalorder %s1977_s13, 1 }
   0xf   : > { %p90_p3 = scmp.eq.s32.totalorder %s1454_s14, 1  ;;  %p1986_p4 = por %p3313_p1, %p39_p0 }
  0x10   : > { %p1455_p5 = scmp.ge.s32.totalorder %s1936_s12, 1  ;;  %p97_p7 = scmp.lt.s32.totalorder %s1936_s12, 3 }
  0x11   : > { %s3338_s15 = scalar_select %p1986_p4, 1, 0 }
  0x12   : > { %p1991_p6 = por %p90_p3, %p39_p0  ;;  %p1996_p8 = pnand %p1455_p5, %p97_p7 }
  0x13   : > { %s2002_s18 = sadd.s32 1, %s1936_s12   ;;  %s26_s20 = sadd.s32 1, %s1932_s11 }
  0x14   : > { %s3339_s16 = scalar_select %p1991_p6, 1, 0 }
  0x15   : > { %s3341_s17 = scalar_select %p1996_p8, 1, 0 }
  0x16   : > { %3340 = sst [smem:[#allocation16_spill]] %s3339_s16  ;;  %p1780_p10 = pneg %p1996_p8 }
  0x17   : > { %3342 = sst [smem:[#allocation17_spill]] %s2002_s18  ;;  %s23_s19 = ssub.s32 %s1936_s12, %s2002_s18 }
  0x18   : > { %p1781_p11 = pnand %p1780_p10, %p3313_p1  ;;  %p24_p12 = scmp.eq.s32.totalorder %s23_s19, 0 }
  0x19   : > { %p33_p13 = scmp.ne.s32.totalorder %s1932_s11, %s1928_s10  ;;  %p34_p0 = scmp.eq.s32.totalorder %s1936_s12, 0 }
  0x1a   : > { %p1793_p3 = scmp.lt.s32.totalorder %s1936_s12, 2  ;;  %s1938_s21 = smov [#allocation6]  }
  0x1b   : > { %s3343_s1 = sld [smem:[#allocation65_spill]]  ;;  %p35_p5 = por %p34_p0, %p33_p13 }
  0x1c   : > { %s2019_s24 = scalar_select %p24_p12, %s1932_s11, %s26_s20  }
  0x1d   : > { %p2023_p7 = por %p84_p2, %p33_p13  ;;  %s119_s26 = sand.u32 1, %s1932_s11  }
  0x1e   : > { %3344 = sst [smem:[#allocation18_spill]] %s2019_s24  ;;  %s1459_s27 = sshll.u32 %s1936_s12, 5 }
  0x1f   : > { %s3345_s25 = scalar_select %p2023_p7, 1, 0 }
  0x20   : > { %s1458_s28 = sshll.u32 %s119_s26, 1  ;;  %s3347_s0 = sld [smem:[#allocation64_spill]] }
  0x21   : > { %1783 = dma.hbm_to_smem (!%p1781_p11), %s3343_s1, 48, %s1938_s21, [#allocation5]  }
  0x22   : > { %3346 = sst [smem:[#allocation19_spill]] %s3345_s25  ;;  %s123_s4 = scalar_lea.vmem [#allocation2], %s1458_s28 }
  0x23   : > { %s130_s5 = sshll.u32 %s123_s4, 4  ;;  %p2034_p10 = pnand %p1793_p3, %p35_p5  ;;  %s131_s5 = int_to_ptr.vmem [resolvable:$true] %s130_s5 }
  0x24   : > { %s120_s7 = scalar_lea.sflag [#allocation3], %s119_s26 }
  0x25   : > { %p1842_p11 = pneg %p2034_p10 }
  0x26   : > { %s2032_s3 = scalar_lea.hbm %s3347_s0, %s1459_s27  ;;  %s1845_s20 = scalar_lea.hbm %s3347_s0, 64 }
  0x27   : > { %s1840_s8 = scalar_lea.hbm %s2032_s3, 32  ;;  %p1846_p0 = scmp.lt.s32.totalorder %s2032_s3, %s3347_s0 }
  0x28   : > { %p1841_p2 = scmp.ne.s32.totalorder %s2032_s3, %s1840_s8  ;;  %p1847_p3 = scmp.lt.s32.totalorder %s1845_s20, %s1840_s8 }
  0x2a   : > { %p1843_p12 = pnand %p1842_p11, %p1841_p2  ;;  %p1848_p5 = por %p1847_p3, %p1846_p0 }
  0x2c   : > { %p1844_p13 = pneg %p1843_p12 }
  0x2e   : > { %p1849_p9 = pnand %p1848_p5, %p1844_p13 }
  0x30   : > { %1852 = shalt.err (!%p1849_p9)
}
  0x31   : > { %s1853_s23 = scalar_lea.vmem %s131_s5, 32  ;;  %s1939_s26 = smov [#allocation2]  }
  0x32   : > { %p1854_p1 = scmp.ne.s32.totalorder %s131_s5, %s1853_s23  ;;  %s1858_s27 = sshll.u32 %s1939_s26, 4  ;;  %s1859_s27 = int_to_ptr.vmem [resolvable:$false] %s1858_s27 }
  0x33   : > { %s1860_s28 = scalar_lea.vmem %s1859_s27, 64  ;;  %p1861_p2 = scmp.lt.s32.totalorder %s131_s5, %s1859_s27 }
  0x34   : > { %p1856_p6 = pnand %p1854_p1, %p1842_p11  ;;  %p1862_p12 = scmp.lt.s32.totalorder %s1860_s28, %s1853_s23 }
  0x36   : > { %p1857_p7 = pneg %p1856_p6  ;;  %p1863_p4 = por %p1862_p12, %p1861_p2 }
  0x38   : > { %p1864_p8 = pnand %p1863_p4, %p1857_p7 }
  0x3a   : > { %1867 = shalt.err (!%p1864_p8)
}
  0x3b   : > { %1787 = dma.hbm_to_vmem [thread:$0]  (!%p2034_p10), %s2032_s3, 32, %s131_s5, %s120_s7  }
  0x3c   : > { %p3349_p13 = scmp.ne.s32.totalorder %s3341_s17, 0 }
  0x3e   : > { %139 = sbr.rel (%p3349_p13) target bundleno = 560 (0x230), region = 28 }
  0x43   : > { %s2055_s29 = sand.u32 1, %s1928_s10   ;;  %p3351_p1 = scmp.ne.s32.totalorder %s3338_s15, 0 }
  0x44   : > { %3350 = sst [smem:[#allocation20_spill]] %s2055_s29  ;;  %s1461_s30 = sshll.u32 %s2055_s29, 1 }
  0x45   : > { %s142_s4 = scalar_lea.sflag [#allocation3], %s2055_s29  ;;  %s2059_s8 = scalar_lea.vmem [#allocation2], %s1461_s30 }
  0x46   : > { %1911 = dma.done.wait (%p3351_p1), %s142_s4, 32  }
  0x47   : > { %1913 = vsyncadd (%p3351_p1), %s142_s4, 4294967264  ;;  %p3352_p4 = scmp.eq.s32.totalorder %s1977_s13, 0 }
  0x49   : > { %1915 = dma.done.wait (%p3352_p4), [#allocation5], 48   ;;  %p3353_p6 = pmov %p3352_p4 }
  0x4b   : > { %1917 = vsyncadd (%p3353_p6), [#allocation5], 4294967248 }
  0x4c   : > { %154 = sfence }
  0x4d   : > { %s2069_s17 = sld [smem:[#allocation6]]  ;;  %v2200_v0 = vld [vmem:[%s2059_s8] sm:$0x1]  ;;  %v2213_v3 = vld [vmem:[%s2059_s8 + $0x1] sm:$0x1] }
  0x4e   : > { %s2071_s3 = sld [smem:[#allocation6 + $0x14]] }
  0x4f   : > { %s2073_s5 = sld [smem:[#allocation6 + $0xa]] }
  0x50   : > { %s2075_s6 = sld [smem:[#allocation6 + $0x1]] }
  0x51   : > { %s2077_s7 = sld [smem:[#allocation6 + $0x15]] }
  0x52   : > { %s2079_s14 = sld [smem:[#allocation6 + $0xb]] }
  0x53   : > { %s2081_s15 = sld [smem:[#allocation6 + $0x2]]  ;;  %v174_v1 = vstv %s2069_s17 }
  0x54   : > { %s2083_s19 = sld [smem:[#allocation6 + $0x16]]  ;;  %v175_v2 = vmul.f32 %v174_v1, %v2200_v0  ;;  %v177_v4 = vstv %s2071_s3 }
  0x55   : > { %s2085_s20 = sld [smem:[#allocation6 + $0xc]]  ;;  %v180_v5 = vstv %s2073_s5 }
  0x56   : > { %s2087_s21 = sld [smem:[#allocation6 + $0x3]]  ;;  %v185_v6 = vstv %s2075_s6  ;;  %v178_v7 = vadd.f32 %v177_v4, %v175_v2  ;;  %v181_v8 = vmul.f32 %v180_v5, %v2213_v3 }
  0x57   : > { %s2089_s22 = sld [smem:[#allocation6 + $0x17]]  ;;  %v186_v9 = vmul.f32 %v185_v6, %v2200_v0  ;;  %v188_v10 = vstv %s2077_s7 }
  0x58   : > { %s2091_s23 = sld [smem:[#allocation6 + $0xd]]  ;;  %v191_v11 = vstv %s2079_s14  ;;  %v182_v15 = vadd.f32 %v181_v8, %v178_v7 }
  0x59   : > { %s2093_s26 = sld [smem:[#allocation6 + $0x4]]  ;;  %v196_v12 = vstv %s2081_s15  ;;  %v189_v16 = vadd.f32 %v188_v10, %v186_v9  ;;  %v192_v18 = vmul.f32 %v191_v11, %v2213_v3 }
  0x5a   : > { %s2095_s27 = sld [smem:[#allocation6 + $0x18]]  ;;  %v197_v19 = vmul.f32 %v196_v12, %v2200_v0  ;;  %v199_v20 = vstv %s2083_s19  ;;  %v2260_v30 = vmax.f32 %v182_v15, 0.0 }
  0x5b   : > { %s2097_s28 = sld [smem:[#allocation6 + $0xe]]  ;;  %v202_v22 = vstv %s2085_s20  ;;  %v193_v33 = vadd.f32 %v192_v18, %v189_v16 }
  0x5c   : > { %s2099_s30 = sld [smem:[#allocation6 + $0x5]]  ;;  %v207_v13 = vstv %s2087_s21  ;;  %v200_v34 = vadd.f32 %v199_v20, %v197_v19  ;;  %v203_v35 = vmul.f32 %v202_v22, %v2213_v3 }
  0x5d   : > { %s2101_s4 = sld [smem:[#allocation6 + $0x19]]  ;;  %v208_v21 = vmul.f32 %v207_v13, %v2200_v0  ;;  %v210_v23 = vstv %s2089_s22  ;;  %v2288_v51 = vmax.f32 %v193_v33, 0.0 }
  0x5e   : > { %s2103_s0 = sld [smem:[#allocation6 + $0xf]]  ;;  %v213_v24 = vstv %s2091_s23  ;;  %v204_v46 = vadd.f32 %v203_v35, %v200_v34 }
  0x5f   : > { %s2105_s1 = sld [smem:[#allocation6 + $0x6]]  ;;  %v218_v14 = vstv %s2093_s26  ;;  %v211_v36 = vadd.f32 %v210_v23, %v208_v21  ;;  %v214_v37 = vmul.f32 %v213_v24, %v2213_v3 }
  0x60   : > { %s2107_s24 = sld [smem:[#allocation6 + $0x1a]]  ;;  %v219_v25 = vmul.f32 %v218_v14, %v2200_v0  ;;  %v221_v26 = vstv %s2095_s27  ;;  %v2298_v58 = vmax.f32 %v204_v46, 0.0 }
  0x61   : > { %s2109_s11 = sld [smem:[#allocation6 + $0x10]]  ;;  %v224_v27 = vstv %s2097_s28  ;;  %v215_v48 = vadd.f32 %v214_v37, %v211_v36 }
  0x62   : > { %s2111_s10 = sld [smem:[#allocation6 + $0x7]]  ;;  %v229_v17 = vstv %s2099_s30  ;;  %v222_v38 = vadd.f32 %v221_v26, %v219_v25  ;;  %v225_v39 = vmul.f32 %v224_v27, %v2213_v3 }
  0x63   : > { %s2113_s18 = sld [smem:[#allocation6 + $0x1b]]  ;;  %v230_v28 = vmul.f32 %v229_v17, %v2200_v0  ;;  %v232_v31 = vstv %s2101_s4  ;;  %v2304_v61 = vmax.f32 %v215_v48, 0.0 }
  0x64   : > { %s2115_s12 = sld [smem:[#allocation6 + $0x11]]  ;;  %v235_v32 = vstv %s2103_s0  ;;  %v226_v52 = vadd.f32 %v225_v39, %v222_v38 }
  0x65   : > { %s2117_s16 = sld [smem:[#allocation6 + $0x8]]  ;;  %v240_v29 = vstv %s2105_s1  ;;  %v233_v41 = vadd.f32 %v232_v31, %v230_v28  ;;  %v236_v42 = vmul.f32 %v235_v32, %v2213_v3 }
  0x66   : > { %3354 = sst [smem:[#allocation21_spill]] %s2107_s24  ;;  %v241_v40 = vmul.f32 %v240_v29, %v2200_v0  ;;  %v2310_v2 = vmax.f32 %v226_v52, 0.0 }
  0x67   : > { %3355 = sst [smem:[#allocation22_spill]] %s2109_s11  ;;  %v237_v53 = vadd.f32 %v236_v42, %v233_v41 }
  0x68   : > { %3356 = sst [smem:[#allocation23_spill]] %s2111_s10 }
  0x69   : > { %3357 = sst [smem:[#allocation24_spill]] %s2113_s18  ;;  %v2312_v4 = vmax.f32 %v237_v53, 0.0 }
  0x6a   : > { %3358 = sst [smem:[#allocation25_spill]] %s2115_s12 }
  0x6b   : > { %3359 = sst [smem:[#allocation26_spill]] %s2117_s16 }
  0x6c   : > { %s2119_s9 = sld [smem:[#allocation6 + $0x1c]] }
  0x6d   : > { %s2121_s2 = sld [smem:[#allocation6 + $0x12]] }
  0x6e   : > { %s2123_s25 = sld [smem:[#allocation6 + $0x9]] }
  0x6f   : > { %s2125_s13 = sld [smem:[#allocation6 + $0x1d]] }
  0x70   : > { %s2127_s29 = sld [smem:[#allocation6 + $0x13]] }
  0x71   : > { %s2129_s24 = sld [smem:[#allocation6 + $0x1e]] }
  0x72   : > { %3360 = sst [smem:[#allocation27_spill]] %s2119_s9 }
  0x73   : > { %3361 = sst [smem:[#allocation28_spill]] %s2121_s2 }
  0x74   : > { %3362 = sst [smem:[#allocation29_spill]] %s2123_s25 }
  0x75   : > { %3363 = sst [smem:[#allocation30_spill]] %s2125_s13 }
  0x76   : > { %3364 = sst [smem:[#allocation31_spill]] %s2127_s29 }
  0x77   : > { %3365 = sst [smem:[#allocation32_spill]] %s2129_s24 }
  0x78   : > { %s2131_s11 = sld [smem:[#allocation6 + $0x82]] }
  0x79   : > { %s2133_s10 = sld [smem:[#allocation6 + $0x28]] }
  0x7a   : > { %s2135_s18 = sld [smem:[#allocation6 + $0x32]] }
  0x7b   : > { %s2137_s12 = sld [smem:[#allocation6 + $0x3c]] }
  0x7c   : > { %s2139_s16 = sld [smem:[#allocation6 + $0x46]] }
  0x7d   : > { %s2141_s9 = sld [smem:[#allocation6 + $0x50]] }
  0x7e   : > { %3366 = sst [smem:[#allocation33_spill]] %s2131_s11 }
  0x7f   : > { %3367 = sst [smem:[#allocation34_spill]] %s2133_s10 }
  0x80   : > { %3368 = sst [smem:[#allocation35_spill]] %s2135_s18 }
  0x81   : > { %3369 = sst [smem:[#allocation36_spill]] %s2137_s12 }
  0x82   : > { %3370 = sst [smem:[#allocation37_spill]] %s2139_s16 }
  0x83   : > { %3371 = sst [smem:[#allocation38_spill]] %s2141_s9 }
  0x84   : > { %s2143_s2 = sld [smem:[#allocation6 + $0x5a]] }
  0x85   : > { %s2145_s25 = sld [smem:[#allocation6 + $0x64]] }
  0x86   : > { %s2147_s13 = sld [smem:[#allocation6 + $0x6e]] }
  0x87   : > { %s2149_s29 = sld [smem:[#allocation6 + $0x78]] }
  0x88   : > { %s2151_s24 = sld [smem:[#allocation6 + $0x1f]] }
  0x89   : > { %s2153_s11 = sld [smem:[#allocation6 + $0x83]] }
  0x8a   : > { %3372 = sst [smem:[#allocation39_spill]] %s2143_s2 }
  0x8b   : > { %3373 = sst [smem:[#allocation40_spill]] %s2145_s25 }
  0x8c   : > { %3374 = sst [smem:[#allocation41_spill]] %s2147_s13 }
  0x8d   : > { %3375 = sst [smem:[#allocation42_spill]] %s2149_s29 }
  0x8e   : > { %s2155_s10 = sld [smem:[#allocation6 + $0x29]]  ;;  %v327_v60 = vstv %s2151_s24 }
  0x8f   : > { %3376 = sst [smem:[#allocation43_spill]] %s2153_s11  ;;  %v328_v9 = vmul.f32 %v327_v60, %v2260_v30 }
  0x90   : > { %s2157_s18 = sld [smem:[#allocation6 + $0x33]] }
  0x91   : > { %s2159_s12 = sld [smem:[#allocation6 + $0x3d]] }
  0x92   : > { %s2161_s16 = sld [smem:[#allocation6 + $0x47]] }
  0x93   : > { %s2163_s9 = sld [smem:[#allocation6 + $0x51]] }
  0x94   : > { %3377 = sst [smem:[#allocation44_spill]] %s2155_s10 }
  0x95   : > { %s2165_s2 = sld [smem:[#allocation6 + $0x5b]] }
  0x96   : > { %3378 = sst [smem:[#allocation45_spill]] %s2157_s18 }
  0x97   : > { %3379 = sst [smem:[#allocation46_spill]] %s2159_s12 }
  0x98   : > { %3380 = sst [smem:[#allocation47_spill]] %s2161_s16 }
  0x99   : > { %3381 = sst [smem:[#allocation48_spill]] %s2163_s9 }
  0x9a   : > { %s2167_s25 = sld [smem:[#allocation6 + $0x65]] }
  0x9b   : > { %3382 = sst [smem:[#allocation49_spill]] %s2165_s2 }
  0x9c   : > { %s2169_s29 = sld [smem:[#allocation6 + $0x6f]] }
  0x9d   : > { %s2171_s13 = sld [smem:[#allocation6 + $0x79]] }
  0x9e   : > { %s2173_s11 = sld [smem:[#allocation6 + $0x20]] }
  0x9f   : > { %s2175_s10 = sld [smem:[#allocation6 + $0x84]] }
  0xa0   : > { %3383 = sst [smem:[#allocation50_spill]] %s2167_s25 }
  0xa1   : > { %s2177_s18 = sld [smem:[#allocation6 + $0x2a]] }
  0xa2   : > { %3384 = sst [smem:[#allocation51_spill]] %s2169_s29 }
  0xa3   : > { %3385 = sst [smem:[#allocation52_spill]] %s2171_s13 }
  0xa4   : > { %s2179_s12 = sld [smem:[#allocation6 + $0x34]]  ;;  %v370_v10 = vstv %s2173_s11 }
  0xa5   : > { %3386 = sst [smem:[#allocation53_spill]] %s2175_s10  ;;  %v371_v22 = vmul.f32 %v370_v10, %v2260_v30 }
  0xa6   : > { %s2181_s16 = sld [smem:[#allocation6 + $0x3e]] }
  0xa7   : > { %3387 = sst [smem:[#allocation54_spill]] %s2177_s18 }
  0xa8   : > { %s2183_s2 = sld [smem:[#allocation6 + $0x48]] }
  0xa9   : > { %s2185_s25 = sld [smem:[#allocation6 + $0x52]] }
  0xaa   : > { %3388 = sst [smem:[#allocation55_spill]] %s2179_s12 }
  0xab   : > { %s2187_s29 = sld [smem:[#allocation6 + $0x5c]] }
  0xac   : > { %s2189_s13 = sld [smem:[#allocation6 + $0x66]]  ;;  %v384_v60 = vstv %s2181_s16 }
  0xad   : > { %s2191_s9 = sld [smem:[#allocation6 + $0x70]] }
  0xae   : > { %3389 = sst [smem:[#allocation56_spill]] %s2183_s2 }
  0xaf   : > { %3390 = sst [smem:[#allocation57_spill]] %s2185_s25 }
  0xb0   : > { %s2193_s10 = sld [smem:[#allocation6 + $0x7a]] }
  0xb1   : > { %3391 = sst [smem:[#allocation58_spill]] %s2187_s29 }
  0xb2   : > { %3392 = sst [smem:[#allocation59_spill]] %s2189_s13 }
  0xb3   : > { %3393 = sst [smem:[#allocation60_spill]] %s2191_s9 }
  0xb4   : > { %s2195_s18 = sld [smem:[#allocation6 + $0x21]] }
  0xb5   : > { %s2197_s12 = sld [smem:[#allocation6 + $0x85]] }
  0xb6   : > { %3394 = sst [smem:[#allocation61_spill]] %s2193_s10 }
  0xb7   : > { %s2203_s2 = sld [smem:[#allocation6 + $0x2b]] }
  0xb8   : > { %s2205_s25 = sld [smem:[#allocation6 + $0x35]] }
  0xb9   : > { %s2207_s29 = sld [smem:[#allocation6 + $0x3f]] }
  0xba   : > { %s2210_s9 = sld [smem:[#allocation6 + $0x49]]  ;;  %v413_v18 = vstv %s2195_s18 }
  0xbb   : > { %s2218_s17 = sld [smem:[#allocation6 + $0x53]]  ;;  %v414_v31 = vmul.f32 %v413_v18, %v2260_v30  ;;  %v416_v34 = vstv %s2197_s12 }
  0xbc   : > { %s2220_s10 = sld [smem:[#allocation6 + $0x5d]] }
  0xbd   : > { %s2222_s13 = sld [smem:[#allocation6 + $0x67]]  ;;  %v419_v35 = vstv %s2203_s2  ;;  %v417_v46 = vadd.f32 %v416_v34, %v414_v31 }
  0xbe   : > { %s2229_s8 = sld [smem:[#allocation6 + $0x7b]]  ;;  %v423_v52 = vstv %s2205_s25 }
  0xbf   : > { %s2234_s3 = sld [smem:[#allocation6 + $0x22]] }
  0xc0   : > { %3395 = sst [smem:[#allocation62_spill]] %s2210_s9 }
  0xc1   : > { %s2226_s9 = sld [smem:[#allocation6 + $0x71]] }
  0xc2   : > { %s2237_s5 = sld [smem:[#allocation6 + $0x86]] }
  0xc3   : > { %s2240_s6 = sld [smem:[#allocation6 + $0x2c]] }
  0xc4   : > { %3396 = sst [smem:[#allocation63_spill]] %s2229_s8 }
  0xc5   : > { %s2246_s7 = sld [smem:[#allocation6 + $0x36]] }
  0xc6   : > { %s2252_s14 = sld [smem:[#allocation6 + $0x40]] }
  0xc7   : > { %s2258_s15 = sld [smem:[#allocation6 + $0x4a]] }
  0xc8   : > { %s3397_s19 = sld [smem:[#allocation21_spill]] }
  0xc9   : > { %s3398_s21 = sld [smem:[#allocation22_spill]] }
  0xca   : > { %s2264_s20 = sld [smem:[#allocation6 + $0x54]] }
  0xcb   : > { %s3399_s22 = sld [smem:[#allocation32_spill]] }
  0xcc   : > { %s3400_s23 = sld [smem:[#allocation23_spill]] }
  0xcd   : > { %s2267_s26 = sld [smem:[#allocation6 + $0x5e]] }
  0xce   : > { %s2272_s1 = sld [smem:[#allocation6 + $0x68]]  ;;  %v243_v43 = vstv %s3397_s19 }
  0xcf   : > { %v246_v44 = vstv %s3398_s21  ;;  %s2277_s0 = sld [smem:[#allocation6 + $0x72]]  ;;  %v244_v49 = vadd.f32 %v243_v43, %v241_v40 }
  0xd0   : > { %s3404_s27 = sld [smem:[#allocation33_spill]]  ;;  %v247_v50 = vmul.f32 %v246_v44, %v2213_v3 }
  0xd1   : > { %v284_v45 = vstv %s3399_s22  ;;  %s3405_s28 = sld [smem:[#allocation34_spill]] }
  0xd2   : > { %s2280_s30 = sld [smem:[#allocation6 + $0x7c]]  ;;  %v251_v47 = vstv %s3400_s23  ;;  %v285_v54 = vmul.f32 %v284_v45, %v2260_v30  ;;  %v248_v62 = vadd.f32 %v247_v50, %v244_v49 }
  0xd3   : > { %3401 = sst [smem:[#allocation21_spill]] %s2267_s26  ;;  %v252_v55 = vmul.f32 %v251_v47, %v2200_v0  ;;  %v420_v47 = vmul.f32 %v419_v35, %v2288_v51 }
  0xd4   : > { %3402 = sst [smem:[#allocation22_spill]] %s2272_s1  ;;  %v2328_v15 = vmax.f32 %v248_v62, 0.0 }
  0xd5   : > { %3403 = sst [smem:[#allocation32_spill]] %s2277_s0 }
  0xd6   : > { %s3407_s4 = sld [smem:[#allocation24_spill]]  ;;  %v287_v56 = vstv %s3404_s27 }
  0xd7   : > { %s2283_s26 = sld [smem:[#allocation6 + $0x23]]  ;;  %v290_v57 = vstv %s3405_s28  ;;  %v288_v5 = vadd.f32 %v287_v56, %v285_v54 }
  0xd8   : > { %3406 = sst [smem:[#allocation23_spill]] %s2280_s30  ;;  %v291_v6 = vmul.f32 %v290_v57, %v2288_v51 }
  0xd9   : > { %s2286_s1 = sld [smem:[#allocation6 + $0x87]] }
  0xda   : > { %s3409_s19 = sld [smem:[#allocation25_spill]]  ;;  %v292_v19 = vadd.f32 %v291_v6, %v288_v5  ;;  %v424_v5 = vmul.f32 %v423_v52, %v2298_v58 }
  0xdb   : > { %s3410_s21 = sld [smem:[#allocation26_spill]] }
  0xdc   : > { %s2291_s22 = sld [smem:[#allocation6 + $0x2d]]  ;;  %v254_v59 = vstv %s3407_s4 }
  0xdd   : > { %s2296_s23 = sld [smem:[#allocation6 + $0x37]]  ;;  %v255_v7 = vadd.f32 %v254_v59, %v252_v55 }
  0xde   : > { %s3412_s30 = sld [smem:[#allocation35_spill]] }
  0xdf   : > { %3408 = sst [smem:[#allocation33_spill]] %s2286_s1 }
  0xe0   : > { %s2302_s0 = sld [smem:[#allocation6 + $0x41]]  ;;  %v257_v63 = vstv %s3409_s19 }
  0xe1   : > { %s3414_s1 = sld [smem:[#allocation43_spill]]  ;;  %v262_v1 = vstv %s3410_s21  ;;  %v258_v11 = vmul.f32 %v257_v63, %v2213_v3 }
  0xe2   : > { %3411 = sst [smem:[#allocation34_spill]] %s2291_s22  ;;  %v263_v12 = vmul.f32 %v262_v1, %v2200_v0  ;;  %v421_v1 = vadd.f32 %v420_v47, %v417_v46  ;;  %v466_v47 = vstv %s2246_s7 }
  0xe3   : > { %s3415_s22 = sld [smem:[#allocation44_spill]]  ;;  %v259_v27 = vadd.f32 %v258_v11, %v255_v7 }
  0xe4   : > { %s2308_s8 = sld [smem:[#allocation6 + $0x4b]]  ;;  %v294_v8 = vstv %s3412_s30 }
  0xe5   : > { %s3417_s27 = sld [smem:[#allocation27_spill]]  ;;  %v295_v20 = vmul.f32 %v294_v8, %v2298_v58  ;;  %v2364_v44 = vmax.f32 %v259_v27, 0.0 }
  0xe6   : > { %3413 = sst [smem:[#allocation24_spill]] %s2302_s0 }
  0xe7   : > { %s3418_s28 = sld [smem:[#allocation28_spill]]  ;;  %v330_v13 = vstv %s3414_s1  ;;  %v296_v40 = vadd.f32 %v295_v20, %v292_v19  ;;  %v425_v20 = vadd.f32 %v424_v5, %v421_v1  ;;  %v470_v5 = vstv %s2252_s14 }
  0xe8   : > { %s2315_s24 = sld [smem:[#allocation6 + $0x55]]  ;;  %v331_v23 = vadd.f32 %v330_v13, %v328_v9  ;;  %v427_v9 = vstv %s2207_s29  ;;  %v456_v13 = vstv %s2234_s3 }
  0xe9   : > { %s3420_s4 = sld [smem:[#allocation36_spill]]  ;;  %v333_v14 = vstv %s3415_s22 }
  0xea   : > { %3416 = sst [smem:[#allocation25_spill]] %s2308_s8  ;;  %v334_v24 = vmul.f32 %v333_v14, %v2288_v51 }
  0xeb   : > { %s2320_s19 = sld [smem:[#allocation6 + $0x5f]]  ;;  %v265_v16 = vstv %s3417_s27 }
  0xec   : > { %s3421_s21 = sld [smem:[#allocation53_spill]]  ;;  %v266_v28 = vadd.f32 %v265_v16, %v263_v12  ;;  %v335_v41 = vadd.f32 %v334_v24, %v331_v23  ;;  %v385_v12 = vmul.f32 %v384_v60, %v2304_v61  ;;  %v467_v60 = vmul.f32 %v466_v47, %v2298_v58 }
  0xed   : > { %s3422_s8 = sld [smem:[#allocation54_spill]]  ;;  %v268_v17 = vstv %s3418_s28 }
  0xee   : > { %3419 = sst [smem:[#allocation26_spill]] %s2315_s24  ;;  %v269_v32 = vmul.f32 %v268_v17, %v2213_v3 }
  0xef   : > { %s2326_s0 = sld [smem:[#allocation6 + $0x69]]  ;;  %v298_v21 = vstv %s3420_s4 }
  0xf0   : > { %s3423_s30 = sld [smem:[#allocation45_spill]]  ;;  %v299_v36 = vmul.f32 %v298_v21, %v2304_v61  ;;  %v270_v62 = vadd.f32 %v269_v32, %v266_v28  ;;  %v428_v21 = vmul.f32 %v427_v9, %v2304_v61  ;;  %v459_v28 = vstv %s2237_s5 }
  0xf1   : > { %s2333_s24 = sld [smem:[#allocation6 + $0x73]] }
  0xf2   : > { %s3425_s11 = sld [smem:[#allocation29_spill]]  ;;  %v373_v25 = vstv %s3421_s21  ;;  %v300_v57 = vadd.f32 %v299_v36, %v296_v40  ;;  %v2403_v18 = vmax.f32 %v270_v62, 0.0  ;;  %v435_v40 = vstv %s2218_s17 }
  0xf3   : > { %s2338_s1 = sld [smem:[#allocation6 + $0x7d]]  ;;  %v376_v26 = vstv %s3422_s8  ;;  %v374_v38 = vadd.f32 %v373_v25, %v371_v22  ;;  %v457_v25 = vmul.f32 %v456_v13, %v2260_v30  ;;  %v443_v13 = vstv %s2222_s13 }
  0xf4   : > { %s3427_s22 = sld [smem:[#allocation37_spill]]  ;;  %v377_v39 = vmul.f32 %v376_v26, %v2288_v51 }
  0xf5   : > { %s2343_s18 = sld [smem:[#allocation6 + $0x24]] }
  0xf6   : > { %v337_v29 = vstv %s3423_s30  ;;  %s3428_s27 = sld [smem:[#allocation55_spill]]  ;;  %v378_v55 = vadd.f32 %v377_v39, %v374_v38 }
  0xf7   : > { %3424 = sst [smem:[#allocation35_spill]] %s2333_s24  ;;  %v338_v42 = vmul.f32 %v337_v29, %v2298_v58  ;;  %v462_v29 = vstv %s2240_s6 }
  0xf8   : > { %s2347_s28 = sld [smem:[#allocation6 + $0x88]]  ;;  %v273_v33 = vstv %s3425_s11 }
  0xf9   : > { %3426 = sst [smem:[#allocation43_spill]] %s2338_s1  ;;  %v274_v48 = vmul.f32 %v273_v33, %v2200_v0  ;;  %v339_v59 = vadd.f32 %v338_v42, %v335_v41  ;;  %v460_v41 = vadd.f32 %v459_v28, %v457_v25  ;;  %v463_v42 = vmul.f32 %v462_v29, %v2288_v51 }
  0xfa   : > { %s3429_s4 = sld [smem:[#allocation46_spill]]  ;;  %v302_v37 = vstv %s3427_s22  ;;  %v447_v28 = vstv %s2226_s9 }
  0xfb   : > { %s2353_s1 = sld [smem:[#allocation6 + $0x2e]]  ;;  %v303_v53 = vmul.f32 %v302_v37, %v2310_v2  ;;  %v429_v37 = vadd.f32 %v428_v21, %v425_v20  ;;  %v474_v20 = vstv %s2258_s15 }
  0xfc   : > { %s3430_s8 = sld [smem:[#allocation30_spill]]  ;;  %v380_v43 = vstv %s3428_s27 }
  0xfd   : > { %s3431_s21 = sld [smem:[#allocation31_spill]]  ;;  %v381_v56 = vmul.f32 %v380_v43, %v2298_v58  ;;  %v304_v14 = vadd.f32 %v303_v53, %v300_v57 }
  0xfe   : > { %s2358_s30 = sld [smem:[#allocation6 + $0x38]] }
  0xff   : > { %s3432_s24 = sld [smem:[#allocation38_spill]]  ;;  %v382_v11 = vadd.f32 %v381_v56, %v378_v55  ;;  %v436_v56 = vmul.f32 %v435_v40, %v2312_v4 }
 0x100   : > { %s2362_s2 = sld [smem:[#allocation6 + $0x42]]  ;;  %v341_v45 = vstv %s3429_s4 }
 0x101   : > { %s2368_s12 = sld [smem:[#allocation6 + $0x4c]]  ;;  %v342_v0 = vmul.f32 %v341_v45, %v2304_v61  ;;  %v386_v26 = vadd.f32 %v385_v12, %v382_v11 }
 0x102   : > { %s3433_s11 = sld [smem:[#allocation47_spill]]  ;;  %v276_v49 = vstv %s3430_s8 }
 0x103   : > { %v279_v50 = vstv %s3431_s21  ;;  %s2374_s22 = sld [smem:[#allocation6 + $0x56]]  ;;  %v277_v6 = vadd.f32 %v276_v49, %v274_v48  ;;  %v343_v16 = vadd.f32 %v342_v0, %v339_v59  ;;  %v439_v59 = vstv %s2220_s10 }
 0x104   : > { %s2379_s27 = sld [smem:[#allocation6 + $0x60]]  ;;  %v280_v7 = vmul.f32 %v279_v50, %v2213_v3  ;;  %v464_v0 = vadd.f32 %v463_v42, %v460_v41  ;;  %v440_v12 = vmul.f32 %v439_v59, %v2328_v15  ;;  %v448_v41 = vmul.f32 %v447_v28, %v2403_v18 }
 0x105   : > { %v306_v54 = vstv %s3432_s24  ;;  %s3436_s4 = sld [smem:[#allocation39_spill]] }
 0x106   : > { %s2383_s8 = sld [smem:[#allocation6 + $0x6a]]  ;;  %v307_v8 = vmul.f32 %v306_v54, %v2312_v4  ;;  %v281_v35 = vadd.f32 %v280_v7, %v277_v6 }
 0x107   : > { %s3438_s25 = sld [smem:[#allocation56_spill]] }
 0x108   : > { %v345_v63 = vstv %s3433_s11  ;;  %s2387_s24 = sld [smem:[#allocation6 + $0x74]]  ;;  %v308_v31 = vadd.f32 %v307_v8, %v304_v14  ;;  %v2442_v53 = vmax.f32 %v281_v35, 0.0  ;;  %v468_v14 = vadd.f32 %v467_v60, %v464_v0 }
 0x109   : > { %3434 = sst [smem:[#allocation44_spill]] %s2374_s22  ;;  %v346_v17 = vmul.f32 %v345_v63, %v2310_v2  ;;  %v478_v35 = vstv %s2264_s20 }
 0x10a   : > { %3435 = sst [smem:[#allocation27_spill]] %s2379_s27 }
 0x10b   : > { %s3440_s21 = sld [smem:[#allocation48_spill]]  ;;  %v310_v10 = vstv %s3436_s4  ;;  %v347_v32 = vadd.f32 %v346_v17, %v343_v16  ;;  %v471_v16 = vmul.f32 %v470_v5, %v2304_v61 }
 0x10c   : > { %3437 = sst [smem:[#allocation28_spill]] %s2383_s8  ;;  %v311_v22 = vmul.f32 %v310_v10, %v2328_v15 }
 0x10d   : > { %s2392_s27 = sld [smem:[#allocation6 + $0x7e]]  ;;  %v388_v3 = vstv %s3438_s25  ;;  %v472_v29 = vadd.f32 %v471_v16, %v468_v14 }
 0x10e   : > { %3439 = sst [smem:[#allocation36_spill]] %s2387_s24  ;;  %v389_v27 = vmul.f32 %v388_v3, %v2310_v2  ;;  %v312_v48 = vadd.f32 %v311_v22, %v308_v31  ;;  %v475_v31 = vmul.f32 %v474_v20, %v2310_v2 }
 0x10f   : > { %s3442_s16 = sld [smem:[#allocation40_spill]] }
 0x110   : > { %s3443_s11 = sld [smem:[#allocation62_spill]]  ;;  %v390_v45 = vadd.f32 %v389_v27, %v386_v26  ;;  %v444_v27 = vmul.f32 %v443_v13, %v2364_v44 }
 0x111   : > { %s2397_s8 = sld [smem:[#allocation6 + $0x25]]  ;;  %v349_v19 = vstv %s3440_s21 }
 0x112   : > { %s2401_s24 = sld [smem:[#allocation6 + $0x89]]  ;;  %v350_v33 = vmul.f32 %v349_v19, %v2312_v4 }
 0x113   : > { %3441 = sst [smem:[#allocation53_spill]] %s2392_s27 }
 0x114   : > { %s3444_s29 = sld [smem:[#allocation57_spill]]  ;;  %v351_v49 = vadd.f32 %v350_v33, %v347_v32  ;;  %v499_v32 = vstv %s2283_s26 }
 0x115   : > { %s2407_s4 = sld [smem:[#allocation6 + $0x2f]]  ;;  %v314_v23 = vstv %s3442_s16 }
 0x116   : > { %s3445_s3 = sld [smem:[#allocation49_spill]]  ;;  %v431_v24 = vstv %s3443_s11  ;;  %v315_v39 = vmul.f32 %v314_v23, %v2364_v44 }
 0x117   : > { %s2413_s27 = sld [smem:[#allocation6 + $0x39]]  ;;  %v432_v38 = vmul.f32 %v431_v24, %v2310_v2  ;;  %v585_v13 = vstv %s2397_s8 }
 0x118   : > { %s2418_s25 = sld [smem:[#allocation6 + $0x43]]  ;;  %v316_v6 = vadd.f32 %v315_v39, %v312_v48 }
 0x119   : > { %s3446_s21 = sld [smem:[#allocation41_spill]]  ;;  %v433_v55 = vadd.f32 %v432_v38, %v429_v37 }
 0x11a   : > { %v392_v34 = vstv %s3444_s29  ;;  %s2422_s16 = sld [smem:[#allocation6 + $0x4d]] }
 0x11b   : > { %s3447_s11 = sld [smem:[#allocation58_spill]]  ;;  %v393_v46 = vmul.f32 %v392_v34, %v2312_v4  ;;  %v437_v11 = vadd.f32 %v436_v56, %v433_v55 }
 0x11c   : > { %v353_v36 = vstv %s3445_s3  ;;  %s2426_s22 = sld [smem:[#allocation6 + $0x57]] }
 0x11d   : > { %s3449_s5 = sld [smem:[#allocation50_spill]]  ;;  %v354_v50 = vmul.f32 %v353_v36, %v2328_v15  ;;  %v394_v63 = vadd.f32 %v393_v46, %v390_v45  ;;  %v441_v26 = vadd.f32 %v440_v12, %v437_v11  ;;  %v476_v45 = vadd.f32 %v475_v31, %v472_v29 }
 0x11e   : > { %s2431_s6 = sld [smem:[#allocation6 + $0x61]]  ;;  %v479_v46 = vmul.f32 %v478_v35, %v2312_v4  ;;  %v588_v29 = vstv %s2401_s24  ;;  %v591_v31 = vstv %s2407_s4 }
 0x11f   : > { %v318_v43 = vstv %s3446_s21  ;;  %s2436_s29 = sld [smem:[#allocation6 + $0x6b]]  ;;  %v355_v7 = vadd.f32 %v354_v50, %v351_v49  ;;  %v445_v40 = vadd.f32 %v444_v27, %v441_v26  ;;  %v586_v26 = vmul.f32 %v585_v13, %v2260_v30 }
 0x120   : > { %s3452_s3 = sld [smem:[#allocation42_spill]]  ;;  %v319_v57 = vmul.f32 %v318_v43, %v2403_v18  ;;  %v500_v43 = vmul.f32 %v499_v32, %v2260_v30 }
 0x121   : > { %v396_v52 = vstv %s3447_s11  ;;  %s2440_s17 = sld [smem:[#allocation6 + $0x75]] }
 0x122   : > { %3448 = sst [smem:[#allocation54_spill]] %s2426_s22  ;;  %v397_v1 = vmul.f32 %v396_v52, %v2328_v15  ;;  %v320_v21 = vadd.f32 %v319_v57, %v316_v6  ;;  %v449_v57 = vadd.f32 %v448_v41, %v445_v40  ;;  %v525_v40 = vstv %s2320_s19 }
 0x123   : > { %v357_v54 = vstv %s3449_s5  ;;  %s3454_s21 = sld [smem:[#allocation59_spill]]  ;;  %v556_v41 = vstv %s2362_s2 }
 0x124   : > { %3450 = sst [smem:[#allocation45_spill]] %s2431_s6  ;;  %v358_v8 = vmul.f32 %v357_v54, %v2364_v44  ;;  %v398_v3 = vadd.f32 %v397_v1, %v394_v63  ;;  %v542_v54 = vstv %s2343_s18  ;;  %v509_v1 = vstv %s2296_s23 }
 0x125   : > { %3451 = sst [smem:[#allocation29_spill]] %s2436_s29  ;;  %v543_v5 = vmul.f32 %v542_v54, %v2260_v30 }
 0x126   : > { %s2446_s6 = sld [smem:[#allocation6 + $0x7f]]  ;;  %v322_v62 = vstv %s3452_s3  ;;  %v359_v22 = vadd.f32 %v358_v8, %v355_v7  ;;  %v545_v8 = vstv %s2347_s28 }
 0x127   : > { %3453 = sst [smem:[#allocation37_spill]] %s2440_s17  ;;  %v323_v17 = vmul.f32 %v322_v62, %v2442_v53  ;;  %v480_v62 = vadd.f32 %v479_v46, %v476_v45 }
 0x128   : > { %s3456_s7 = sld [smem:[#allocation51_spill]] }
 0x129   : > { %s2451_s11 = sld [smem:[#allocation6 + $0x26]]  ;;  %v400_v9 = vstv %s3454_s21  ;;  %v324_v36 = vadd.f32 %v323_v17, %v320_v21  ;;  %v510_v17 = vmul.f32 %v509_v1, %v2298_v58  ;;  %v546_v21 = vadd.f32 %v545_v8, %v543_v5 }
 0x12a   : > { %s2456_s5 = sld [smem:[#allocation6 + $0x8a]]  ;;  %v401_v19 = vmul.f32 %v400_v9, %v2364_v44  ;;  %v548_v9 = vstv %s2353_s1  ;;  %v599_v1 = vstv %s2418_s25 }
 0x12b   : > { %s2460_s10 = sld [smem:[#allocation6 + $0x30]]  ;;  %v2523_v6 = vmax.f32 %v324_v36, 0.0 }
 0x12c   : > { %3455 = sst [smem:[#allocation55_spill]] %s2446_s6  ;;  %v402_v33 = vadd.f32 %v401_v19, %v398_v3 }
 0x12d   : > { %s3457_s6 = sld [smem:[#allocation60_spill]] }
 0x12e   : > { %v361_v10 = vstv %s3456_s7  ;;  %s3458_s3 = sld [smem:[#allocation52_spill]] }
 0x12f   : > { %s2464_s17 = sld [smem:[#allocation6 + $0x3a]]  ;;  %v362_v23 = vmul.f32 %v361_v10, %v2403_v18  ;;  %v628_v35 = vstv %s2451_s11 }
 0x130   : > { %s2468_s14 = sld [smem:[#allocation6 + $0x44]] }
 0x131   : > { %s2473_s21 = sld [smem:[#allocation6 + $0x4e]]  ;;  %v363_v37 = vadd.f32 %v362_v23, %v359_v22  ;;  %v549_v22 = vmul.f32 %v548_v9, %v2288_v51 }
 0x132   : > { %s2477_s13 = sld [smem:[#allocation6 + $0x58]] }
 0x133   : > { %v404_v24 = vstv %s3457_s6  ;;  %s3460_s7 = sld [smem:[#allocation61_spill]] }
 0x134   : > { %v365_v25 = vstv %s3458_s3  ;;  %s2481_s29 = sld [smem:[#allocation6 + $0x62]]  ;;  %v405_v34 = vmul.f32 %v404_v24, %v2403_v18 }
 0x135   : > { %s3462_s22 = sld [smem:[#allocation63_spill]]  ;;  %v366_v38 = vmul.f32 %v365_v25, %v2442_v53  ;;  %v552_v25 = vstv %s2358_s30 }
 0x136   : > { %s2486_s15 = sld [smem:[#allocation6 + $0x6c]]  ;;  %v406_v49 = vadd.f32 %v405_v34, %v402_v33 }
 0x137   : > { %s3464_s6 = sld [smem:[#allocation33_spill]]  ;;  %v367_v55 = vadd.f32 %v366_v38, %v363_v37  ;;  %v550_v38 = vadd.f32 %v549_v22, %v546_v21  ;;  %v603_v21 = vstv %s2422_s16 }
 0x138   : > { %3459 = sst [smem:[#allocation46_spill]] %s2477_s13 }
 0x139   : > { %s3465_s13 = sld [smem:[#allocation34_spill]]  ;;  %v408_v39 = vstv %s3460_s7  ;;  %v2529_v10 = vmax.f32 %v367_v55, 0.0 }
 0x13a   : > { %3461 = sst [smem:[#allocation30_spill]] %s2481_s29  ;;  %v409_v50 = vmul.f32 %v408_v39, %v2442_v53  ;;  %v553_v39 = vmul.f32 %v552_v25, %v2298_v58 }
 0x13b   : > { %s2490_s3 = sld [smem:[#allocation6 + $0x76]]  ;;  %v451_v42 = vstv %s3462_s22 }
 0x13c   : > { %3463 = sst [smem:[#allocation31_spill]] %s2486_s15  ;;  %v452_v56 = vmul.f32 %v451_v42, %v2442_v53  ;;  %v410_v7 = vadd.f32 %v409_v50, %v406_v49  ;;  %v589_v42 = vadd.f32 %v588_v29, %v586_v26  ;;  %v631_v50 = vstv %s2456_s5 }
 0x13d   : > { %s3467_s29 = sld [smem:[#allocation21_spill]]  ;;  %v502_v47 = vstv %s3464_s6 }
 0x13e   : > { %s2494_s9 = sld [smem:[#allocation6 + $0x80]]  ;;  %v503_v0 = vadd.f32 %v502_v47, %v500_v43  ;;  %v453_v19 = vadd.f32 %v452_v56, %v449_v57  ;;  %v2544_v23 = vmax.f32 %v410_v7, 0.0  ;;  %v592_v43 = vmul.f32 %v591_v31, %v2288_v51 }
 0x13f   : > { %s3469_s26 = sld [smem:[#allocation22_spill]]  ;;  %v505_v48 = vstv %s3465_s13  ;;  %v595_v47 = vstv %s2413_s27  ;;  %v526_v56 = vmul.f32 %v525_v40, %v2328_v15  ;;  %v554_v57 = vadd.f32 %v553_v39, %v550_v38 }
 0x140   : > { %s2499_s15 = sld [smem:[#allocation6 + $0x27]]  ;;  %v506_v60 = vmul.f32 %v505_v48, %v2288_v51  ;;  %v2564_v36 = vmax.f32 %v453_v19, 0.0  ;;  %v629_v48 = vmul.f32 %v628_v35, %v2260_v30  ;;  %v642_v31 = vstv %s2468_s14 }
 0x141   : > { %3466 = sst [smem:[#allocation38_spill]] %s2490_s3  ;;  %v604_v39 = vmul.f32 %v603_v21, %v2310_v2 }
 0x142   : > { %s2504_s20 = sld [smem:[#allocation6 + $0x8b]]  ;;  %v507_v16 = vadd.f32 %v506_v60, %v503_v0  ;;  %v529_v0 = vstv %s2326_s0  ;;  %v560_v60 = vstv %s2368_s12  ;;  %v632_v5 = vadd.f32 %v631_v50, %v629_v48 }
 0x143   : > { %v482_v52 = vstv %s3467_s29  ;;  %s2509_s7 = sld [smem:[#allocation6 + $0x31]] }
 0x144   : > { %3468 = sst [smem:[#allocation47_spill]] %s2494_s9  ;;  %v483_v63 = vmul.f32 %v482_v52, %v2328_v15  ;;  %v511_v32 = vadd.f32 %v510_v17, %v507_v16  ;;  %v634_v52 = vstv %s2460_s10 }
 0x145   : > { %s2512_s22 = sld [smem:[#allocation6 + $0x3b]]  ;;  %v486_v59 = vstv %s3469_s26  ;;  %v635_v7 = vmul.f32 %v634_v52, %v2288_v51 }
 0x146   : > { %s3470_s13 = sld [smem:[#allocation32_spill]]  ;;  %v487_v11 = vmul.f32 %v486_v59, %v2364_v44  ;;  %v484_v20 = vadd.f32 %v483_v63, %v480_v62  ;;  %v671_v54 = vstv %s2499_s15  ;;  %v557_v59 = vmul.f32 %v556_v41, %v2304_v61 }
 0x147   : > { %s2516_s6 = sld [smem:[#allocation6 + $0x45]]  ;;  %v593_v62 = vadd.f32 %v592_v43, %v589_v42  ;;  %v596_v63 = vmul.f32 %v595_v47, %v2298_v58  ;;  %v672_v8 = vmul.f32 %v671_v54, %v2260_v30  ;;  %v636_v22 = vadd.f32 %v635_v7, %v632_v5 }
 0x148   : > { %s3471_s29 = sld [smem:[#allocation23_spill]]  ;;  %v488_v37 = vadd.f32 %v487_v11, %v484_v20  ;;  %v638_v11 = vstv %s2464_s17  ;;  %v558_v17 = vadd.f32 %v557_v59, %v554_v57  ;;  %v600_v20 = vmul.f32 %v599_v1, %v2304_v61 }
 0x149   : > { %s3472_s18 = sld [smem:[#allocation24_spill]]  ;;  %v677_v13 = vstv %s2509_s7  ;;  %v597_v30 = vadd.f32 %v596_v63, %v593_v62  ;;  %v643_v41 = vmul.f32 %v642_v31, %v2304_v61  ;;  %v646_v47 = vstv %s2473_s21 }
 0x14a   : > { %s2521_s9 = sld [smem:[#allocation6 + $0x4f]]  ;;  %v678_v26 = vmul.f32 %v677_v13, %v2288_v51 }
 0x14b   : > { %s2527_s26 = sld [smem:[#allocation6 + $0x59]]  ;;  %v601_v38 = vadd.f32 %v600_v20, %v597_v30 }
 0x14c   : > { %v490_v12 = vstv %s3470_s13  ;;  %s2534_s23 = sld [smem:[#allocation6 + $0x63]] }
 0x14d   : > { %s2539_s28 = sld [smem:[#allocation6 + $0x6d]]  ;;  %v491_v24 = vmul.f32 %v490_v12, %v2403_v18  ;;  %v674_v12 = vstv %s2504_s20  ;;  %v685_v48 = vstv %s2516_s6 }
 0x14e   : > { %v494_v14 = vstv %s3471_s29  ;;  %s3473_s1 = sld [smem:[#allocation25_spill]]  ;;  %v675_v25 = vadd.f32 %v674_v12, %v672_v8  ;;  %v686_v62 = vmul.f32 %v685_v48, %v2304_v61 }
 0x14f   : > { %v513_v3 = vstv %s3472_s18  ;;  %s3474_s3 = sld [smem:[#allocation26_spill]]  ;;  %v2552_v27 = vmul.f32 %v494_v14, %v2442_v53  ;;  %v492_v55 = vadd.f32 %v491_v24, %v488_v37  ;;  %v530_v14 = vmul.f32 %v529_v0, %v2364_v44 }
 0x150   : > { %s2542_s8 = sld [smem:[#allocation6 + $0x77]]  ;;  %v514_v28 = vmul.f32 %v513_v3, %v2304_v61  ;;  %v561_v3 = vmul.f32 %v560_v60, %v2310_v2  ;;  %v639_v24 = vmul.f32 %v638_v11, %v2298_v58  ;;  %v679_v42 = vadd.f32 %v678_v26, %v675_v25 }
 0x151   : > { %s2549_s13 = sld [smem:[#allocation6 + $0x81]]  ;;  %v647_v0 = vmul.f32 %v646_v47, %v2310_v2  ;;  %v689_v5 = vstv %s2521_s9  ;;  %v693_v21 = vstv %s2527_s26 }
 0x152   : > { %s2557_s29 = sld [smem:[#allocation6 + $0x8c]]  ;;  %v515_v49 = vadd.f32 %v514_v28, %v511_v32  ;;  %v496_v28 = vadd.f32 %v2552_v27, %v492_v55  ;;  %v681_v32 = vstv %s2512_s22  ;;  %v562_v35 = vadd.f32 %v561_v3, %v558_v17 }
 0x153   : > { %s2562_s30 = sld [smem:[#allocation6 + $0xf0]]  ;;  %v640_v40 = vadd.f32 %v639_v24, %v636_v22  ;;  %v682_v43 = vmul.f32 %v681_v32, %v2298_v58  ;;  %v605_v55 = vadd.f32 %v604_v39, %v601_v38  ;;  %v690_v30 = vmul.f32 %v689_v5, %v2310_v2 }
 0x154   : > { %v517_v33 = vstv %s3473_s1  ;;  %s2567_s24 = sld [smem:[#allocation6 + $0x96]]  ;;  %v697_v39 = vstv %s2534_s23 }
 0x155   : > { %v521_v34 = vstv %s3474_s3  ;;  %s2572_s4 = sld [smem:[#allocation6 + $0xa0]]  ;;  %v518_v45 = vmul.f32 %v517_v33, %v2310_v2  ;;  %v644_v59 = vadd.f32 %v643_v41, %v640_v40  ;;  %v683_v60 = vadd.f32 %v682_v43, %v679_v42 }
 0x156   : > { %v522_v46 = vmul.f32 %v521_v34, %v2312_v4  ;;  %s2578_s11 = sld [smem:[#allocation6 + $0xaa]] }
 0x157   : > { %s2583_s19 = sld [smem:[#allocation6 + $0xb4]]  ;;  %v519_v9 = vadd.f32 %v518_v45, %v515_v49  ;;  %v2644_v49 = vmax.f32 %v496_v28, 0.0  ;;  %v648_v17 = vadd.f32 %v647_v0, %v644_v59 }
 0x158   : > { %s2587_s2 = sld [smem:[#allocation6 + $0xbe]]  ;;  %v714_v54 = vstv %s2557_s29 }
 0x159   : > { %s3475_s27 = sld [smem:[#allocation35_spill]]  ;;  %v523_v29 = vadd.f32 %v522_v46, %v519_v9  ;;  %v715_v7 = vmul.f32 %v714_v54, %v2523_v6  ;;  %v717_v11 = vstv %s2562_s30 }
 0x15a   : > { %s2592_s5 = sld [smem:[#allocation6 + $0xc8]]  ;;  %v720_v12 = vstv %s2567_s24 }
 0x15b   : > { %s3476_s10 = sld [smem:[#allocation44_spill]]  ;;  %v527_v45 = vadd.f32 %v526_v56, %v523_v29  ;;  %v718_v22 = vadd.f32 %v717_v11, %v715_v7  ;;  %v721_v24 = vmul.f32 %v720_v12, %v2529_v10  ;;  %v724_v29 = vstv %s2572_s4 }
 0x15c   : > { %s2597_s15 = sld [smem:[#allocation6 + $0xd2]]  ;;  %v725_v40 = vmul.f32 %v724_v29, %v2544_v23 }
 0x15d   : > { %s2602_s0 = sld [smem:[#allocation6 + $0xdc]]  ;;  %v531_v63 = vadd.f32 %v530_v14, %v527_v45  ;;  %v728_v45 = vstv %s2578_s11 }
 0x15e   : > { %s2607_s12 = sld [smem:[#allocation6 + $0xe6]]  ;;  %v729_v59 = vmul.f32 %v728_v45, %v2564_v36 }
 0x15f   : > { %v533_v16 = vstv %s3475_s27  ;;  %s3477_s25 = sld [smem:[#allocation43_spill]] }
 0x160   : > { %s2612_s17 = sld [smem:[#allocation6 + $0x8d]]  ;;  %v534_v33 = vmul.f32 %v533_v16, %v2403_v18 }
 0x161   : > { %v564_v19 = vstv %s3476_s10  ;;  %s3478_s3 = sld [smem:[#allocation27_spill]] }
 0x162   : > { %s3479_s20 = sld [smem:[#allocation54_spill]]  ;;  %v565_v37 = vmul.f32 %v564_v19, %v2312_v4  ;;  %v687_v19 = vadd.f32 %v686_v62, %v683_v60  ;;  %v535_v25 = vadd.f32 %v534_v33, %v531_v63  ;;  %v732_v62 = vstv %s2583_s19 }
 0x163   : > { %s2616_s7 = sld [smem:[#allocation6 + $0xf1]] }
 0x164   : > { %s2621_s18 = sld [smem:[#allocation6 + $0x97]]  ;;  %v566_v50 = vadd.f32 %v565_v37, %v562_v35  ;;  %v691_v33 = vadd.f32 %v690_v30, %v687_v19 }
 0x165   : > { %v537_v34 = vstv %s3477_s25  ;;  %s2626_s16 = sld [smem:[#allocation6 + $0xa1]] }
 0x166   : > { %s2631_s14 = sld [smem:[#allocation6 + $0xab]]  ;;  %v2638_v46 = vmul.f32 %v537_v34, %v2442_v53 }
 0x167   : > { %v568_v51 = vstv %s3478_s3  ;;  %s3480_s22 = sld [smem:[#allocation28_spill]] }
 0x168   : > { %v607_v27 = vstv %s3479_s20  ;;  %s3481_s1 = sld [smem:[#allocation45_spill]]  ;;  %v569_v52 = vmul.f32 %v568_v51, %v2328_v15  ;;  %v694_v51 = vmul.f32 %v693_v21, %v2312_v4  ;;  %v539_v41 = vadd.f32 %v2638_v46, %v535_v25 }
 0x169   : > { %s2635_s27 = sld [smem:[#allocation6 + $0xb5]]  ;;  %v608_v56 = vmul.f32 %v607_v27, %v2312_v4  ;;  %v722_v27 = vadd.f32 %v721_v24, %v718_v22  ;;  %v760_v5 = vstv %s2616_s7 }
 0x16a   : > { %s2642_s10 = sld [smem:[#allocation6 + $0xbf]]  ;;  %v570_v8 = vadd.f32 %v569_v52, %v566_v50  ;;  %v757_v50 = vstv %s2612_s17  ;;  %v695_v46 = vadd.f32 %v694_v51, %v691_v33  ;;  %v2720_v0 = vmax.f32 %v539_v41, 0.0 }
 0x16b   : > { %s3482_s25 = sld [smem:[#allocation46_spill]]  ;;  %v609_v61 = vadd.f32 %v608_v56, %v605_v55  ;;  %v701_v56 = vstv %s2539_s28  ;;  %v758_v63 = vmul.f32 %v757_v50, %v2523_v6  ;;  %v763_v7 = vstv %s2621_s18 }
 0x16c   : > { %s2648_s3 = sld [smem:[#allocation6 + $0xc9]]  ;;  %v702_v12 = vmul.f32 %v701_v56, %v2364_v44  ;;  %v764_v19 = vmul.f32 %v763_v7, %v2529_v10  ;;  %v752_v7 = vstv %s2607_s12 }
 0x16d   : > { %v572_v58 = vstv %s3480_s22  ;;  %s2653_s21 = sld [smem:[#allocation6 + $0xd3]] }
 0x16e   : > { %v611_v57 = vstv %s3481_s1  ;;  %s3484_s6 = sld [smem:[#allocation36_spill]]  ;;  %v573_v9 = vmul.f32 %v572_v58, %v2364_v44  ;;  %v698_v58 = vmul.f32 %v697_v39, %v2328_v15 }
 0x16f   : > { %s3485_s20 = sld [smem:[#allocation29_spill]]  ;;  %v612_v16 = vmul.f32 %v611_v57, %v2328_v15  ;;  %v726_v57 = vadd.f32 %v725_v40, %v722_v27 }
 0x170   : > { %s2657_s29 = sld [smem:[#allocation6 + $0xdd]]  ;;  %v574_v26 = vadd.f32 %v573_v9, %v570_v8  ;;  %v699_v11 = vadd.f32 %v698_v58, %v695_v46  ;;  %v748_v58 = vstv %s2602_s0 }
 0x171   : > { %v650_v1 = vstv %s3482_s25  ;;  %s2662_s22 = sld [smem:[#allocation6 + $0xe7]]  ;;  %v613_v2 = vadd.f32 %v612_v16, %v609_v61  ;;  %v705_v61 = vstv %s2542_s8  ;;  %v730_v16 = vadd.f32 %v729_v59, %v726_v57 }
 0x172   : > { %s3488_s1 = sld [smem:[#allocation30_spill]]  ;;  %v651_v3 = vmul.f32 %v650_v1, %v2312_v4  ;;  %v703_v24 = vadd.f32 %v702_v12, %v699_v11  ;;  %v706_v25 = vmul.f32 %v705_v61, %v2403_v18  ;;  %v779_v57 = vstv %s2642_s10 }
 0x173   : > { %3483 = sst [smem:[#allocation39_spill]] %s2653_s21  ;;  %v783_v12 = vstv %s2648_s3 }
 0x174   : > { %s2667_s21 = sld [smem:[#allocation6 + $0x8e]]  ;;  %v576_v13 = vstv %s3484_s6  ;;  %v652_v35 = vadd.f32 %v651_v3, %v648_v17  ;;  %v736_v17 = vstv %s2587_s2  ;;  %v761_v3 = vadd.f32 %v760_v5, %v758_v63 }
 0x175   : > { %v615_v14 = vstv %s3485_s20  ;;  %s2672_s9 = sld [smem:[#allocation6 + $0xf2]]  ;;  %v577_v28 = vmul.f32 %v576_v13, %v2403_v18  ;;  %v737_v29 = vmul.f32 %v736_v17, %v2720_v0  ;;  %v707_v33 = vadd.f32 %v706_v25, %v703_v24 }
 0x176   : > { %3486 = sst [smem:[#allocation56_spill]] %s2657_s29  ;;  %v616_v32 = vmul.f32 %v615_v14, %v2364_v44  ;;  %v733_v14 = vmul.f32 %v732_v62, %v2644_v49 }
 0x177   : > { %3487 = sst [smem:[#allocation48_spill]] %s2662_s22  ;;  %v578_v42 = vadd.f32 %v577_v28, %v574_v26  ;;  %v709_v26 = vstv %s2549_s13 }
 0x178   : > { %s3489_s25 = sld [smem:[#allocation53_spill]]  ;;  %v654_v20 = vstv %s3488_s1  ;;  %v617_v4 = vadd.f32 %v616_v32, %v613_v2  ;;  %v734_v28 = vadd.f32 %v733_v14, %v730_v16  ;;  %v740_v2 = vstv %s2592_s5 }
 0x179   : > { %s3490_s22 = sld [smem:[#allocation37_spill]]  ;;  %v655_v37 = vmul.f32 %v654_v20, %v2328_v15  ;;  %v767_v20 = vstv %s2626_s16  ;;  %v765_v32 = vadd.f32 %v764_v19, %v761_v3  ;;  %v710_v51 = vmul.f32 %v709_v26, %v2442_v53 }
 0x17a   : > { %s2676_s30 = sld [smem:[#allocation6 + $0x98]]  ;;  %v738_v39 = vadd.f32 %v737_v29, %v734_v28 }
 0x17b   : > { %s2681_s24 = sld [smem:[#allocation6 + $0xa2]]  ;;  %v656_v52 = vadd.f32 %v655_v37, %v652_v35  ;;  %v803_v40 = vstv %s2672_s9  ;;  %v711_v50 = vadd.f32 %v710_v51, %v707_v33 }
 0x17c   : > { %s3491_s6 = sld [smem:[#allocation31_spill]] }
 0x17d   : > { %s2685_s20 = sld [smem:[#allocation6 + $0xac]]  ;;  %v2803_v63 = vmax.f32 %v711_v50, 0.0 }
 0x17e   : > { %v580_v31 = vstv %s3489_s25  ;;  %s2690_s26 = sld [smem:[#allocation6 + $0xb6]] }
 0x17f   : > { %v619_v34 = vstv %s3490_s22  ;;  %s3492_s1 = sld [smem:[#allocation55_spill]]  ;;  %v581_v43 = vmul.f32 %v580_v31, %v2442_v53  ;;  %v800_v31 = vstv %s2667_s21 }
 0x180   : > { %s2694_s29 = sld [smem:[#allocation6 + $0xc0]]  ;;  %v620_v47 = vmul.f32 %v619_v34, %v2403_v18  ;;  %v768_v34 = vmul.f32 %v767_v20, %v2544_v23  ;;  %v806_v41 = vstv %s2676_s30 }
 0x181   : > { %s2699_s4 = sld [smem:[#allocation6 + $0xca]]  ;;  %v582_v60 = vadd.f32 %v581_v43, %v578_v42  ;;  %v744_v42 = vstv %s2597_s15  ;;  %v810_v46 = vstv %s2681_s24 }
 0x182   : > { %v658_v38 = vstv %s3491_s6  ;;  %s3493_s22 = sld [smem:[#allocation38_spill]]  ;;  %v621_v15 = vadd.f32 %v620_v47, %v617_v4  ;;  %v769_v43 = vadd.f32 %v768_v34, %v765_v32 }
 0x183   : > { %s2704_s25 = sld [smem:[#allocation6 + $0xd4]]  ;;  %v659_v54 = vmul.f32 %v658_v38, %v2364_v44  ;;  %v2744_v30 = vmax.f32 %v582_v60, 0.0  ;;  %v801_v38 = vmul.f32 %v800_v31, %v2523_v6  ;;  %v811_v60 = vmul.f32 %v810_v46, %v2544_v23 }
 0x184   : > { %s2709_s23 = sld [smem:[#allocation6 + $0xde]]  ;;  %v814_v5 = vstv %s2685_s20  ;;  %v818_v20 = vstv %s2690_s26 }
 0x185   : > { %v623_v48 = vstv %s3492_s1  ;;  %s2713_s6 = sld [smem:[#allocation6 + $0xe8]]  ;;  %v660_v8 = vadd.f32 %v659_v54, %v656_v52  ;;  %v741_v27 = vmul.f32 %v740_v2, %v2744_v30  ;;  %v804_v47 = vadd.f32 %v803_v40, %v801_v38 }
 0x186   : > { %s2718_s11 = sld [smem:[#allocation6 + $0x8f]]  ;;  %v624_v1 = vmul.f32 %v623_v48, %v2442_v53  ;;  %v807_v48 = vmul.f32 %v806_v41, %v2529_v10  ;;  %v815_v14 = vmul.f32 %v814_v5, %v2564_v36  ;;  %v784_v24 = vmul.f32 %v783_v12, %v2744_v30 }
 0x187   : > { %s3494_s17 = sld [smem:[#allocation47_spill]]  ;;  %v742_v52 = vadd.f32 %v741_v27, %v738_v39  ;;  %v819_v34 = vmul.f32 %v818_v20, %v2644_v49  ;;  %v826_v46 = vstv %s2699_s4 }
 0x188   : > { %v662_v55 = vstv %s3493_s22  ;;  %s2724_s1 = sld [smem:[#allocation6 + $0xf3]]  ;;  %v625_v44 = vadd.f32 %v624_v1, %v621_v15  ;;  %v808_v59 = vadd.f32 %v807_v48, %v804_v47 }
 0x189   : > { %s2729_s28 = sld [smem:[#allocation6 + $0x99]]  ;;  %v663_v9 = vmul.f32 %v662_v55, %v2403_v18  ;;  %v771_v18 = vstv %s2631_s14 }
 0x18a   : > { %s2733_s19 = sld [smem:[#allocation6 + $0xa3]]  ;;  %v2762_v35 = vmax.f32 %v625_v44, 0.0  ;;  %v772_v45 = vmul.f32 %v771_v18, %v2564_v36  ;;  %v812_v16 = vadd.f32 %v811_v60, %v808_v59  ;;  %v753_v44 = vmul.f32 %v752_v7, %v2803_v63 }
 0x18b   : > { %s2738_s22 = sld [smem:[#allocation6 + $0xad]]  ;;  %v664_v21 = vadd.f32 %v663_v9, %v660_v8  ;;  %v780_v9 = vmul.f32 %v779_v57, %v2720_v0  ;;  %v827_v7 = vmul.f32 %v826_v46, %v2744_v30 }
 0x18c   : > { %s2742_s7 = sld [smem:[#allocation6 + $0xb7]]  ;;  %v745_v54 = vmul.f32 %v744_v42, %v2762_v35  ;;  %v773_v55 = vadd.f32 %v772_v45, %v769_v43  ;;  %v843_v62 = vstv %s2718_s11  ;;  %v816_v32 = vadd.f32 %v815_v14, %v812_v16 }
 0x18d   : > { %v666_v13 = vstv %s3494_s17  ;;  %s2747_s18 = sld [smem:[#allocation6 + $0xc1]]  ;;  %v844_v61 = vmul.f32 %v843_v62, %v2523_v6 }
 0x18e   : > { %v667_v22 = vmul.f32 %v666_v13, %v2442_v53  ;;  %s2751_s8 = sld [smem:[#allocation6 + $0xcb]]  ;;  %v775_v53 = vstv %s2635_s27  ;;  %v746_v15 = vadd.f32 %v745_v54, %v742_v52  ;;  %v846_v17 = vstv %s2724_s1 }
 0x18f   : > { %s2756_s2 = sld [smem:[#allocation6 + $0xd5]]  ;;  %v776_v56 = vmul.f32 %v775_v53, %v2644_v49  ;;  %v849_v3 = vstv %s2729_s28  ;;  %v847_v29 = vadd.f32 %v846_v17, %v844_v61  ;;  %v820_v48 = vadd.f32 %v819_v34, %v816_v32 }
 0x190   : > { %s2760_s16 = sld [smem:[#allocation6 + $0xdf]]  ;;  %v668_v37 = vadd.f32 %v667_v22, %v664_v21  ;;  %v850_v31 = vmul.f32 %v849_v3, %v2529_v10  ;;  %v853_v18 = vstv %s2733_s19 }
 0x191   : > { %s2765_s13 = sld [smem:[#allocation6 + $0xe9]]  ;;  %v777_v8 = vadd.f32 %v776_v56, %v773_v55  ;;  %v854_v43 = vmul.f32 %v853_v18, %v2544_v23  ;;  %v857_v52 = vstv %s2738_s22 }
 0x192   : > { %s2769_s21 = sld [smem:[#allocation6 + $0x90]]  ;;  %v2783_v4 = vmax.f32 %v668_v37, 0.0  ;;  %v822_v37 = vstv %s2694_s29  ;;  %v851_v42 = vadd.f32 %v850_v31, %v847_v29 }
 0x193   : > { %s2774_s5 = sld [smem:[#allocation6 + $0xf4]]  ;;  %v781_v22 = vadd.f32 %v780_v9, %v777_v8  ;;  %v823_v50 = vmul.f32 %v822_v37, %v2720_v0  ;;  %v830_v8 = vstv %s2704_s25  ;;  %v861_v9 = vstv %s2742_s7 }
 0x194   : > { %s2778_s14 = sld [smem:[#allocation6 + $0x9a]]  ;;  %v749_v1 = vmul.f32 %v748_v58, %v2783_v4  ;;  %v855_v62 = vadd.f32 %v854_v43, %v851_v42  ;;  %v862_v20 = vmul.f32 %v861_v9, %v2644_v49 }
 0x195   : > { %s2781_s17 = sld [smem:[#allocation6 + $0xa4]]  ;;  %v785_v27 = vadd.f32 %v784_v24, %v781_v22  ;;  %v824_v5 = vadd.f32 %v823_v50, %v820_v48  ;;  %v834_v24 = vstv %s2709_s23  ;;  %v873_v48 = vstv %s2756_s2 }
 0x196   : > { %s2786_s9 = sld [smem:[#allocation6 + $0xae]]  ;;  %v750_v19 = vadd.f32 %v749_v1, %v746_v15  ;;  %v858_v15 = vmul.f32 %v857_v52, %v2564_v36 }
 0x197   : > { %3495 = sst [smem:[#allocation40_spill]] %s2765_s13  ;;  %v828_v22 = vadd.f32 %v827_v7, %v824_v5 }
 0x198   : > { %s2790_s15 = sld [smem:[#allocation6 + $0xb8]]  ;;  %v886_v11 = vstv %s2769_s21  ;;  %v754_v39 = vadd.f32 %v753_v44, %v750_v19  ;;  %v831_v19 = vmul.f32 %v830_v8, %v2762_v35  ;;  %v859_v44 = vadd.f32 %v858_v15, %v855_v62 }
 0x199   : > { %s2794_s27 = sld [smem:[#allocation6 + $0xc2]]  ;;  %v887_v21 = vmul.f32 %v886_v11, %v2523_v6  ;;  %v889_v25 = vstv %s2774_s5  ;;  %v877_v8 = vstv %s2760_s16 }
 0x19a   : > { %s2797_s30 = sld [smem:[#allocation6 + $0xcc]]  ;;  %v892_v26 = vstv %s2778_s14  ;;  %v2880_v11 = vmax.f32 %v754_v39, 0.0  ;;  %v832_v43 = vadd.f32 %v831_v19, %v828_v22 }
 0x19b   : > { %s3496_s13 = sld [smem:[#allocation39_spill]]  ;;  %v890_v33 = vadd.f32 %v889_v25, %v887_v21  ;;  %v893_v51 = vmul.f32 %v892_v26, %v2529_v10  ;;  %v896_v40 = vstv %s2781_s17  ;;  %v865_v25 = vstv %s2747_s18 }
 0x19c   : > { %s2801_s24 = sld [smem:[#allocation6 + $0xd6]]  ;;  %v897_v55 = vmul.f32 %v896_v40, %v2544_v23  ;;  %v900_v57 = vstv %s2786_s9  ;;  %v869_v40 = vstv %s2751_s8 }
 0x19d   : > { %s2807_s0 = sld [smem:[#allocation6 + $0xe0]]  ;;  %v894_v58 = vadd.f32 %v893_v51, %v890_v33  ;;  %v901_v61 = vmul.f32 %v900_v57, %v2564_v36  ;;  %v835_v33 = vmul.f32 %v834_v24, %v2783_v4  ;;  %v863_v51 = vadd.f32 %v862_v20, %v859_v44 }
 0x19e   : > { %s2812_s10 = sld [smem:[#allocation6 + $0xea]]  ;;  %v904_v14 = vstv %s2790_s15 }
 0x19f   : > { %s2817_s11 = sld [smem:[#allocation6 + $0x91]]  ;;  %v905_v29 = vmul.f32 %v904_v14, %v2644_v49  ;;  %v908_v32 = vstv %s2794_s27  ;;  %v836_v15 = vadd.f32 %v835_v33, %v832_v43 }
 0x1a0   : > { %s3497_s12 = sld [smem:[#allocation56_spill]]  ;;  %v912_v50 = vstv %s2797_s30 }
 0x1a1   : > { %v787_v13 = vstv %s3496_s13  ;;  %s2822_s20 = sld [smem:[#allocation6 + $0xf5]]  ;;  %v913_v7 = vmul.f32 %v912_v50, %v2744_v30 }
 0x1a2   : > { %s2827_s3 = sld [smem:[#allocation6 + $0x9b]]  ;;  %v788_v28 = vmul.f32 %v787_v13, %v2762_v35  ;;  %v898_v13 = vadd.f32 %v897_v55, %v894_v58  ;;  %v870_v55 = vmul.f32 %v869_v40, %v2744_v30  ;;  %v916_v57 = vstv %s2801_s24 }
 0x1a3   : > { %s2832_s1 = sld [smem:[#allocation6 + $0xa5]] }
 0x1a4   : > { %s2836_s26 = sld [smem:[#allocation6 + $0xaf]]  ;;  %v789_v56 = vadd.f32 %v788_v28, %v785_v27  ;;  %v902_v28 = vadd.f32 %v901_v61, %v898_v13  ;;  %v838_v27 = vstv %s2713_s6 }
 0x1a5   : > { %s2841_s28 = sld [smem:[#allocation6 + $0xb9]]  ;;  %v929_v38 = vstv %s2817_s11  ;;  %v839_v46 = vmul.f32 %v838_v27, %v2803_v63 }
 0x1a6   : > { %v791_v2 = vstv %s3497_s12  ;;  %s2846_s13 = sld [smem:[#allocation6 + $0xc3]]  ;;  %v930_v41 = vmul.f32 %v929_v38, %v2523_v6  ;;  %v866_v38 = vmul.f32 %v865_v25, %v2720_v0  ;;  %v920_v25 = vstv %s2807_s0 }
 0x1a7   : > { %s3498_s21 = sld [smem:[#allocation48_spill]]  ;;  %v932_v45 = vstv %s2822_s20  ;;  %v792_v47 = vmul.f32 %v791_v2, %v2783_v4  ;;  %v840_v50 = vadd.f32 %v839_v46, %v836_v15 }
 0x1a8   : > { %s2850_s5 = sld [smem:[#allocation6 + $0xcd]]  ;;  %v935_v53 = vstv %s2827_s3  ;;  %v933_v59 = vadd.f32 %v932_v45, %v930_v41  ;;  %v906_v45 = vadd.f32 %v905_v29, %v902_v28  ;;  %v867_v58 = vadd.f32 %v866_v38, %v863_v51 }
 0x1a9   : > { %s2855_s29 = sld [smem:[#allocation6 + $0xd7]]  ;;  %v936_v60 = vmul.f32 %v935_v53, %v2529_v10  ;;  %v939_v1 = vstv %s2832_s1  ;;  %v2888_v16 = vadd.f32 %v792_v47, %v789_v56  ;;  %v909_v53 = vmul.f32 %v908_v32, %v2720_v0 }
 0x1aa   : > { %s2860_s19 = sld [smem:[#allocation6 + $0xe1]]  ;;  %v940_v3 = vmul.f32 %v939_v1, %v2544_v23  ;;  %v943_v21 = vstv %s2836_s26  ;;  %v874_v1 = vmul.f32 %v873_v48, %v2762_v35  ;;  %v871_v14 = vadd.f32 %v870_v55, %v867_v58 }
 0x1ab   : > { %s2865_s14 = sld [smem:[#allocation6 + $0xeb]]  ;;  %v937_v17 = vadd.f32 %v936_v60, %v933_v59  ;;  %v944_v18 = vmul.f32 %v943_v21, %v2564_v36  ;;  %v947_v39 = vstv %s2841_s28  ;;  %v910_v5 = vadd.f32 %v909_v53, %v906_v45 }
 0x1ac   : > { %s2869_s17 = sld [smem:[#allocation6 + $0x92]]  ;;  %v951_v56 = vstv %s2846_s13  ;;  %v875_v40 = vadd.f32 %v874_v1, %v871_v14  ;;  %v924_v53 = vstv %s2812_s10 }
 0x1ad   : > { %v795_v54 = vstv %s3498_s21  ;;  %s2873_s22 = sld [smem:[#allocation6 + $0xf6]]  ;;  %v941_v34 = vadd.f32 %v940_v3, %v937_v17  ;;  %v952_v13 = vmul.f32 %v951_v56, %v2720_v0  ;;  %v917_v17 = vmul.f32 %v916_v57, %v2762_v35 }
 0x1ae   : > { %s2878_s4 = sld [smem:[#allocation6 + $0x9c]]  ;;  %v2883_v12 = vmul.f32 %v795_v54, %v2803_v63  ;;  %v948_v54 = vmul.f32 %v947_v39, %v2644_v49  ;;  %v955_v61 = vstv %s2850_s5  ;;  %v914_v24 = vadd.f32 %v913_v7, %v910_v5 }
 0x1af   : > { %s2886_s9 = sld [smem:[#allocation6 + $0xa6]]  ;;  %v945_v52 = vadd.f32 %v944_v18, %v941_v34  ;;  %v878_v34 = vmul.f32 %v877_v8, %v2783_v4 }
 0x1b0   : > { %s2892_s25 = sld [smem:[#allocation6 + $0xb0]]  ;;  %v797_v45 = vadd.f32 %v2883_v12, %v2888_v16 }
 0x1b1   : > { %s2897_s7 = sld [smem:[#allocation6 + $0xba]]  ;;  %v949_v9 = vadd.f32 %v948_v54, %v945_v52  ;;  %v963_v54 = vstv %s2860_s19  ;;  %v879_v57 = vadd.f32 %v878_v34, %v875_v40  ;;  %v967_v1 = vstv %s2865_s14 }
 0x1b2   : > { %v972_v26 = vstv %s2869_s17  ;;  %s2902_s15 = sld [smem:[#allocation6 + $0xc4]]  ;;  %v964_v15 = vmul.f32 %v963_v54, %v2783_v4  ;;  %v3045_v40 = vmax.f32 %v840_v50, 0.0 }
 0x1b3   : > { %v973_v31 = vmul.f32 %v972_v26, %v2523_v6  ;;  %v975_v2 = vstv %s2873_s22  ;;  %s2907_s11 = sld [smem:[#allocation6 + $0xce]]  ;;  %v956_v26 = vmul.f32 %v955_v61, %v2744_v30  ;;  %v953_v29 = vadd.f32 %v952_v13, %v949_v9 }
 0x1b4   : > { %v978_v37 = vstv %s2878_s4  ;;  %s2912_s23 = sld [smem:[#allocation6 + $0xd8]] }
 0x1b5   : > { %s2917_s18 = sld [smem:[#allocation6 + $0xe2]]  ;;  %v976_v41 = vadd.f32 %v975_v2, %v973_v31  ;;  %v979_v42 = vmul.f32 %v978_v37, %v2529_v10  ;;  %v982_v47 = vstv %s2886_s9  ;;  %v959_v37 = vstv %s2855_s29 }
 0x1b6   : > { %s2922_s27 = sld [smem:[#allocation6 + $0xec]]  ;;  %v983_v60 = vmul.f32 %v982_v47, %v2544_v23  ;;  %v986_v62 = vstv %s2892_s25  ;;  %v957_v47 = vadd.f32 %v956_v26, %v953_v29  ;;  %v960_v48 = vmul.f32 %v959_v37, %v2762_v35 }
 0x1b7   : > { %s2926_s12 = sld [smem:[#allocation6 + $0x93]]  ;;  %v980_v59 = vadd.f32 %v979_v42, %v976_v41  ;;  %v987_v3 = vmul.f32 %v986_v62, %v2564_v36  ;;  %v990_v20 = vstv %s2897_s7  ;;  %v918_v41 = vadd.f32 %v917_v17, %v914_v24 }
 0x1b8   : > { %s2931_s6 = sld [smem:[#allocation6 + $0xf7]]  ;;  %v991_v33 = vmul.f32 %v990_v20, %v2644_v49  ;;  %v994_v38 = vstv %s2902_s15  ;;  %v921_v42 = vmul.f32 %v920_v25, %v2783_v4  ;;  %v961_v62 = vadd.f32 %v960_v48, %v957_v47 }
 0x1b9   : > { %s2936_s8 = sld [smem:[#allocation6 + $0x9d]]  ;;  %v984_v44 = vadd.f32 %v983_v60, %v980_v59  ;;  %v995_v58 = vmul.f32 %v994_v38, %v2720_v0  ;;  %v998_v12 = vstv %s2907_s11  ;;  %v925_v59 = vmul.f32 %v924_v53, %v2803_v63 }
 0x1ba   : > { %s2941_s2 = sld [smem:[#allocation6 + $0xa7]]  ;;  %v922_v46 = vadd.f32 %v921_v42, %v918_v41  ;;  %v999_v7 = vmul.f32 %v998_v12, %v2744_v30  ;;  %v1002_v8 = vstv %s2912_s23  ;;  %v968_v24 = vmul.f32 %v967_v1, %v2803_v63 }
 0x1bb   : > { %s2945_s30 = sld [smem:[#allocation6 + $0xb1]]  ;;  %v988_v51 = vadd.f32 %v987_v3, %v984_v44 }
 0x1bc   : > { %s2950_s24 = sld [smem:[#allocation6 + $0xbb]]  ;;  %v926_v42 = vadd.f32 %v925_v59, %v922_v46 }
 0x1bd   : > { %v1015_v19 = vstv %s2926_s12  ;;  %s2955_s20 = sld [smem:[#allocation6 + $0xc5]]  ;;  %v992_v55 = vadd.f32 %v991_v33, %v988_v51 }
 0x1be   : > { %s3499_s3 = sld [smem:[#allocation40_spill]]  ;;  %v1016_v21 = vmul.f32 %v1015_v19, %v2523_v6  ;;  %v1018_v22 = vstv %s2931_s6 }
 0x1bf   : > { %s2960_s16 = sld [smem:[#allocation6 + $0xcf]]  ;;  %v1021_v28 = vstv %s2936_s8  ;;  %v996_v61 = vadd.f32 %v995_v58, %v992_v55  ;;  %v1010_v55 = vstv %s2922_s27 }
 0x1c0   : > { %s2965_s1 = sld [smem:[#allocation6 + $0xd9]]  ;;  %v1019_v31 = vadd.f32 %v1018_v22, %v1016_v21  ;;  %v1022_v2 = vmul.f32 %v1021_v28, %v2529_v10  ;;  %v1025_v32 = vstv %s2941_s2  ;;  %v965_v22 = vadd.f32 %v964_v15, %v961_v62 }
 0x1c1   : > { %s2969_s26 = sld [smem:[#allocation6 + $0xe3]]  ;;  %v1026_v27 = vmul.f32 %v1025_v32, %v2544_v23  ;;  %v1029_v43 = vstv %s2945_s30  ;;  %v1003_v28 = vmul.f32 %v1002_v8, %v2762_v35  ;;  %v1006_v32 = vstv %s2917_s18 }
 0x1c2   : > { %s2975_s0 = sld [smem:[#allocation6 + $0xed]]  ;;  %v1023_v39 = vadd.f32 %v1022_v2, %v1019_v31  ;;  %v1030_v56 = vmul.f32 %v1029_v43, %v2564_v36  ;;  %v1033_v60 = vstv %s2950_s24  ;;  %v1000_v33 = vadd.f32 %v999_v7, %v996_v61 }
 0x1c3   : > { %s2979_s28 = sld [smem:[#allocation6 + $0x94]]  ;;  %v1034_v17 = vmul.f32 %v1033_v60, %v2644_v49  ;;  %v1037_v19 = vstv %s2955_s20  ;;  %v969_v43 = vadd.f32 %v968_v24, %v965_v22 }
 0x1c4   : > { %v881_v18 = vstv %s3499_s3  ;;  %s2983_s13 = sld [smem:[#allocation6 + $0xf8]]  ;;  %v1027_v16 = vadd.f32 %v1026_v27, %v1023_v39  ;;  %v3043_v27 = vmax.f32 %v797_v45, 0.0  ;;  %v1007_v45 = vmul.f32 %v1006_v32, %v2783_v4 }
 0x1c5   : > { %s2989_s21 = sld [smem:[#allocation6 + $0x9e]]  ;;  %v882_v52 = vmul.f32 %v881_v18, %v2803_v63  ;;  %v1038_v18 = vmul.f32 %v1037_v19, %v2720_v0  ;;  %v1041_v51 = vstv %s2960_s16  ;;  %v1004_v58 = vadd.f32 %v1003_v28, %v1000_v33 }
 0x1c6   : > { %s2994_s5 = sld [smem:[#allocation6 + $0xa8]]  ;;  %v1031_v14 = vadd.f32 %v1030_v56, %v1027_v16  ;;  %v1042_v50 = vmul.f32 %v1041_v51, %v2744_v30  ;;  %v3098_v28 = vmax.f32 %v926_v42, 0.0 }
 0x1c7   : > { %s2998_s10 = sld [smem:[#allocation6 + $0xb2]]  ;;  %v883_v41 = vadd.f32 %v882_v52, %v879_v57  ;;  %v1045_v52 = vstv %s2965_s1  ;;  %v1049_v62 = vstv %s2969_s26 }
 0x1c8   : > { %s3002_s29 = sld [smem:[#allocation6 + $0xbc]]  ;;  %v1035_v34 = vadd.f32 %v1034_v17, %v1031_v14  ;;  %v1046_v60 = vmul.f32 %v1045_v52, %v2762_v35  ;;  %v1053_v24 = vstv %s2975_s0 }
 0x1c9   : > { %v1058_v5 = vstv %s2979_s28  ;;  %s3007_s19 = sld [smem:[#allocation6 + $0xc6]]  ;;  %v1054_v33 = vmul.f32 %v1053_v24, %v2803_v63 }
 0x1ca   : > { %v1059_v9 = vmul.f32 %v1058_v5, %v2523_v6  ;;  %v1061_v13 = vstv %s2983_s13  ;;  %s3013_s17 = sld [smem:[#allocation6 + $0xd0]]  ;;  %v1039_v54 = vadd.f32 %v1038_v18, %v1035_v34 }
 0x1cb   : > { %v1064_v3 = vstv %s2989_s21  ;;  %s3017_s14 = sld [smem:[#allocation6 + $0xda]] }
 0x1cc   : > { %v1062_v44 = vadd.f32 %v1061_v13, %v1059_v9  ;;  %v1065_v20 = vmul.f32 %v1064_v3, %v2529_v10  ;;  %v1068_v21 = vstv %s2994_s5  ;;  %s3022_s22 = sld [smem:[#allocation6 + $0xe4]]  ;;  %v1043_v5 = vadd.f32 %v1042_v50, %v1039_v54 }
 0x1cd   : > { %v1069_v25 = vmul.f32 %v1068_v21, %v2544_v23  ;;  %v1072_v26 = vstv %s2998_s10  ;;  %s3027_s4 = sld [smem:[#allocation6 + $0xee]]  ;;  %v1050_v21 = vmul.f32 %v1049_v62, %v2783_v4 }
 0x1ce   : > { %v1066_v29 = vadd.f32 %v1065_v20, %v1062_v44  ;;  %v1073_v31 = vmul.f32 %v1072_v26, %v2564_v36  ;;  %v1076_v2 = vstv %s3002_s29  ;;  %s3032_s9 = sld [smem:[#allocation6 + $0x95]]  ;;  %v1011_v20 = vmul.f32 %v1010_v55, %v2803_v63 }
 0x1cf   : > { %v1080_v37 = vstv %s3007_s19  ;;  %s3037_s25 = sld [smem:[#allocation6 + $0xf9]]  ;;  %v1077_v39 = vmul.f32 %v1076_v2, %v2644_v49 }
 0x1d0   : > { %v1070_v38 = vadd.f32 %v1069_v25, %v1066_v29  ;;  %s3041_s7 = sld [smem:[#allocation6 + $0x9f]]  ;;  %v1081_v47 = vmul.f32 %v1080_v37, %v2720_v0  ;;  %v1084_v48 = vstv %s3013_s17 }
 0x1d1   : > { %s3047_s15 = sld [smem:[#allocation6 + $0xa9]]  ;;  %v1085_v56 = vmul.f32 %v1084_v48, %v2744_v30  ;;  %v1088_v57 = vstv %s3017_s14 }
 0x1d2   : > { %v1074_v53 = vadd.f32 %v1073_v31, %v1070_v38  ;;  %s3051_s11 = sld [smem:[#allocation6 + $0xb3]]  ;;  %v1092_v13 = vstv %s3022_s22 }
 0x1d3   : > { %s3056_s23 = sld [smem:[#allocation6 + $0xbd]]  ;;  %v1093_v29 = vmul.f32 %v1092_v13, %v2783_v4  ;;  %v1096_v32 = vstv %s3027_s4 }
 0x1d4   : > { %v1078_v12 = vadd.f32 %v1077_v39, %v1074_v53  ;;  %v1101_v16 = vstv %s3032_s9  ;;  %s3060_s18 = sld [smem:[#allocation6 + $0xc7]] }
 0x1d5   : > { %v1102_v46 = vmul.f32 %v1101_v16, %v2523_v6  ;;  %v1104_v59 = vstv %s3037_s25  ;;  %s3066_s12 = sld [smem:[#allocation6 + $0xd1]]  ;;  %v1089_v6 = vmul.f32 %v1088_v57, %v2762_v35 }
 0x1d6   : > { %v1082_v15 = vadd.f32 %v1081_v47, %v1078_v12  ;;  %v1107_v1 = vstv %s3041_s7  ;;  %s3071_s27 = sld [smem:[#allocation6 + $0xdb]] }
 0x1d7   : > { %v1105_v7 = vadd.f32 %v1104_v59, %v1102_v46  ;;  %v1108_v8 = vmul.f32 %v1107_v1, %v2529_v10  ;;  %v1111_v9 = vstv %s3047_s15  ;;  %s3075_s6 = sld [smem:[#allocation6 + $0xe5]]  ;;  %v1008_v10 = vadd.f32 %v1007_v45, %v1004_v58 }
 0x1d8   : > { %v1112_v61 = vmul.f32 %v1111_v9, %v2544_v23  ;;  %v1115_v14 = vstv %s3051_s11  ;;  %s3081_s8 = sld [smem:[#allocation6 + $0xef]]  ;;  %v1086_v17 = vadd.f32 %v1085_v56, %v1082_v15  ;;  %v1047_v23 = vadd.f32 %v1046_v60, %v1043_v5 }
 0x1d9   : > { %v1109_v3 = vadd.f32 %v1108_v8, %v1105_v7  ;;  %v1116_v19 = vmul.f32 %v1115_v14, %v2564_v36  ;;  %v1119_v44 = vstv %s3056_s23  ;;  %s3085_s2 = sld [smem:[#allocation6 + $0xfa]]  ;;  %v3096_v36 = vmax.f32 %v883_v41, 0.0 }
 0x1da   : > { %v1123_v22 = vstv %s3060_s18  ;;  %s3090_s30 = sld [smem:[#allocation6 + $0x12c]]  ;;  %v1120_v26 = vmul.f32 %v1119_v44, %v2644_v49  ;;  %v1090_v2 = vadd.f32 %v1089_v6, %v1086_v17  ;;  %v3108_v49 = vmax.f32 %v969_v43, 0.0 }
 0x1db   : > { %v1113_v25 = vadd.f32 %v1112_v61, %v1109_v3  ;;  %s3094_s24 = sld [smem:[#allocation6 + $0xff]]  ;;  %v1127_v31 = vstv %s3066_s12  ;;  %v1124_v18 = vmul.f32 %v1123_v22, %v2720_v0  ;;  %v1012_v37 = vadd.f32 %v1011_v20, %v1008_v10 }
 0x1dc   : > { %s3102_s20 = sld [smem:[#allocation6 + $0x104]]  ;;  %v1131_v51 = vstv %s3071_s27  ;;  %v1051_v38 = vadd.f32 %v1050_v21, %v1047_v23  ;;  %v1128_v41 = vmul.f32 %v1127_v31, %v2744_v30  ;;  %v1097_v0 = vmul.f32 %v1096_v32, %v2803_v63 }
 0x1dd   : > { %v1117_v34 = vadd.f32 %v1116_v19, %v1113_v25  ;;  %s3106_s3 = sld [smem:[#allocation6 + $0x109]]  ;;  %v1135_v43 = vstv %s3075_s6  ;;  %v1094_v48 = vadd.f32 %v1093_v29, %v1090_v2  ;;  %v1132_v54 = vmul.f32 %v1131_v51, %v2762_v35 }
 0x1de   : > { %s3112_s16 = sld [smem:[#allocation6 + $0x10e]]  ;;  %v1139_v30 = vstv %s3081_s8  ;;  %v1136_v16 = vmul.f32 %v1135_v43, %v2783_v4  ;;  %v1055_v35 = vadd.f32 %v1054_v33, %v1051_v38  ;;  %v3144_v4 = vmax.f32 %v1012_v37, 0.0 }
 0x1df   : > { %v1121_v39 = vadd.f32 %v1120_v26, %v1117_v34  ;;  %v1144_v42 = vstv %s3085_s2  ;;  %s3116_s1 = sld [smem:[#allocation6 + $0x113]]  ;;  %v1140_v15 = vmul.f32 %v1139_v30, %v2803_v63  ;;  %v1098_v5 = vadd.f32 %v1097_v0, %v1094_v48 }
 0x1e0   : > { %v1145_v53 = vmul.f32 %v1144_v42, %v2880_v11  ;;  %v1147_v47 = vstv %s3090_s30  ;;  %s3122_s26 = sld [smem:[#allocation6 + $0x118]]  ;;  %v3148_v13 = vmax.f32 %v1055_v35, 0.0 }
 0x1e1   : > { %v1125_v45 = vadd.f32 %v1124_v18, %v1121_v39  ;;  %v1150_v50 = vstv %s3094_s24  ;;  %s3126_s0 = sld [smem:[#allocation6 + $0x11d]]  ;;  %v3154_v3 = vmax.f32 %v1098_v5, 0.0 }
 0x1e2   : > { %v1148_v52 = vadd.f32 %v1147_v47, %v1145_v53  ;;  %v1151_v58 = vmul.f32 %v1150_v50, %v3043_v27  ;;  %v1154_v55 = vstv %s3102_s20  ;;  %s3131_s28 = sld [smem:[#allocation6 + $0x122]] }
 0x1e3   : > { %v1129_v12 = vadd.f32 %v1128_v41, %v1125_v45  ;;  %v1155_v56 = vmul.f32 %v1154_v55, %v3045_v40  ;;  %v1158_v57 = vstv %s3106_s3  ;;  %s3136_s13 = sld [smem:[#allocation6 + $0x127]] }
 0x1e4   : > { %v1152_v46 = vadd.f32 %v1151_v58, %v1148_v52  ;;  %v1159_v59 = vmul.f32 %v1158_v57, %v3096_v36  ;;  %v1162_v60 = vstv %s3112_s16  ;;  %s1724_s21 = sld [smem:[#allocation6 + $0xfb]] }
 0x1e5   : > { %v1133_v62 = vadd.f32 %v1132_v54, %v1129_v12  ;;  %v1166_v1 = vstv %s3116_s1  ;;  %s3142_s5 = sld [smem:[#allocation6 + $0x12d]]  ;;  %v1163_v8 = vmul.f32 %v1162_v60, %v3098_v28 }
 0x1e6   : > { %v1156_v7 = vadd.f32 %v1155_v56, %v1152_v46  ;;  %s1726_s10 = sld [smem:[#allocation6 + $0x100]]  ;;  %v1170_v6 = vstv %s3122_s26  ;;  %v1167_v63 = vmul.f32 %v1166_v1, %v3108_v49 }
 0x1e7   : > { %v1137_v9 = vadd.f32 %v1136_v16, %v1133_v62  ;;  %s1727_s29 = sld [smem:[#allocation6 + $0x105]]  ;;  %v1174_v17 = vstv %s3126_s0  ;;  %v1171_v44 = vmul.f32 %v1170_v6, %v3144_v4 }
 0x1e8   : > { %v1160_v61 = vadd.f32 %v1159_v59, %v1156_v7  ;;  %s1728_s19 = sld [smem:[#allocation6 + $0x10a]]  ;;  %v1178_v20 = vstv %s3131_s28  ;;  %v1175_v25 = vmul.f32 %v1174_v17, %v3148_v13 }
 0x1e9   : > { %v1141_v14 = vadd.f32 %v1140_v15, %v1137_v9  ;;  %s3152_s17 = sld [smem:[#allocation6 + $0x10f]]  ;;  %v1182_v29 = vstv %s3136_s13  ;;  %v1179_v18 = vmul.f32 %v1178_v20, %v3154_v3 }
 0x1ea   : > { %v1164_v19 = vadd.f32 %v1163_v8, %v1160_v61  ;;  %v1186_v10 = vstv %s1724_s21  ;;  %s3157_s14 = sld [smem:[#allocation6 + $0x114]] }
 0x1eb   : > { %v1187_v21 = vmul.f32 %v1186_v10, %v2880_v11  ;;  %v1189_v22 = vstv %s3142_s5  ;;  %s3162_s22 = sld [smem:[#allocation6 + $0x119]]  ;;  %v3164_v23 = vmax.f32 %v1141_v14, 0.0 }
 0x1ec   : > { %v1168_v24 = vadd.f32 %v1167_v63, %v1164_v19  ;;  %v1192_v26 = vstv %s1726_s10  ;;  %s3500_s4 = sld [smem:[#allocation20_spill]] }
 0x1ed   : > { %s3167_s9 = sld [smem:[#allocation6 + $0x11e]]  ;;  %v1190_v31 = vadd.f32 %v1189_v22, %v1187_v21  ;;  %v1193_v2 = vmul.f32 %v1192_v26, %v3043_v27  ;;  %v1196_v32 = vstv %s1727_s29  ;;  %v1183_v42 = vmul.f32 %v1182_v29, %v3164_v23 }
 0x1ee   : > { %s3171_s25 = sld [smem:[#allocation6 + $0x123]]  ;;  %v1172_v34 = vadd.f32 %v1171_v44, %v1168_v24  ;;  %v1197_v37 = vmul.f32 %v1196_v32, %v3045_v40  ;;  %v1200_v33 = vstv %s1728_s19 }
 0x1ef   : > { %s3175_s7 = sld [smem:[#allocation6 + $0x128]]  ;;  %v1194_v51 = vadd.f32 %v1193_v2, %v1190_v31  ;;  %v1201_v38 = vmul.f32 %v1200_v33, %v3096_v36  ;;  %v1204_v39 = vstv %s3152_s17 }
 0x1f0   : > { %s1735_s15 = sld [smem:[#allocation6 + $0xfc]]  ;;  %v1176_v41 = vadd.f32 %v1175_v25, %v1172_v34  ;;  %v1208_v0 = vstv %s3157_s14  ;;  %v1205_v53 = vmul.f32 %v1204_v39, %v3098_v28 }
 0x1f1   : > { %s1736_s23 = sld [smem:[#allocation6 + $0x12e]]  ;;  %v1198_v43 = vadd.f32 %v1197_v37, %v1194_v51  ;;  %v1212_v48 = vstv %s3162_s22  ;;  %v1209_v54 = vmul.f32 %v1208_v0, %v3108_v49 }
 0x1f2   : > { %s1463_s11 = sshll.u32 %s3500_s4, 3  ;;  %s1737_s18 = sld [smem:[#allocation6 + $0x101]]  ;;  %v1180_v47 = vadd.f32 %v1179_v18, %v1176_v41  ;;  %v1213_v58 = vmul.f32 %v1212_v48, %v3144_v4 }
 0x1f3   : > { %s1738_s12 = sld [smem:[#allocation6 + $0x106]]  ;;  %v1202_v45 = vadd.f32 %v1201_v38, %v1198_v43  ;;  %v1216_v30 = vstv %s3167_s9  ;;  %s3195_s30 = scalar_lea.vmem [#allocation7], %s1463_s11 }
 0x1f4   : > { %s1739_s27 = sld [smem:[#allocation6 + $0x10b]]  ;;  %v1184_v50 = vadd.f32 %v1183_v42, %v1180_v47  ;;  %v1220_v12 = vstv %s3171_s25  ;;  %v1217_v35 = vmul.f32 %v1216_v30, %v3148_v13 }
 0x1f5   : > { %s3186_s6 = sld [smem:[#allocation6 + $0x110]]  ;;  %v1206_v52 = vadd.f32 %v1205_v53, %v1202_v45  ;;  %v1224_v59 = vstv %s3175_s7  ;;  %v1221_v5 = vmul.f32 %v1220_v12, %v3154_v3 }
 0x1f6   : > { %v1228_v55 = vstv %s1735_s15  ;;  %s3189_s8 = sld [smem:[#allocation6 + $0x115]]  ;;  %1353 = vst [vmem:[%s3195_s30] sm:$0x1] %v1184_v50  ;;  %v1225_v14 = vmul.f32 %v1224_v59, %v3164_v23 }
 0x1f7   : > { %v1229_v16 = vmul.f32 %v1228_v55, %v2880_v11  ;;  %v1231_v56 = vstv %s1736_s23  ;;  %s3193_s2 = sld [smem:[#allocation6 + $0x11a]]  ;;  %v1210_v57 = vadd.f32 %v1209_v54, %v1206_v52 }
 0x1f8   : > { %v1234_v46 = vstv %s1737_s18  ;;  %s3199_s24 = sld [smem:[#allocation6 + $0x11f]] }
 0x1f9   : > { %v1232_v60 = vadd.f32 %v1231_v56, %v1229_v16  ;;  %v1235_v62 = vmul.f32 %v1234_v46, %v3043_v27  ;;  %v1238_v15 = vstv %s1738_s12  ;;  %s3203_s20 = sld [smem:[#allocation6 + $0x124]]  ;;  %v1214_v1 = vadd.f32 %v1213_v58, %v1210_v57 }
 0x1fa   : > { %v1239_v7 = vmul.f32 %v1238_v15, %v3045_v40  ;;  %v1242_v8 = vstv %s1739_s27  ;;  %s3207_s3 = sld [smem:[#allocation6 + $0x129]] }
 0x1fb   : > { %v1236_v9 = vadd.f32 %v1235_v62, %v1232_v60  ;;  %v1243_v6 = vmul.f32 %v1242_v8, %v3096_v36  ;;  %v1246_v61 = vstv %s3186_s6  ;;  %s1746_s16 = sld [smem:[#allocation6 + $0xfd]]  ;;  %v1218_v63 = vadd.f32 %v1217_v35, %v1214_v1 }
 0x1fc   : > { %v1250_v17 = vstv %s3189_s8  ;;  %s1747_s1 = sld [smem:[#allocation6 + $0x12f]]  ;;  %v1247_v44 = vmul.f32 %v1246_v61, %v3098_v28 }
 0x1fd   : > { %v1240_v19 = vadd.f32 %v1239_v7, %v1236_v9  ;;  %s1748_s26 = sld [smem:[#allocation6 + $0x102]]  ;;  %v1222_v10 = vadd.f32 %v1221_v5, %v1218_v63  ;;  %v1254_v20 = vstv %s3193_s2  ;;  %v1251_v22 = vmul.f32 %v1250_v17, %v3108_v49  ;;  %s1372_s2 = sshll.u32 %s3195_s30, 4  ;;  %s1373_s2 = int_to_ptr.vmem [resolvable:$true] %s1372_s2 }
 0x1fe   : > { %s1749_s0 = sld [smem:[#allocation6 + $0x107]]  ;;  %v1258_v25 = vstv %s3199_s24  ;;  %v1255_v29 = vmul.f32 %v1254_v20, %v3144_v4 }
 0x1ff   : > { %v1244_v21 = vadd.f32 %v1243_v6, %v1240_v19  ;;  %s1750_s28 = sld [smem:[#allocation6 + $0x10c]]  ;;  %v1226_v24 = vadd.f32 %v1225_v14, %v1222_v10  ;;  %v1262_v2 = vstv %s3203_s20  ;;  %v1259_v37 = vmul.f32 %v1258_v25, %v3148_v13 }
 0x200   : > { %s3217_s13 = sld [smem:[#allocation6 + $0x111]]  ;;  %v1266_v51 = vstv %s3207_s3  ;;  %v1263_v0 = vmul.f32 %v1262_v2, %v3154_v3 }
 0x201   : > { %v1248_v26 = vadd.f32 %v1247_v44, %v1244_v21  ;;  %v1270_v31 = vstv %s1746_s16  ;;  %s3220_s21 = sld [smem:[#allocation6 + $0x116]]  ;;  %1354 = vst [vmem:[%s3195_s30 + $0x1] sm:$0x1] %v1226_v24  ;;  %v1267_v50 = vmul.f32 %v1266_v51, %v3164_v23 }
 0x202   : > { %v1271_v32 = vmul.f32 %v1270_v31, %v2880_v11  ;;  %v1273_v34 = vstv %s1747_s1  ;;  %s3224_s5 = sld [smem:[#allocation6 + $0x11b]]  ;;  %s1359_s1 = scalar_lea.sflag [#allocation4], %s3500_s4 }
 0x203   : > { %v1252_v18 = vadd.f32 %v1251_v22, %v1248_v26  ;;  %v1276_v33 = vstv %s1748_s26  ;;  %s3228_s10 = sld [smem:[#allocation6 + $0x120]]  ;;  %s1868_s26 = scalar_lea.vmem %s1373_s2, 128 }
 0x204   : > { %v1274_v38 = vadd.f32 %v1273_v34, %v1271_v32  ;;  %v1277_v39 = vmul.f32 %v1276_v33, %v3043_v27  ;;  %v1280_v41 = vstv %s1749_s0  ;;  %s3232_s29 = sld [smem:[#allocation6 + $0x125]]  ;;  %p1869_p8 = scmp.ne.s32.totalorder %s1373_s2, %s1868_s26 }
 0x205   : > { %v1256_v42 = vadd.f32 %v1255_v29, %v1252_v18  ;;  %v1281_v43 = vmul.f32 %v1280_v41, %v3045_v40  ;;  %v1284_v53 = vstv %s1750_s28  ;;  %s3236_s19 = sld [smem:[#allocation6 + $0x12a]]  ;;  %s1940_s0 = smov [#allocation7]  }
 0x206   : > { %v1278_v47 = vadd.f32 %v1277_v39, %v1274_v38  ;;  %v1285_v48 = vmul.f32 %v1284_v53, %v3096_v36  ;;  %v1288_v45 = vstv %s3217_s13  ;;  %s1757_s17 = sld [smem:[#allocation6 + $0xfe]]  ;;  %s1872_s28 = sshll.u32 %s1940_s0, 4  ;;  %s1873_s28 = int_to_ptr.vmem [resolvable:$false] %s1872_s28 }
 0x207   : > { %v1260_v54 = vadd.f32 %v1259_v37, %v1256_v42  ;;  %v1292_v30 = vstv %s3220_s21  ;;  %s1758_s14 = sld [smem:[#allocation6 + $0x130]]  ;;  %v1289_v58 = vmul.f32 %v1288_v45, %v3098_v28  ;;  %s1874_s13 = scalar_lea.vmem %s1873_s28, 256 }
 0x208   : > { %v1282_v52 = vadd.f32 %v1281_v43, %v1278_v47  ;;  %s1759_s22 = sld [smem:[#allocation6 + $0x103]]  ;;  %v1296_v12 = vstv %s3224_s5  ;;  %v1293_v56 = vmul.f32 %v1292_v30, %v3108_v49  ;;  %p1875_p11 = scmp.lt.s32.totalorder %s1373_s2, %s1873_s28 }
 0x209   : > { %v1264_v55 = vadd.f32 %v1263_v0, %v1260_v54  ;;  %s1760_s9 = sld [smem:[#allocation6 + $0x108]]  ;;  %v1300_v35 = vstv %s3228_s10  ;;  %v1297_v59 = vmul.f32 %v1296_v12, %v3144_v4  ;;  %p1876_p0 = scmp.lt.s32.totalorder %s1874_s13, %s1868_s26 }
 0x20a   : > { %v1286_v16 = vadd.f32 %v1285_v48, %v1282_v52  ;;  %s1761_s25 = sld [smem:[#allocation6 + $0x10d]]  ;;  %v1304_v62 = vstv %s3232_s29  ;;  %v1301_v7 = vmul.f32 %v1300_v35, %v3148_v13 }
 0x20b   : > { %v1268_v57 = vadd.f32 %v1267_v50, %v1264_v55  ;;  %s3246_s7 = sld [smem:[#allocation6 + $0x112]]  ;;  %v1308_v9 = vstv %s3236_s19  ;;  %p1877_p3 = por %p1876_p0, %p1875_p11 }
 0x20c   : > { %v1290_v46 = vadd.f32 %v1289_v58, %v1286_v16  ;;  %v1312_v60 = vstv %s1757_s17  ;;  %s3249_s15 = sld [smem:[#allocation6 + $0x117]]  ;;  %v1309_v22 = vmul.f32 %v1308_v9, %v3164_v23 }
 0x20d   : > { %v1313_v15 = vmul.f32 %v1312_v60, %v2880_v11  ;;  %v1315_v1 = vstv %s1758_s14  ;;  %s3253_s11 = sld [smem:[#allocation6 + $0x11c]]  ;;  %1355 = vst [vmem:[%s3195_s30 + $0x2] sm:$0x1] %v1268_v57  ;;  %v1305_v11 = vmul.f32 %v1304_v62, %v3154_v3 }
 0x20e   : > { %v1294_v5 = vadd.f32 %v1293_v56, %v1290_v46  ;;  %v1318_v8 = vstv %s1759_s22  ;;  %s1765_s23 = sld [smem:[#allocation6 + $0x121]] }
 0x20f   : > { %v1316_v6 = vadd.f32 %v1315_v1, %v1313_v15  ;;  %v1319_v61 = vmul.f32 %v1318_v8, %v3043_v27  ;;  %v1322_v63 = vstv %s1760_s9  ;;  %s1766_s18 = sld [smem:[#allocation6 + $0x126]] }
 0x210   : > { %v1298_v14 = vadd.f32 %v1297_v59, %v1294_v5  ;;  %v1323_v17 = vmul.f32 %v1322_v63, %v3045_v40  ;;  %v1326_v19 = vstv %s1761_s25  ;;  %s1767_s12 = sld [smem:[#allocation6 + $0x12b]] }
 0x211   : > { %v1320_v44 = vadd.f32 %v1319_v61, %v1316_v6  ;;  %v1327_v10 = vmul.f32 %v1326_v19, %v3096_v36  ;;  %v1330_v20 = vstv %s3246_s7  ;;  %s3501_s27 = sld [smem:[#allocation15_spill]] }
 0x212   : > { %v1302_v21 = vadd.f32 %v1301_v7, %v1298_v14  ;;  %v1334_v24 = vstv %s3249_s15  ;;  %v1331_v25 = vmul.f32 %v1330_v20, %v3098_v28  ;;  %s3502_s6 = sld [smem:[#allocation19_spill]] }
 0x213   : > { %v1324_v27 = vadd.f32 %v1323_v17, %v1320_v44  ;;  %v1338_v29 = vstv %s3253_s11  ;;  %v1335_v40 = vmul.f32 %v1334_v24, %v3108_v49  ;;  %s3503_s3 = sld [smem:[#allocation66_spill]] }
 0x214   : > { %v1306_v26 = vadd.f32 %v1305_v11, %v1302_v21  ;;  %v1342_v32 = vstv %s1765_s23  ;;  %v1339_v34 = vmul.f32 %v1338_v29, %v3144_v4 }
 0x215   : > { %v1328_v31 = vadd.f32 %v1327_v10, %v1324_v27  ;;  %v1346_v18 = vstv %s1766_s18  ;;  %v1343_v33 = vmul.f32 %v1342_v32, %v3148_v13 }
 0x216   : > { %v1310_v2 = vadd.f32 %v1309_v22, %v1306_v26  ;;  %v1350_v28 = vstv %s1767_s12  ;;  %v1347_v38 = vmul.f32 %v1346_v18, %v3154_v3 }
 0x217   : > { %v1332_v36 = vadd.f32 %v1331_v25, %v1328_v31  ;;  %v1351_v49 = vmul.f32 %v1350_v28, %v3164_v23  ;;  %s1769_s8 = sshll.u32 %s3501_s27, 7 }
 0x218   : > { %1356 = vst [vmem:[%s3195_s30 + $0x3] sm:$0x1] %v1310_v2  ;;  %p3504_p9 = scmp.ne.s32.totalorder %s3502_s6, 0 }
 0x219   : > { %v1336_v37 = vadd.f32 %v1335_v40, %v1332_v36  ;;  %s1370_s16 = scalar_lea.hbm %s3503_s3, %s1769_s8 }
 0x21a   : > { %p1870_p7 = pnand %p1869_p8, %p3504_p9 }
 0x21b   : > { %v1340_v51 = vadd.f32 %v1339_v34, %v1336_v37 }
 0x21c   : > { %p1871_p10 = pneg %p1870_p7 }
 0x21d   : > { %v1344_v39 = vadd.f32 %v1343_v33, %v1340_v51 }
 0x21e   : > { %p1878_p5 = pnand %p1877_p3, %p1871_p10 }
 0x21f   : > { %v1348_v41 = vadd.f32 %v1347_v38, %v1344_v39 }
 0x221   : > { %v1352_v42 = vadd.f32 %v1351_v49, %v1348_v41 }
 0x223   : > { %1357 = vst [vmem:[%s3195_s30 + $0x4] sm:$0x1] %v1352_v42 }
 0x224   : > { %1881 = shalt.err (!%p1878_p5)
}
 0x225   : > { %s1882_s21 = scalar_lea.hbm %s1370_s16, 128  ;;  %s1886_s5 = scalar_lea.hbm %s3503_s3, 256 }
 0x226   : > { %p1883_p2 = scmp.ne.s32.totalorder %s1370_s16, %s1882_s21  ;;  %p1887_p1 = scmp.lt.s32.totalorder %s1370_s16, %s3503_s3 }
 0x227   : > { %p1888_p4 = scmp.lt.s32.totalorder %s1886_s5, %s1882_s21 }
 0x228   : > { %p1884_p12 = pnand %p1883_p2, %p3504_p9 }
 0x229   : > { %p1889_p6 = por %p1888_p4, %p1887_p1 }
 0x22a   : > { %p1885_p13 = pneg %p1884_p12 }
 0x22c   : > { %p1890_p8 = pnand %p1889_p6, %p1885_p13 }
 0x22e   : > { %1893 = shalt.err (!%p1890_p8)
}
 0x22f   : > { %1778 = dma.vmem_to_hbm [thread:$0]  (%p3504_p9), %s1373_s2, 128, %s1370_s16, %s1359_s1  }
 0x230 PF: > { %s3505_s19 = sld [smem:[#allocation11_spill]] }
 0x231   : > { %s3506_s17 = sld [smem:[#allocation16_spill]] }
 0x232   : > { %s3507_s14 = sld [smem:[#allocation14_spill]] }
 0x236   : > { %s1384_s22 = sand.u32 1, %s3505_s19  }
 0x237   : > { %p3508_p7 = scmp.ne.s32.totalorder %s3506_s17, 0  ;;  %s1385_s9 = scalar_lea.sflag [#allocation4], %s1384_s22 }
 0x238   : > { %p3509_p10 = scmp.ge.s32.totalorder %s3507_s14, 2 }
 0x23a   : > { %p1789_p11 = pnand %p3509_p10, %p3508_p7 }
 0x23c   : > { %p1790_p0 = pneg %p1789_p11 }
 0x23e   : > { %1919 = dma.done.wait (%p1790_p0), %s1385_s9, 128  }
 0x23f   : > { %1921 = vsyncadd (%p1790_p0), %s1385_s9, 4294967168  ;;  %s3510_s12 = sld [smem:[#allocation17_spill]] }
 0x240   : > { %s3511_s9 = sld [smem:[#allocation12_spill]] }
 0x241   : > { %s3512_s10 = sld [smem:[#allocation13_spill]] }
 0x242   : > { %s3513_s11 = sld [smem:[#allocation18_spill]] }
 0x245   : > { %p16_p3 = scmp.ge.s32.totalorder %s3510_s12, 4  }
 0x247   :  { %18 = sbr.rel (!%p16_p3) target bundleno = 10 (0xa), region = 78 }
 0x24c   :  { %1390 = vsyncpa [#allocation3], 1 }
 0x24d   :  { %1392 = vsyncpa [#allocation3 + $0x1], 1 }
 0x24e   :  { %1393 = vsyncpa [#allocation4], 1 }
 0x24f   :  { %1395 = vsyncpa [#allocation4 + $0x1], 1 }
 0x250   :  { %1396 = vsyncpa [#allocation5], 1 }
 0x251   :  { %1398 = vsyncpa [#allocation5 + $0x1], 1 }

</bundles_post_ra>
